<compile_context>
chip_gen: v5e
topology: v5e:2x2
jax: 0.10.0
libtpu: 0.0.40
codegen_flags: <defaults>
</compile_context>

<pallas_src>
import functools
import math

import jax
import jax.numpy as jnp
import numpy as np
from jax import lax
from jax.experimental import pallas as pl
from jax.experimental.pallas import tpu as pltpu


def _vmem_limit_bytes() -> int:
    # v5e/v6e: 128 MiB physical -> use ~100 MiB; v7x: 64 MiB -> ~48 MiB.
    try:
        cap = pltpu.get_tpu_info().vmem_capacity_bytes
    except Exception:  # older jax / attribute drift: assume 128 MiB class
        cap = 128 * 1024 * 1024
    return min(int(cap * 3 // 4), 100 * 1024 * 1024)


# ---------------------------------------------------------------------------
# Rotary auxiliary tensors (mirrors get_auxiliary_tensors in the PyTorch code)
# ---------------------------------------------------------------------------
def get_auxiliary_tensors(seq_len: int, dim: int, base: int = 10000):
    buf = jnp.linspace(0.0, -1.0 + 2.0 / dim, dim // 2, dtype=jnp.float32)
    inv_freq = jnp.tile(jnp.power(float(base), buf), 2)            # [dim]
    time_ix = jnp.arange(seq_len, dtype=jnp.float32)
    freqs = time_ix[:, None] * inv_freq[None, :]                   # [seq_len, dim]
    return jnp.cos(freqs), jnp.sin(freqs)


def _layer_norm(v, w, b, eps):
    mu = jnp.mean(v, axis=-1, keepdims=True)
    var = jnp.mean(jnp.square(v - mu), axis=-1, keepdims=True)
    return (v - mu) * lax.rsqrt(var + eps) * w + b


# ---------------------------------------------------------------------------
# Kernel 1: pre-LN + Q/K/V projections + rotary embedding.
# grid = (num_s_tiles, B); outputs q/k/v in bf16 head-major [B, NH, S, D].
# Rotary rotate-half is done per head on the [TS, D] lane-aligned slice
# (single XLU roll, no cross-head relayout); the sin table carries the sign.
# ---------------------------------------------------------------------------
def _qkv_rotary_kernel(x_ref, cos_ref, sin_ref, ln_w_ref, ln_b_ref,
                       w_q_ref, b_q_ref, w_k_ref, b_k_ref, w_v_ref, b_v_ref,
                       q_ref, k_ref, v_ref, *, NH, D, ln_eps):
    x = x_ref[0]                                                   # [TS, H] f32
    h_ln = _layer_norm(x, ln_w_ref[...], ln_b_ref[...], ln_eps)
    h_bf = h_ln.astype(jnp.bfloat16)

    q = jnp.dot(h_bf, w_q_ref[...], preferred_element_type=jnp.float32) + b_q_ref[...]
    k = jnp.dot(h_bf, w_k_ref[...], preferred_element_type=jnp.float32) + b_k_ref[...]
    v = jnp.dot(h_bf, w_v_ref[...], preferred_element_type=jnp.float32) + b_v_ref[...]

    cos = cos_ref[...]                                             # [TS, D]
    sin = sin_ref[...]                                             # [TS, D], sign pre-folded

    for h in range(NH):                                            # static loop, lane-aligned slices
        sl = slice(h * D, (h + 1) * D)
        qh = q[:, sl]
        kh = k[:, sl]
        q_ref[0, h] = (qh * cos + pltpu.roll(qh, shift=D // 2, axis=1) * sin
                       ).astype(jnp.bfloat16)
        k_ref[0, h] = (kh * cos + pltpu.roll(kh, shift=D // 2, axis=1) * sin
                       ).astype(jnp.bfloat16)
        v_ref[0, h] = v[:, sl].astype(jnp.bfloat16)


# ---------------------------------------------------------------------------
# Kernel 2: flash-style causal attention, heads handled as a batched matmul.
# grid = (num_q_tiles, B, num_kv_tiles); kv axis is the (arbitrary) reduction.
# K/V index_map clamps the kv block index to the causal bound -> no DMA for
# fully-masked tiles; compute is skipped by pl.when for those iterations.
# ---------------------------------------------------------------------------
def _flash_attn_kernel(q_ref, k_ref, v_ref, ctx_ref, m_sc, l_sc, acc_sc,
                       *, NH, D, TQ, TK, scale, mask_value):
    qi = pl.program_id(0)
    ki = pl.program_id(2)

    @pl.when(ki == 0)
    def _():
        m_sc[...] = jnp.full_like(m_sc, -jnp.inf)
        l_sc[...] = jnp.zeros_like(l_sc)
        acc_sc[...] = jnp.zeros_like(acc_sc)

    q_start = qi * TQ
    k_start = ki * TK

    @pl.when(k_start <= q_start + (TQ - 1))                       # skip fully-masked kv tiles
    def _():
        q = q_ref[0]                                               # [NH, TQ, D] bf16
        k = k_ref[0]                                               # [NH, TK, D] bf16
        v = v_ref[0]                                               # [NH, TK, D] bf16
        s = jnp.einsum('hqd,hkd->hqk', q, k,
                       preferred_element_type=jnp.float32) * scale
        row = q_start + lax.broadcasted_iota(jnp.int32, (TQ, TK), 0)
        col = k_start + lax.broadcasted_iota(jnp.int32, (TQ, TK), 1)
        s = jnp.where((row >= col)[None, :, :], s, mask_value)

        m_prev = m_sc[...]
        m_new = jnp.maximum(m_prev, jnp.max(s, axis=-1, keepdims=True))
        alpha = jnp.exp(m_prev - m_new)
        p = jnp.exp(s - m_new)
        l_sc[...] = alpha * l_sc[...] + jnp.sum(p, axis=-1, keepdims=True)
        acc_sc[...] = alpha * acc_sc[...] + jnp.einsum(
            'hqk,hkd->hqd', p.astype(jnp.bfloat16), v,
            preferred_element_type=jnp.float32)
        m_sc[...] = m_new

    @pl.when(ki == pl.num_programs(2) - 1)
    def _():
        inv_l = pl.reciprocal(l_sc[...], approx=True)
        ctx = acc_sc[...] * inv_l                                  # [NH, TQ, D]
        for h in range(NH):                                        # lane-aligned head merge
            ctx_ref[0, :, h * D:(h + 1) * D] = ctx[h].astype(jnp.bfloat16)


# ---------------------------------------------------------------------------
# Kernel 3: attention out-projection + residual, then pre-LN FFN (gelu_new).
# grid = (num_s_tiles, B, num_i_tiles); intermediate axis is the reduction,
# K-tiled over the intermediate dim with an f32 accumulator scratch.
# ---------------------------------------------------------------------------
def _out_ffn_kernel(ctx_ref, x_ref, w_out_ref, b_out_ref,
                    ln_w_ref, ln_b_ref, w_i2h_ref, b_i2h_ref,
                    w_h2o_ref, b_h2o_ref,
                    ffn_ref, attn_ref,
                    attn_sc, f_ln_sc, acc_sc, *, ln_eps):
    ii = pl.program_id(2)

    @pl.when(ii == 0)
    def _():
        proj = jnp.dot(ctx_ref[0], w_out_ref[...],
                       preferred_element_type=jnp.float32)
        attn_out = proj + b_out_ref[...] + x_ref[0]                # residual
        attn_sc[...] = attn_out
        attn_ref[0] = attn_out
        f_ln = _layer_norm(attn_out, ln_w_ref[...], ln_b_ref[...], ln_eps)
        f_ln_sc[...] = f_ln.astype(jnp.bfloat16)
        acc_sc[...] = jnp.zeros_like(acc_sc)

    pre = jnp.dot(f_ln_sc[...], w_i2h_ref[...],
                  preferred_element_type=jnp.float32) + b_i2h_ref[...]
    c = math.sqrt(2.0 / math.pi)
    act = 0.5 * pre * (1.0 + jnp.tanh(c * (pre + 0.044715 * pre * pre * pre)))
    acc_sc[...] += jnp.dot(act.astype(jnp.bfloat16), w_h2o_ref[...],
                           preferred_element_type=jnp.float32)

    @pl.when(ii == pl.num_programs(2) - 1)
    def _():
        ffn_ref[0] = acc_sc[...] + b_h2o_ref[...] + attn_sc[...]   # residual


# ---------------------------------------------------------------------------
# Wrapper
# ---------------------------------------------------------------------------
def lean_albert_layer(x, params, cos, sin, *, num_heads, ln_eps=1e-12,
                      tile_s=256, tile_q=256, tile_k=256, tile_i=1024):
    B, S, H = x.shape
    NH = num_heads
    D = H // NH
    I = params["w_i2h"].shape[1]

    # Clamp tiles to the actual problem (large defaults fill the MXU at production shapes).
    tile_s = min(tile_s, S)
    tile_q = min(tile_q, S)
    tile_k = min(tile_k, S)
    tile_i = min(tile_i, I)

    assert H % NH == 0 and D % 2 == 0
    assert S % tile_s == 0 and S % tile_q == 0 and S % tile_k == 0
    assert I % tile_i == 0

    vmem_limit = _vmem_limit_bytes()

    # Pre-signed sin (folds the rotate-half negation); cos/sin stay per-head [S, D].
    sin_signed = jnp.concatenate([-sin[:, :D // 2], sin[:, D // 2:]], axis=-1)
    cos_hd = cos.astype(jnp.float32)                               # [S, D]
    sin_hd = sin_signed.astype(jnp.float32)                        # [S, D]

    # bf16 MXU operands (weights); biases / LN params stay f32.
    w_qkv = params["w_qkv"].astype(jnp.bfloat16)
    w_q, w_k, w_v = w_qkv[:, :H], w_qkv[:, H:2 * H], w_qkv[:, 2 * H:]
    b_qkv = params["b_qkv"]
    b_q, b_k, b_v = b_qkv[:, :H], b_qkv[:, H:2 * H], b_qkv[:, 2 * H:]
    w_out = params["w_out"].astype(jnp.bfloat16)
    w_i2h = params["w_i2h"].astype(jnp.bfloat16)
    w_h2o = params["w_h2o"].astype(jnp.bfloat16)
    # TODO(synk): at very large H (>= 4096) additionally N-tile w_q/w_k/w_v and w_out so each
    # weight block stays within the v7x 64 MiB VMEM budget.

    # ---- Kernel 1: LN + QKV + rotary ----  grid (S_tiles, B): leading parallel axis = seq.
    qkv_call = pl.pallas_call(
        functools.partial(_qkv_rotary_kernel, NH=NH, D=D, ln_eps=ln_eps),
        grid=(S // tile_s, B),
        in_specs=[
            pl.BlockSpec((1, tile_s, H), lambda si, b: (b, si, 0)),
            pl.BlockSpec((tile_s, D), lambda si, b: (si, 0)),       # cos (per-head table)
            pl.BlockSpec((tile_s, D), lambda si, b: (si, 0)),       # sin (sign pre-folded)
            pl.BlockSpec((1, H), lambda si, b: (0, 0)),             # attn_ln_w
            pl.BlockSpec((1, H), lambda si, b: (0, 0)),             # attn_ln_b
            pl.BlockSpec((H, H), lambda si, b: (0, 0)),             # w_q
            pl.BlockSpec((1, H), lambda si, b: (0, 0)),             # b_q
            pl.BlockSpec((H, H), lambda si, b: (0, 0)),             # w_k
            pl.BlockSpec((1, H), lambda si, b: (0, 0)),             # b_k
            pl.BlockSpec((H, H), lambda si, b: (0, 0)),             # w_v
            pl.BlockSpec((1, H), lambda si, b: (0, 0)),             # b_v
        ],
        out_specs=[
            pl.BlockSpec((1, NH, tile_s, D), lambda si, b: (b, 0, si, 0)),
            pl.BlockSpec((1, NH, tile_s, D), lambda si, b: (b, 0, si, 0)),
            pl.BlockSpec((1, NH, tile_s, D), lambda si, b: (b, 0, si, 0)),
        ],
        out_shape=[
            jax.ShapeDtypeStruct((B, NH, S, D), jnp.bfloat16),
            jax.ShapeDtypeStruct((B, NH, S, D), jnp.bfloat16),
            jax.ShapeDtypeStruct((B, NH, S, D), jnp.bfloat16),
        ],
        compiler_params=pltpu.CompilerParams(
            dimension_semantics=("parallel", "parallel"),
            vmem_limit_bytes=vmem_limit),
    )
    q_rot, k_rot, v_h = qkv_call(x, cos_hd, sin_hd,
                                 params["attn_ln_w"], params["attn_ln_b"],
                                 w_q, b_q, w_k, b_k, w_v, b_v)

    # ---- Kernel 2: flash attention (causal, -10000 soft mask as in the module) ----
    TQ, TK = tile_q, tile_k

    def _kv_index(qi, b, ki):
        # Clamp kv block index to the causal bound: skipped (fully masked) iterations re-map
        # to the previously fetched block, so Pallas does not issue a new DMA for them.
        max_kv_block = (qi * TQ + TQ - 1) // TK
        return (b, 0, jnp.minimum(ki, max_kv_block), 0)

    flash_call = pl.pallas_call(
        functools.partial(_flash_attn_kernel, NH=NH, D=D, TQ=TQ, TK=TK,
                          scale=1.0 / math.sqrt(D), mask_value=-10000.0),
        grid=(S // TQ, B, S // TK),
        in_specs=[
            pl.BlockSpec((1, NH, TQ, D), lambda qi, b, ki: (b, 0, qi, 0)),
            pl.BlockSpec((1, NH, TK, D), _kv_index),
            pl.BlockSpec((1, NH, TK, D), _kv_index),
        ],
        out_specs=pl.BlockSpec((1, TQ, H), lambda qi, b, ki: (b, qi, 0)),
        out_shape=jax.ShapeDtypeStruct((B, S, H), jnp.bfloat16),
        scratch_shapes=[
            pltpu.VMEM((NH, TQ, 1), jnp.float32),   # running max
            pltpu.VMEM((NH, TQ, 1), jnp.float32),   # running sum
            pltpu.VMEM((NH, TQ, D), jnp.float32),   # context accumulator
        ],
        compiler_params=pltpu.CompilerParams(
            dimension_semantics=("parallel", "parallel", "arbitrary"),
            vmem_limit_bytes=vmem_limit),
    )
    ctx = flash_call(q_rot, k_rot, v_h)

    # ---- Kernel 3: out-proj + residual + FFN (K-tiled over intermediate dim) ----
    out_ffn_call = pl.pallas_call(
        functools.partial(_out_ffn_kernel, ln_eps=ln_eps),
        grid=(S // tile_s, B, I // tile_i),
        in_specs=[
            pl.BlockSpec((1, tile_s, H), lambda si, b, ii: (b, si, 0)),   # ctx
            pl.BlockSpec((1, tile_s, H), lambda si, b, ii: (b, si, 0)),   # x (residual)
            pl.BlockSpec((H, H), lambda si, b, ii: (0, 0)),               # w_out
            pl.BlockSpec((1, H), lambda si, b, ii: (0, 0)),               # b_out
            pl.BlockSpec((1, H), lambda si, b, ii: (0, 0)),               # ffn_ln_w
            pl.BlockSpec((1, H), lambda si, b, ii: (0, 0)),               # ffn_ln_b
            pl.BlockSpec((H, tile_i), lambda si, b, ii: (0, ii)),         # w_i2h tile
            pl.BlockSpec((1, tile_i), lambda si, b, ii: (0, ii)),         # b_i2h tile
            pl.BlockSpec((tile_i, H), lambda si, b, ii: (ii, 0)),         # w_h2o tile
            pl.BlockSpec((1, H), lambda si, b, ii: (0, 0)),               # b_h2o
        ],
        out_specs=[
            pl.BlockSpec((1, tile_s, H), lambda si, b, ii: (b, si, 0)),   # ffn_output
            pl.BlockSpec((1, tile_s, H), lambda si, b, ii: (b, si, 0)),   # attention_output
        ],
        out_shape=[
            jax.ShapeDtypeStruct((B, S, H), jnp.float32),
            jax.ShapeDtypeStruct((B, S, H), jnp.float32),
        ],
        scratch_shapes=[
            pltpu.VMEM((tile_s, H), jnp.float32),       # attn_out (residual source)
            pltpu.VMEM((tile_s, H), jnp.bfloat16),      # LN'd FFN input (MXU operand)
            pltpu.VMEM((tile_s, H), jnp.float32),       # FFN accumulator
        ],
        compiler_params=pltpu.CompilerParams(
            dimension_semantics=("parallel", "parallel", "arbitrary"),
            vmem_limit_bytes=vmem_limit),
    )
    ffn_out, attn_out = out_ffn_call(
        ctx, x, w_out, params["b_out"],
        params["ffn_ln_w"], params["ffn_ln_b"],
        w_i2h, params["b_i2h"], w_h2o, params["b_h2o"])
    return ffn_out, attn_out


# ---------------------------------------------------------------------------
# Pure-JAX reference (mirrors the PyTorch forward semantics) for verification
# ---------------------------------------------------------------------------
def reference_forward(x, p, cos, sin, *, num_heads, ln_eps=1e-12):
    B, S, H = x.shape
    D = H // num_heads

    def ln(v, w, b):
        mu = v.mean(-1, keepdims=True)
        var = ((v - mu) ** 2).mean(-1, keepdims=True)
        return (v - mu) / jnp.sqrt(var + ln_eps) * w + b

    h_ln = ln(x, p["attn_ln_w"], p["attn_ln_b"])
    qkv = h_ln @ p["w_qkv"] + p["b_qkv"]
    q, k, v = jnp.split(qkv, 3, axis=-1)

    def rot(t):
        t = t.reshape(B, S, num_heads, D)
        left, right = t[..., : D // 2], t[..., D // 2:]
        tr = jnp.concatenate([-right, left], axis=-1)
        return (t * cos[None, :, None, :] + tr * sin[None, :, None, :]).reshape(B, S, H)

    q, k = rot(q), rot(k)
    qh = q.reshape(B, S, num_heads, D).transpose(0, 2, 1, 3)
    kh = k.reshape(B, S, num_heads, D).transpose(0, 2, 1, 3)
    vh = v.reshape(B, S, num_heads, D).transpose(0, 2, 1, 3)
    scores = jnp.einsum("bhqd,bhkd->bhqk", qh, kh) / math.sqrt(D)
    causal = jnp.tril(jnp.ones((S, S), dtype=bool))
    scores = jnp.where(causal, scores, -10000.0)
    probs = jax.nn.softmax(scores, axis=-1)
    ctx = jnp.einsum("bhqk,bhkd->bhqd", probs, vh).transpose(0, 2, 1, 3).reshape(B, S, H)
    attn_out = ctx @ p["w_out"] + p["b_out"] + x

    f_ln = ln(attn_out, p["ffn_ln_w"], p["ffn_ln_b"])
    pre = f_ln @ p["w_i2h"] + p["b_i2h"]
    c = math.sqrt(2.0 / math.pi)
    act = 0.5 * pre * (1.0 + jnp.tanh(c * (pre + 0.044715 * pre ** 3)))
    ffn_out = act @ p["w_h2o"] + p["b_h2o"] + attn_out
    return ffn_out, attn_out


if __name__ == "__main__":
    # Small, lane-aligned shapes (H multiple of 128, S multiple of tile size).
    B, S, H = 2, 256, 256
    NUM_HEADS = 2
    D = H // NUM_HEADS            # 128 -> full MXU contraction depth per head
    INTERMEDIATE = 512
    ROTARY_BASE = 10000
    LN_EPS = 1e-12

    key = jax.random.PRNGKey(0)
    ks = jax.random.split(key, 16)
    std = 0.02
    params = {
        "attn_ln_w": jnp.ones((1, H), jnp.float32),
        "attn_ln_b": jnp.zeros((1, H), jnp.float32),
        "w_qkv": std * jax.random.normal(ks[0], (H, 3 * H), jnp.float32),
        "b_qkv": std * jax.random.normal(ks[1], (1, 3 * H), jnp.float32),
        "w_out": std * jax.random.normal(ks[2], (H, H), jnp.float32),
        "b_out": std * jax.random.normal(ks[3], (1, H), jnp.float32),
        "ffn_ln_w": jnp.ones((1, H), jnp.float32),
        "ffn_ln_b": jnp.zeros((1, H), jnp.float32),
        "w_i2h": std * jax.random.normal(ks[4], (H, INTERMEDIATE), jnp.float32),
        "b_i2h": std * jax.random.normal(ks[5], (1, INTERMEDIATE), jnp.float32),
        "w_h2o": std * jax.random.normal(ks[6], (INTERMEDIATE, H), jnp.float32),
        "b_h2o": std * jax.random.normal(ks[7], (1, H), jnp.float32),
    }
    x = jax.random.normal(ks[8], (B, S, H), jnp.float32)
    cos, sin = get_auxiliary_tensors(S, D, ROTARY_BASE)

    # 128-wide tiles here exercise the multi-tile accumulation + causal-DMA-skip paths at the
    # small demo shapes; production defaults (256 / 1024) kick in automatically for large S/I.
    ffn_out, attn_out = lean_albert_layer(
        x, params, cos, sin, num_heads=NUM_HEADS, ln_eps=LN_EPS,
        tile_s=128, tile_q=128, tile_k=128, tile_i=512)
    jax.block_until_ready((ffn_out, attn_out))

    ref_ffn, ref_attn = reference_forward(
        x, params, cos, sin, num_heads=NUM_HEADS, ln_eps=LN_EPS)
    # bf16 MXU operands -> loosened tolerances vs. the f32 reference.
    np.testing.assert_allclose(np.asarray(attn_out), np.asarray(ref_attn),
                               rtol=2e-2, atol=2e-2)
    np.testing.assert_allclose(np.asarray(ffn_out), np.asarray(ref_ffn),
                               rtol=2e-2, atol=2e-2)

    print("KERNEL_OK")
</pallas_src>

<mosaic_0001>
module attributes {stable_mosaic.version = 11 : i64} {
  func.func @_qkv_rotary_kernel(%arg0: i32, %arg1: i32, %arg2: memref<1x128x256xf32, #tpu.memory_space<vmem>>, %arg3: memref<128x128xf32, #tpu.memory_space<vmem>>, %arg4: memref<128x128xf32, #tpu.memory_space<vmem>>, %arg5: memref<1x256xf32, #tpu.memory_space<vmem>>, %arg6: memref<1x256xf32, #tpu.memory_space<vmem>>, %arg7: memref<256x256xbf16, #tpu.memory_space<vmem>>, %arg8: memref<1x256xf32, #tpu.memory_space<vmem>>, %arg9: memref<256x256xbf16, #tpu.memory_space<vmem>>, %arg10: memref<1x256xf32, #tpu.memory_space<vmem>>, %arg11: memref<256x256xbf16, #tpu.memory_space<vmem>>, %arg12: memref<1x256xf32, #tpu.memory_space<vmem>>, %arg13: memref<1x2x128x128xbf16, #tpu.memory_space<vmem>>, %arg14: memref<1x2x128x128xbf16, #tpu.memory_space<vmem>>, %arg15: memref<1x2x128x128xbf16, #tpu.memory_space<vmem>>) attributes {dimension_semantics = [#tpu.dimension_semantics<parallel>, #tpu.dimension_semantics<parallel>], iteration_bounds = array<i64: 2, 2>, scalar_prefetch = 0 : i64, scratch_operands = 0 : i64, tpu.core_type = #tpu.core_type<tc>, window_params = [{transform_indices = @transform_0, window_bounds = array<i64: 1, 128, 256>}, {transform_indices = @transform_1, window_bounds = array<i64: 128, 128>}, {transform_indices = @transform_2, window_bounds = array<i64: 128, 128>}, {pipeline_mode = #tpu.pipeline_mode<synchronous>, transform_indices = @transform_3, window_bounds = array<i64: 1, 256>}, {pipeline_mode = #tpu.pipeline_mode<synchronous>, transform_indices = @transform_4, window_bounds = array<i64: 1, 256>}, {pipeline_mode = #tpu.pipeline_mode<synchronous>, transform_indices = @transform_5, window_bounds = array<i64: 256, 256>}, {pipeline_mode = #tpu.pipeline_mode<synchronous>, transform_indices = @transform_6, window_bounds = array<i64: 1, 256>}, {pipeline_mode = #tpu.pipeline_mode<synchronous>, transform_indices = @transform_7, window_bounds = array<i64: 256, 256>}, {pipeline_mode = #tpu.pipeline_mode<synchronous>, transform_indices = @transform_8, window_bounds = array<i64: 1, 256>}, {pipeline_mode = #tpu.pipeline_mode<synchronous>, transform_indices = @transform_9, window_bounds = array<i64: 256, 256>}, {pipeline_mode = #tpu.pipeline_mode<synchronous>, transform_indices = @transform_10, window_bounds = array<i64: 1, 256>}, {transform_indices = @transform_11, window_bounds = array<i64: 1, 2, 128, 128>}, {transform_indices = @transform_12, window_bounds = array<i64: 1, 2, 128, 128>}, {transform_indices = @transform_13, window_bounds = array<i64: 1, 2, 128, 128>}]} {
    %c0 = arith.constant 0 : index
    %c0_0 = arith.constant 0 : index
    %c0_1 = arith.constant 0 : index
    %0 = vector.load %arg2[%c0, %c0_0, %c0_1] : memref<1x128x256xf32, #tpu.memory_space<vmem>>, vector<1x128x256xf32>
    %1 = vector.shape_cast %0 : vector<1x128x256xf32> to vector<128x256xf32>
    %c0_2 = arith.constant 0 : index
    %c0_3 = arith.constant 0 : index
    %2 = vector.load %arg5[%c0_2, %c0_3] : memref<1x256xf32, #tpu.memory_space<vmem>>, vector<1x256xf32>
    %c0_4 = arith.constant 0 : index
    %c0_5 = arith.constant 0 : index
    %3 = vector.load %arg6[%c0_4, %c0_5] : memref<1x256xf32, #tpu.memory_space<vmem>>, vector<1x256xf32>
    %cst = arith.constant dense<0.000000e+00> : vector<128xf32>
    %4 = vector.multi_reduction <add>, %1, %cst [1] : vector<128x256xf32> to vector<128xf32>
    %5 = vector.shape_cast %4 : vector<128xf32> to vector<128x1xf32>
    %cst_6 = arith.constant 2.560000e+02 : f32
    %6 = vector.broadcast %cst_6 : f32 to vector<128x1xf32>
    %7 = arith.divf %5, %6 : vector<128x1xf32>
    %8 = vector.broadcast %7 : vector<128x1xf32> to vector<128x256xf32>
    %9 = arith.subf %1, %8 : vector<128x256xf32>
    %10 = arith.mulf %9, %9 : vector<128x256xf32>
    %cst_7 = arith.constant dense<0.000000e+00> : vector<128xf32>
    %11 = vector.multi_reduction <add>, %10, %cst_7 [1] : vector<128x256xf32> to vector<128xf32>
    %12 = vector.shape_cast %11 : vector<128xf32> to vector<128x1xf32>
    %cst_8 = arith.constant 2.560000e+02 : f32
    %13 = vector.broadcast %cst_8 : f32 to vector<128x1xf32>
    %14 = arith.divf %12, %13 : vector<128x1xf32>
    %15 = vector.broadcast %7 : vector<128x1xf32> to vector<128x256xf32>
    %16 = arith.subf %1, %15 : vector<128x256xf32>
    %cst_9 = arith.constant 9.99999996E-13 : f32
    %17 = vector.broadcast %cst_9 : f32 to vector<128x1xf32>
    %18 = arith.addf %14, %17 : vector<128x1xf32>
    %19 = math.rsqrt %18 : vector<128x1xf32>
    %20 = vector.broadcast %19 : vector<128x1xf32> to vector<128x256xf32>
    %21 = arith.mulf %16, %20 : vector<128x256xf32>
    %22 = vector.broadcast %2 : vector<1x256xf32> to vector<128x256xf32>
    %23 = arith.mulf %21, %22 : vector<128x256xf32>
    %24 = vector.broadcast %3 : vector<1x256xf32> to vector<128x256xf32>
    %25 = arith.addf %23, %24 : vector<128x256xf32>
    %26 = arith.truncf %25 : vector<128x256xf32> to vector<128x256xbf16>
    %c0_10 = arith.constant 0 : index
    %c0_11 = arith.constant 0 : index
    %27 = vector.load %arg7[%c0_10, %c0_11] : memref<256x256xbf16, #tpu.memory_space<vmem>>, vector<256x256xbf16>
    %cst_12 = arith.constant dense<0.000000e+00> : vector<128x256xf32>
    %28 = tpu.matmul %26, %27, %cst_12 {dimension_numbers = #tpu.dot_dimension_numbers<[1], [0], [0], [1], [0, 0, 1, 1], [], []>} : vector<128x256xbf16>, vector<256x256xbf16>, vector<128x256xf32> -> vector<128x256xf32>
    %c0_13 = arith.constant 0 : index
    %c0_14 = arith.constant 0 : index
    %29 = vector.load %arg8[%c0_13, %c0_14] : memref<1x256xf32, #tpu.memory_space<vmem>>, vector<1x256xf32>
    %30 = vector.broadcast %29 : vector<1x256xf32> to vector<128x256xf32>
    %31 = arith.addf %28, %30 : vector<128x256xf32>
    %c0_15 = arith.constant 0 : index
    %c0_16 = arith.constant 0 : index
    %32 = vector.load %arg9[%c0_15, %c0_16] : memref<256x256xbf16, #tpu.memory_space<vmem>>, vector<256x256xbf16>
    %cst_17 = arith.constant dense<0.000000e+00> : vector<128x256xf32>
    %33 = tpu.matmul %26, %32, %cst_17 {dimension_numbers = #tpu.dot_dimension_numbers<[1], [0], [0], [1], [0, 0, 1, 1], [], []>} : vector<128x256xbf16>, vector<256x256xbf16>, vector<128x256xf32> -> vector<128x256xf32>
    %c0_18 = arith.constant 0 : index
    %c0_19 = arith.constant 0 : index
    %34 = vector.load %arg10[%c0_18, %c0_19] : memref<1x256xf32, #tpu.memory_space<vmem>>, vector<1x256xf32>
    %35 = vector.broadcast %34 : vector<1x256xf32> to vector<128x256xf32>
    %36 = arith.addf %33, %35 : vector<128x256xf32>
    %c0_20 = arith.constant 0 : index
    %c0_21 = arith.constant 0 : index
    %37 = vector.load %arg11[%c0_20, %c0_21] : memref<256x256xbf16, #tpu.memory_space<vmem>>, vector<256x256xbf16>
    %cst_22 = arith.constant dense<0.000000e+00> : vector<128x256xf32>
    %38 = tpu.matmul %26, %37, %cst_22 {dimension_numbers = #tpu.dot_dimension_numbers<[1], [0], [0], [1], [0, 0, 1, 1], [], []>} : vector<128x256xbf16>, vector<256x256xbf16>, vector<128x256xf32> -> vector<128x256xf32>
    %c0_23 = arith.constant 0 : index
    %c0_24 = arith.constant 0 : index
    %39 = vector.load %arg12[%c0_23, %c0_24] : memref<1x256xf32, #tpu.memory_space<vmem>>, vector<1x256xf32>
    %40 = vector.broadcast %39 : vector<1x256xf32> to vector<128x256xf32>
    %41 = arith.addf %38, %40 : vector<128x256xf32>
    %c0_25 = arith.constant 0 : index
    %c0_26 = arith.constant 0 : index
    %42 = vector.load %arg3[%c0_25, %c0_26] : memref<128x128xf32, #tpu.memory_space<vmem>>, vector<128x128xf32>
    %c0_27 = arith.constant 0 : index
    %c0_28 = arith.constant 0 : index
    %43 = vector.load %arg4[%c0_27, %c0_28] : memref<128x128xf32, #tpu.memory_space<vmem>>, vector<128x128xf32>
    %44 = vector.extract_strided_slice %31 {offsets = [0, 0], sizes = [128, 128], strides = [1, 1]} : vector<128x256xf32> to vector<128x128xf32>
    %45 = vector.extract_strided_slice %36 {offsets = [0, 0], sizes = [128, 128], strides = [1, 1]} : vector<128x256xf32> to vector<128x128xf32>
    %46 = arith.mulf %44, %42 : vector<128x128xf32>
    %c64_i32 = arith.constant 64 : i32
    %47 = tpu.dynamic_rotate %44 by %c64_i32 dim 1 : vector<128x128xf32>, i32 -> vector<128x128xf32>
    %48 = arith.mulf %47, %43 : vector<128x128xf32>
    %49 = arith.addf %46, %48 : vector<128x128xf32>
    %50 = arith.truncf %49 : vector<128x128xf32> to vector<128x128xbf16>
    %c0_29 = arith.constant 0 : index
    %c0_30 = arith.constant 0 : index
    %c0_31 = arith.constant 0 : index
    %c0_32 = arith.constant 0 : index
    %51 = vector.load %arg13[%c0_29, %c0_30, %c0_31, %c0_32] : memref<1x2x128x128xbf16, #tpu.memory_space<vmem>>, vector<1x1x128x128xbf16>
    %52 = vector.shape_cast %51 : vector<1x1x128x128xbf16> to vector<128x128xbf16>
    %53 = vector.shape_cast %50 : vector<128x128xbf16> to vector<1x1x128x128xbf16>
    tpu.vector_store %arg13[%c0_29, %c0_30, %c0_31, %c0_32], %53 {strides = array<i32>} : memref<1x2x128x128xbf16, #tpu.memory_space<vmem>>, vector<1x1x128x128xbf16>,
    %54 = arith.mulf %45, %42 : vector<128x128xf32>
    %c64_i32_33 = arith.constant 64 : i32
    %55 = tpu.dynamic_rotate %45 by %c64_i32_33 dim 1 : vector<128x128xf32>, i32 -> vector<128x128xf32>
    %56 = arith.mulf %55, %43 : vector<128x128xf32>
    %57 = arith.addf %54, %56 : vector<128x128xf32>
    %58 = arith.truncf %57 : vector<128x128xf32> to vector<128x128xbf16>
    %c0_34 = arith.constant 0 : index
    %c0_35 = arith.constant 0 : index
    %c0_36 = arith.constant 0 : index
    %c0_37 = arith.constant 0 : index
    %59 = vector.load %arg14[%c0_34, %c0_35, %c0_36, %c0_37] : memref<1x2x128x128xbf16, #tpu.memory_space<vmem>>, vector<1x1x128x128xbf16>
    %60 = vector.shape_cast %59 : vector<1x1x128x128xbf16> to vector<128x128xbf16>
    %61 = vector.shape_cast %58 : vector<128x128xbf16> to vector<1x1x128x128xbf16>
    tpu.vector_store %arg14[%c0_34, %c0_35, %c0_36, %c0_37], %61 {strides = array<i32>} : memref<1x2x128x128xbf16, #tpu.memory_space<vmem>>, vector<1x1x128x128xbf16>,
    %62 = vector.extract_strided_slice %41 {offsets = [0, 0], sizes = [128, 128], strides = [1, 1]} : vector<128x256xf32> to vector<128x128xf32>
    %63 = arith.truncf %62 : vector<128x128xf32> to vector<128x128xbf16>
    %c0_38 = arith.constant 0 : index
    %c0_39 = arith.constant 0 : index
    %c0_40 = arith.constant 0 : index
    %c0_41 = arith.constant 0 : index
    %64 = vector.load %arg15[%c0_38, %c0_39, %c0_40, %c0_41] : memref<1x2x128x128xbf16, #tpu.memory_space<vmem>>, vector<1x1x128x128xbf16>
    %65 = vector.shape_cast %64 : vector<1x1x128x128xbf16> to vector<128x128xbf16>
    %66 = vector.shape_cast %63 : vector<128x128xbf16> to vector<1x1x128x128xbf16>
    tpu.vector_store %arg15[%c0_38, %c0_39, %c0_40, %c0_41], %66 {strides = array<i32>} : memref<1x2x128x128xbf16, #tpu.memory_space<vmem>>, vector<1x1x128x128xbf16>,
    %67 = vector.extract_strided_slice %31 {offsets = [0, 128], sizes = [128, 128], strides = [1, 1]} : vector<128x256xf32> to vector<128x128xf32>
    %68 = vector.extract_strided_slice %36 {offsets = [0, 128], sizes = [128, 128], strides = [1, 1]} : vector<128x256xf32> to vector<128x128xf32>
    %69 = arith.mulf %67, %42 : vector<128x128xf32>
    %c64_i32_42 = arith.constant 64 : i32
    %70 = tpu.dynamic_rotate %67 by %c64_i32_42 dim 1 : vector<128x128xf32>, i32 -> vector<128x128xf32>
    %71 = arith.mulf %70, %43 : vector<128x128xf32>
    %72 = arith.addf %69, %71 : vector<128x128xf32>
    %73 = arith.truncf %72 : vector<128x128xf32> to vector<128x128xbf16>
    %c0_43 = arith.constant 0 : index
    %c1 = arith.constant 1 : index
    %c0_44 = arith.constant 0 : index
    %c0_45 = arith.constant 0 : index
    %74 = vector.load %arg13[%c0_43, %c1, %c0_44, %c0_45] : memref<1x2x128x128xbf16, #tpu.memory_space<vmem>>, vector<1x1x128x128xbf16>
    %75 = vector.shape_cast %74 : vector<1x1x128x128xbf16> to vector<128x128xbf16>
    %76 = vector.shape_cast %73 : vector<128x128xbf16> to vector<1x1x128x128xbf16>
    tpu.vector_store %arg13[%c0_43, %c1, %c0_44, %c0_45], %76 {strides = array<i32>} : memref<1x2x128x128xbf16, #tpu.memory_space<vmem>>, vector<1x1x128x128xbf16>,
    %77 = arith.mulf %68, %42 : vector<128x128xf32>
    %c64_i32_46 = arith.constant 64 : i32
    %78 = tpu.dynamic_rotate %68 by %c64_i32_46 dim 1 : vector<128x128xf32>, i32 -> vector<128x128xf32>
    %79 = arith.mulf %78, %43 : vector<128x128xf32>
    %80 = arith.addf %77, %79 : vector<128x128xf32>
    %81 = arith.truncf %80 : vector<128x128xf32> to vector<128x128xbf16>
    %c0_47 = arith.constant 0 : index
    %c1_48 = arith.constant 1 : index
    %c0_49 = arith.constant 0 : index
    %c0_50 = arith.constant 0 : index
    %82 = vector.load %arg14[%c0_47, %c1_48, %c0_49, %c0_50] : memref<1x2x128x128xbf16, #tpu.memory_space<vmem>>, vector<1x1x128x128xbf16>
    %83 = vector.shape_cast %82 : vector<1x1x128x128xbf16> to vector<128x128xbf16>
    %84 = vector.shape_cast %81 : vector<128x128xbf16> to vector<1x1x128x128xbf16>
    tpu.vector_store %arg14[%c0_47, %c1_48, %c0_49, %c0_50], %84 {strides = array<i32>} : memref<1x2x128x128xbf16, #tpu.memory_space<vmem>>, vector<1x1x128x128xbf16>,
    %85 = vector.extract_strided_slice %41 {offsets = [0, 128], sizes = [128, 128], strides = [1, 1]} : vector<128x256xf32> to vector<128x128xf32>
    %86 = arith.truncf %85 : vector<128x128xf32> to vector<128x128xbf16>
    %c0_51 = arith.constant 0 : index
    %c1_52 = arith.constant 1 : index
    %c0_53 = arith.constant 0 : index
    %c0_54 = arith.constant 0 : index
    %87 = vector.load %arg15[%c0_51, %c1_52, %c0_53, %c0_54] : memref<1x2x128x128xbf16, #tpu.memory_space<vmem>>, vector<1x1x128x128xbf16>
    %88 = vector.shape_cast %87 : vector<1x1x128x128xbf16> to vector<128x128xbf16>
    %89 = vector.shape_cast %86 : vector<128x128xbf16> to vector<1x1x128x128xbf16>
    tpu.vector_store %arg15[%c0_51, %c1_52, %c0_53, %c0_54], %89 {strides = array<i32>} : memref<1x2x128x128xbf16, #tpu.memory_space<vmem>>, vector<1x1x128x128xbf16>,
    return
  }
  func.func @transform_0(%arg0: i32, %arg1: i32) -> (i32, i32, i32) {
    %c0_i32 = arith.constant 0 : i32
    %c0_i32_0 = arith.constant 0 : i32
    return %arg1, %arg0, %c0_i32 : i32, i32, i32
  }
  func.func @transform_1(%arg0: i32, %arg1: i32) -> (i32, i32) {
    %c0_i32 = arith.constant 0 : i32
    %c0_i32_0 = arith.constant 0 : i32
    return %arg0, %c0_i32 : i32, i32
  }
  func.func @transform_2(%arg0: i32, %arg1: i32) -> (i32, i32) {
    %c0_i32 = arith.constant 0 : i32
    %c0_i32_0 = arith.constant 0 : i32
    return %arg0, %c0_i32 : i32, i32
  }
  func.func @transform_3(%arg0: i32, %arg1: i32) -> (i32, i32) {
    %c0_i32 = arith.constant 0 : i32
    %c0_i32_0 = arith.constant 0 : i32
    %c0_i32_1 = arith.constant 0 : i32
    return %c0_i32, %c0_i32_0 : i32, i32
  }
  func.func @transform_4(%arg0: i32, %arg1: i32) -> (i32, i32) {
    %c0_i32 = arith.constant 0 : i32
    %c0_i32_0 = arith.constant 0 : i32
    %c0_i32_1 = arith.constant 0 : i32
    return %c0_i32, %c0_i32_0 : i32, i32
  }
  func.func @transform_5(%arg0: i32, %arg1: i32) -> (i32, i32) {
    %c0_i32 = arith.constant 0 : i32
    %c0_i32_0 = arith.constant 0 : i32
    %c0_i32_1 = arith.constant 0 : i32
    return %c0_i32, %c0_i32_0 : i32, i32
  }
  func.func @transform_6(%arg0: i32, %arg1: i32) -> (i32, i32) {
    %c0_i32 = arith.constant 0 : i32
    %c0_i32_0 = arith.constant 0 : i32
    %c0_i32_1 = arith.constant 0 : i32
    return %c0_i32, %c0_i32_0 : i32, i32
  }
  func.func @transform_7(%arg0: i32, %arg1: i32) -> (i32, i32) {
    %c0_i32 = arith.constant 0 : i32
    %c0_i32_0 = arith.constant 0 : i32
    %c0_i32_1 = arith.constant 0 : i32
    return %c0_i32, %c0_i32_0 : i32, i32
  }
  func.func @transform_8(%arg0: i32, %arg1: i32) -> (i32, i32) {
    %c0_i32 = arith.constant 0 : i32
    %c0_i32_0 = arith.constant 0 : i32
    %c0_i32_1 = arith.constant 0 : i32
    return %c0_i32, %c0_i32_0 : i32, i32
  }
  func.func @transform_9(%arg0: i32, %arg1: i32) -> (i32, i32) {
    %c0_i32 = arith.constant 0 : i32
    %c0_i32_0 = arith.constant 0 : i32
    %c0_i32_1 = arith.constant 0 : i32
    return %c0_i32, %c0_i32_0 : i32, i32
  }
  func.func @transform_10(%arg0: i32, %arg1: i32) -> (i32, i32) {
    %c0_i32 = arith.constant 0 : i32
    %c0_i32_0 = arith.constant 0 : i32
    %c0_i32_1 = arith.constant 0 : i32
    return %c0_i32, %c0_i32_0 : i32, i32
  }
  func.func @transform_11(%arg0: i32, %arg1: i32) -> (i32, i32, i32, i32) {
    %c0_i32 = arith.constant 0 : i32
    %c0_i32_0 = arith.constant 0 : i32
    %c0_i32_1 = arith.constant 0 : i32
    return %arg1, %c0_i32, %arg0, %c0_i32_0 : i32, i32, i32, i32
  }
  func.func @transform_12(%arg0: i32, %arg1: i32) -> (i32, i32, i32, i32) {
    %c0_i32 = arith.constant 0 : i32
    %c0_i32_0 = arith.constant 0 : i32
    %c0_i32_1 = arith.constant 0 : i32
    return %arg1, %c0_i32, %arg0, %c0_i32_0 : i32, i32, i32, i32
  }
  func.func @transform_13(%arg0: i32, %arg1: i32) -> (i32, i32, i32, i32) {
    %c0_i32 = arith.constant 0 : i32
    %c0_i32_0 = arith.constant 0 : i32
    %c0_i32_1 = arith.constant 0 : i32
    return %arg1, %c0_i32, %arg0, %c0_i32_0 : i32, i32, i32, i32
  }
}

</mosaic_0001>

<bundles_post_ra>
// kernel: tpu_custom_call.1
= control target key start
LH: loop header
LB: loop body
LE: loop exit
PB: predicated region body
PF: predicated region fallthrough
CT: control target
= control target key end

     0   :  { %s6560_s0 = inlined_call_operand.hbm [shape: f32[2,256,256], index: 0, kind: input, shape index: {}]   ;;  %s6561_s1 = inlined_call_operand.hbm [shape: f32[256,128], index: 1, kind: input, shape index: {}]   ;;  %s6562_s2 = inlined_call_operand.hbm [shape: f32[256,128], index: 2, kind: input, shape index: {}]   ;;  %s6563_s3 = inlined_call_operand.vmem [shape: f32[1,256], index: 3, kind: input, shape index: {}]   ;;  %s6564_s4 = inlined_call_operand.hbm [shape: f32[1,256], index: 4, kind: input, shape index: {}]   ;;  %s6565_s5 = inlined_call_operand.hbm [shape: bf16[256,256], index: 5, kind: input, shape index: {}]   ;;  %s6566_s6 = inlined_call_operand.vmem [shape: f32[1,256], index: 6, kind: input, shape index: {}]   ;;  %s6567_s7 = inlined_call_operand.hbm [shape: bf16[256,256], index: 7, kind: input, shape index: {}]   ;;  %s6568_s8 = inlined_call_operand.vmem [shape: f32[1,256], index: 8, kind: input, shape index: {}]   ;;  %s6569_s9 = inlined_call_operand.hbm [shape: bf16[256,256], index: 9, kind: input, shape index: {}]   ;;  %s6570_s10 = inlined_call_operand.vmem [shape: f32[1,256], index: 10, kind: input, shape index: {}]   ;;  %s6571_s11 = inlined_call_operand.hbm [shape: bf16[2,2,256,128], index: 11, kind: output, shape index: {0}]   ;;  %s6572_s12 = inlined_call_operand.hbm [shape: bf16[2,2,256,128], index: 12, kind: output, shape index: {1}]   ;;  %s6573_s13 = inlined_call_operand.hbm [shape: bf16[2,2,256,128], index: 13, kind: output, shape index: {2}]  }
   0x1   :  { %6616 = sst [smem:[#allocation56_spill]] %s6561_s1 }
   0x2   :  { %6617 = sst [smem:[#allocation57_spill]] %s6562_s2 }
   0x3   :  { %6618 = sst [smem:[#allocation58_spill]] %s6563_s3 }
   0x4   :  { %6619 = sst [smem:[#allocation59_spill]] %s6564_s4 }
   0x5   :  { %6620 = sst [smem:[#allocation60_spill]] %s6565_s5 }
   0x6   :  { %6621 = sst [smem:[#allocation61_spill]] %s6566_s6 }
   0x7   :  { %6622 = sst [smem:[#allocation62_spill]] %s6567_s7 }
   0x8   :  { %6623 = sst [smem:[#allocation63_spill]] %s6568_s8 }
   0x9   :  { %6624 = sst [smem:[#allocation64_spill]] %s6569_s9 }
   0xa   :  { %6625 = sst [smem:[#allocation65_spill]] %s6570_s10 }
   0xb   :  { %6626 = sst [smem:[#allocation66_spill]] %s6571_s11 }
   0xc   :  { %6627 = sst [smem:[#allocation67_spill]] %s6572_s12 }
   0xd   :  { %6628 = sst [smem:[#allocation68_spill]] %s6573_s13 }
   0xe   :  { %19 = vsyncpa [#allocation3], 0 }
   0xf   :  { %21 = vsyncpa [#allocation3 + $0x1], 0 }
  0x10   :  { %22 = vsyncpa [#allocation6], 0 }
  0x11   :  { %24 = vsyncpa [#allocation6 + $0x1], 0 }
  0x12   :  { %25 = vsyncpa [#allocation9], 0 }
  0x13   :  { %26 = vsyncpa [#allocation12], 0 }
  0x14   :  { %27 = vsyncpa [#allocation4], 0 }
  0x15   :  { %29 = vsyncpa [#allocation4 + $0x1], 0 }
  0x16   :  { %30 = vsyncpa [#allocation16], 0 }
  0x17   :  { %32 = vsyncpa [#allocation16 + $0x1], 0  ;;  %s4825_s25 = smov 0   ;;  %s4827_s26 = smov 0  }
  0x18   :  { %s4829_s27 = smov 0   ;;  %s4831_s28 = smov 0  }
  0x19   :  { %s4833_s29 = smov 0   ;;  %s4835_s30 = smov 0  }
  0x1a   :  { %s4837_s14 = smov 0   ;;  %s4839_s15 = smov 0  }
  0x1b   :  { %s4841_s16 = smov 0   ;;  %s4843_s17 = smov 0  }
  0x1c   :  { %s4845_s18 = smov 0  }
  0x1d LB: > { %6629 = sst [smem:[#allocation30_spill]] %s4686_s26  ;;  %s4881_s19 = sadd.s32 4294967295, %s4722_s18   ;;  %s4722_s18 = sphi %s4845_s18, %s38_s18   ;;  %s4718_s17 = sphi %s4843_s17, %s6721_s17   ;;  %s4714_s16 = sphi %s4841_s16, %s6720_s16   ;;  %s4710_s15 = sphi %s4839_s15, %s6719_s15   ;;  %s4706_s14 = sphi %s4837_s14, %s6718_s14   ;;  %s4702_s30 = sphi %s4835_s30, %s6711_s30   ;;  %s4698_s29 = sphi %s4833_s29, %s6717_s29   ;;  %s4694_s28 = sphi %s4831_s28, %s6716_s28   ;;  %s4690_s27 = sphi %s4829_s27, %s6715_s27   ;;  %s4686_s26 = sphi %s4827_s26, %s6714_s26   ;;  %s4682_s25 = sphi %s4825_s25, %s6709_s25  }
  0x1e   : > { %6630 = sst [smem:[#allocation31_spill]] %s4694_s28  ;;  %p3290_p0 = scmp.ge.s32.totalorder %s4722_s18, 1 }
  0x1f   : > { %6631 = sst [smem:[#allocation32_spill]] %s4702_s30  ;;  %p6581_p1 = scmp.eq.s32.totalorder %s4881_s19, 0 }
  0x20   : > { %6632 = sst [smem:[#allocation33_spill]] %s4706_s14  ;;  %p318_p2 = scmp.eq.s32.totalorder %s4881_s19, 3 }
  0x21   : > { %6633 = sst [smem:[#allocation34_spill]] %s4710_s15  ;;  %p387_p3 = scmp.lt.s32.totalorder %s4722_s18, 5 }
  0x22   : > { %6634 = sst [smem:[#allocation35_spill]] %s4881_s19  ;;  %s4724_s24 = smov [#allocation8]  }
  0x23   : > { %s6635_s4 = sld [smem:[#allocation59_spill]]  ;;  %p4890_p4 = pnand %p3290_p0, %p387_p3 }
  0x24   : > { %s404_s13 = sshll.u32 %s4724_s24, 4  ;;  %s6638_s7 = sld [smem:[#allocation62_spill]]  ;;  %s405_s13 = int_to_ptr.vmem [resolvable:$true] %s404_s13 }
  0x25   : > { %p4194_p5 = pneg %p4890_p4  ;;  %s4725_s12 = smov [#allocation11]  }
  0x26   : > { %s432_s11 = sshll.u32 %s4725_s12, 4  ;;  %s6574_s14 = smov 128   ;;  %s433_s11 = int_to_ptr.vmem [resolvable:$true] %s432_s11 }
  0x27   : > { %p4898_p6 = pnand %p4194_p5, %p6581_p1  ;;  %s6576_s15 = smov 8  }
  0x28   : > { %p67_p7 = scmp.eq.s32.totalorder %s4722_s18, 0  ;;  %p92_p8 = scmp.ne.s32.totalorder %s4690_s27, %s4686_s26 }
  0x29   : > { %s402_s22 = sshll.u32 %s6635_s4, 4  ;;  %p98_p9 = scmp.ne.s32.totalorder %s4686_s26, %s4682_s25  ;;  %s403_s22 = int_to_ptr.hbm [resolvable:$true] %s402_s22 }
  0x2a   : > { %s430_s24 = sshll.u32 %s6638_s7, 4  ;;  %p6582_p10 = scmp.lt.s32.totalorder %s4722_s18, 4  ;;  %s431_s24 = int_to_ptr.hbm [resolvable:$true] %s430_s24 }
  0x2b   : > { %4197 = dma.hbm_to_vmem [thread:$0]  (!%p4898_p6), %s403_s22, 32, %s405_s13, [#allocation9]  }
  0x2c   : > { %4203 = dma.hbm_to_vmem [thread:$0]  (!%p4898_p6), %s431_s24, 4096, %s433_s11, [#allocation12], %s6574_s14, %s6574_s14, %s6576_s15  }
  0x2d   : > { %s491_s7 = sand.u32 1, %s4722_s18   ;;  %p94_p11 = por %p92_p8, %p67_p7 }
  0x2e   : > { %p4925_p12 = por %p98_p9, %p6581_p1  ;;  %s493_s13 = sand.u32 1, %s4690_s27  }
  0x2f   : > { %s3301_s22 = sshll.u32 %s493_s13, 7  ;;  %s3765_s10 = sshll.u32 %s4718_s17, 7 }
  0x30   : > { %s6639_s12 = scalar_select %p4925_p12, 1, 0 }
  0x31   : > { %s6641_s1 = sld [smem:[#allocation56_spill]]  ;;  %s495_s4 = scalar_lea.vmem [#allocation5], %s3301_s22 }
  0x32   : > { %6640 = sst [smem:[#allocation36_spill]] %s6639_s12  ;;  %s503_s14 = sshll.u32 %s495_s4, 4  ;;  %s504_s14 = int_to_ptr.vmem [resolvable:$true] %s503_s14 }
  0x33   : > { %p4936_p13 = pnand %p6582_p10, %p94_p11  ;;  %s6643_s2 = sld [smem:[#allocation57_spill]] }
  0x34   : > { %s517_s3 = scalar_lea.vmem [#allocation7], %s3301_s22  ;;  %s4945_s4 = scalar_lea.sflag [#allocation6], %s491_s7 }
  0x35   : > { %s4943_s12 = sshll.u32 %s517_s3, 4  ;;  %s6645_s11 = smov 8  }
  0x36   : > { %6644 = sst [smem:[#allocation37_spill]] %s4943_s12  ;;  %s4728_s7 = smov [#allocation10]  }
  0x37   : > { %s500_s24 = scalar_lea.hbm %s6641_s1, %s3765_s10  ;;  %s6647_s5 = sld [smem:[#allocation60_spill]] }
  0x38   : > { %s501_s21 = sshll.u32 %s500_s24, 4  ;;  %s6646_s24 = smov 128   ;;  %s502_s21 = int_to_ptr.hbm [resolvable:$true] %s501_s21 }
  0x39   : > { %s522_s13 = scalar_lea.hbm %s6643_s2, %s3765_s10  ;;  %s415_s15 = sshll.u32 %s4728_s7, 4  ;;  %s416_s15 = int_to_ptr.vmem [resolvable:$true] %s415_s15 }
  0x3a   : > { %s523_s8 = sshll.u32 %s522_s13, 4  ;;  %s6648_s9 = sld [smem:[#allocation64_spill]]  ;;  %s4953_s8 = int_to_ptr.hbm [resolvable:$true] %s523_s8 }
  0x3b   : > { %4213 = dma.hbm_to_vmem [thread:$0]  (!%p4936_p13), %s502_s21, 2048, %s504_s14, %s4945_s4, %s6646_s24, %s6646_s24, %s6645_s11  }
  0x3c   : > { %s4729_s13 = smov [#allocation13]   ;;  %s6584_s10 = sadd.s32 4294967294, %s4722_s18  }
  0x3d   : > { %s413_s3 = sshll.u32 %s6647_s5, 4  ;;  %s449_s6 = sshll.u32 %s4729_s13, 4  ;;  %s414_s3 = int_to_ptr.hbm [resolvable:$true] %s413_s3  ;;  %s450_s6 = int_to_ptr.vmem [resolvable:$true] %s449_s6 }
  0x3e   : > { %4200 = dma.hbm_to_vmem [thread:$0]  (!%p4898_p6), %s414_s3, 4096, %s416_s15, [#allocation9], %s6646_s24, %s6646_s24, %s6645_s11  }
  0x3f   : > { %s47_s7 = sadd.s32 1, %s4714_s16  ;;  %s59_s14 = sadd.s32 1, %s4702_s30 }
  0x40   : > { %s447_s22 = sshll.u32 %s6648_s9, 4  ;;  %p48_p0 = scmp.ge.s32.totalorder %s47_s7, 2  ;;  %s448_s22 = int_to_ptr.hbm [resolvable:$true] %s447_s22 }
  0x41   : > { %4206 = dma.hbm_to_vmem [thread:$0]  (!%p4898_p6), %s448_s22, 4096, %s450_s6, [#allocation12], %s6646_s24, %s6646_s24, %s6645_s11  }
  0x42   : > { %p66_p3 = scmp.ne.s32.totalorder %s4702_s30, %s4698_s29  ;;  %p72_p5 = scmp.ne.s32.totalorder %s4698_s29, %s4694_s28 }
  0x43   : > { %s6723_s7 = smov (%p48_p0, %s47_s7), 0  ;;  %s6650_s3 = sadd.s32 1, %s4718_s17 }
  0x44   : > { %6649 = sst [smem:[#allocation38_spill]] %s6723_s7  ;;  %s6725_s3 = smov (!%p48_p0, %s6650_s3), %s4718_s17 }
  0x45   : > { %s54_s20 = ssub.s32 %s4714_s16, %s6723_s7  ;;  %p4988_p6 = por %p67_p7, %p66_p3 }
  0x46   : > { %p52_p8 = scmp.ge.s32.totalorder %s6725_s3, 2  ;;  %p4994_p9 = por %p6581_p1, %p72_p5 }
  0x47   : > { %p5000_p11 = por %p318_p2, %p66_p3  ;;  %p324_p0 = scmp.eq.s32.totalorder %s6584_s10, 3 }
  0x48   : > { %s6727_s3 = smov (%p52_p8, %s6725_s3), 0  ;;  %s466_s6 = sand.u32 1, %s4702_s30  }
  0x49   : > { %s6653_s22 = scalar_select %p5000_p11, 1, 0 }
  0x4a   : > { %6655 = sst [smem:[#allocation40_spill]] %s6727_s3  ;;  %p5008_p7 = por %p324_p0, %p72_p5 }
  0x4b   : > { %6654 = sst [smem:[#allocation39_spill]] %s6653_s22  ;;  %s55_s12 = ssub.s32 %s4718_s17, %s6727_s3 }
  0x4c   : > { %s6656_s13 = scalar_select %p5008_p7, 1, 0 }
  0x4d   : > { %s56_s1 = sor.u32 %s55_s12, %s54_s20  ;;  %p83_p1 = scmp.eq.s32.totalorder %s55_s12, 0 }
  0x4e   : > { %6657 = sst [smem:[#allocation41_spill]] %s6656_s13  ;;  %p57_p10 = scmp.eq.s32.totalorder %s56_s1, 0 }
  0x4f   : > { %s3296_s2 = sshll.u32 %s466_s6, 8  ;;  %s6658_s5 = sadd.s32 1, %s4690_s27 }
  0x50   : > { %s5018_s9 = scalar_select %p83_p1, %s4690_s27, %s6658_s5  }
  0x51   : > { %s5021_s7 = scalar_select %p57_p10, %s4702_s30, %s59_s14  }
  0x52   : > { %s6660_s10 = sld [smem:[#allocation37_spill]]  ;;  %s3764_s28 = sshll.u32 %s4718_s17, 5 }
  0x53   : > { %6659 = sst [smem:[#allocation42_spill]] %s5021_s7  ;;  %s3299_s22 = sshll.u32 %s4714_s16, 6 }
  0x54   : > { %s470_s13 = scalar_lea.vmem [#allocation2], %s3296_s2  ;;  %s476_s19 = sadd.s32 %s3764_s28, %s3299_s22 }
  0x55   : > { %s481_s26 = sshll.u32 %s470_s13, 4  ;;  %s3300_s3 = sshll.u32 %s476_s19, 3  ;;  %s482_s26 = int_to_ptr.vmem [resolvable:$true] %s481_s26 }
  0x56   : > { %p6661_p2 = scmp.lt.s32.totalorder %s4722_s18, 4  ;;  %s478_s5 = scalar_lea.hbm %s6560_s0, %s3300_s3 }
  0x57   : > { %s479_s14 = sshll.u32 %s478_s5, 4  ;;  %s467_s20 = scalar_lea.sflag [#allocation3], %s466_s6  ;;  %s480_s14 = int_to_ptr.hbm [resolvable:$true] %s479_s14 }
  0x58   : > { %p4208_p3 = pnand %p6661_p2, %p4988_p6  ;;  %s4730_s7 = smov 256  }
  0x59   : > { %s4731_s30 = smov 16   ;;  %s6662_s2 = int_to_ptr.vmem [resolvable:$true] %s6660_s10 }
  0x5a   : > { %4210 = dma.hbm_to_vmem [thread:$0]  (!%p4208_p3), %s480_s14, 4096, %s482_s26, %s467_s20, %s4730_s7, %s4730_s7, %s4731_s30  }
  0x5b   : > { %4216 = dma.hbm_to_vmem [thread:$0]  (!%p4936_p13), %s4953_s8, 2048, %s6662_s2, %s4945_s4, %s6646_s24, %s6646_s24, %s6645_s11  }
  0x5c   : > { %537 = sbr.rel (%p4890_p4) target bundleno = 1020 (0x3fc), region = 64 }
  0x61   : > { %s5044_s28 = sand.u32 1, %s4698_s29  }
  0x62   : > { %s3308_s19 = sshll.u32 %s5044_s28, 8  ;;  %s540_s3 = scalar_lea.sflag [#allocation3], %s5044_s28 }
  0x63   : > { %s5048_s15 = scalar_lea.vmem [#allocation2], %s3308_s19 }
  0x64   : > { %4657 = dma.done.wait (%p4994_p9), %s540_s3, 4096  }
  0x65   : > { %4659 = vsyncadd (%p4994_p9), %s540_s3, 4294963200  ;;  %s6663_s26 = sld [smem:[#allocation35_spill]] }
  0x66   : > { %s6664_s30 = sld [smem:[#allocation30_spill]] }
  0x6b   : > { %s549_s25 = sand.u32 1, %s6663_s26  }
  0x6c   : > { %s551_s8 = sand.u32 1, %s6664_s30   ;;  %s550_s11 = scalar_lea.sflag [#allocation6], %s549_s25 }
  0x6d   : > { %s3309_s4 = sshll.u32 %s551_s8, 7 }
  0x6e   : > { %s5058_s24 = scalar_lea.vmem [#allocation5], %s3309_s4 }
  0x6f   : > { %4661 = dma.done.wait (%p4925_p12), %s550_s11, 4096  }
  0x70   : > { %4663 = vsyncadd (%p4925_p12), %s550_s11, 4294963200  ;;  %s5064_s10 = scalar_lea.vmem [#allocation7], %s3309_s4  ;;  %p6666_p1 = scmp.eq.s32.totalorder %s6663_s26, 0 }
  0x72   : > { %4665 = dma.done.wait (%p6666_p1), [#allocation9], 4128   ;;  %p6667_p4 = pmov %p6666_p1 }
  0x73   : > { %p6668_p10 = pmov %p6666_p1 }
  0x74   : > { %4667 = vsyncadd (%p6667_p4), [#allocation9], 4294963168 }
  0x75   : > { %4669 = dma.done.wait (%p6668_p10), [#allocation12], 8192   ;;  %p6669_p13 = pmov %p6666_p1 }
  0x76   : > { %v5075_v0 = vld [vmem:[%s5048_s15 + $0x20] sm:$0xff]  ;;  %v5078_v1 = vld [vmem:[%s5048_s15 + $0x28] sm:$0xff]  ;;  %v659_v8 = vld [vmem:[%s5048_s15 + $0x30] sm:$0xff]  ;;  %v4732_v27 = vmov 256.0   ;;  %s6670_s22 = sld [smem:[#allocation58_spill]]  ;;  %s4733_s12 = smov 64  }
  0x77   : > { %4671 = vsyncadd (%p6669_p13), [#allocation12], 4294959104  ;;  %v653_v2 = vld [vmem:[%s5048_s15] sm:$0xff]  ;;  %v693_v3 = vadd.f32 %v5078_v1, %v5075_v0  ;;  %v654_v4 = vld [vmem:[%s5048_s15 + $0x8] sm:$0xff]  ;;  %4356 = vrcp.f32 %v4732_v27  ;;  %s6671_s1 = sld [smem:[#allocation61_spill]]  ;;  %s5823_s5 = sshll.u32 %s5044_s28, 7 }
  0x78   : > { %v687_v5 = vadd.f32 %v654_v4, %v653_v2  ;;  %v661_v6 = vld [vmem:[%s5048_s15 + $0x40] sm:$0xff]  ;;  %v662_v7 = vld [vmem:[%s5048_s15 + $0x48] sm:$0xff]  ;;  %v660_v9 = vld [vmem:[%s5048_s15 + $0x38] sm:$0xff]  ;;  %s5835_s14 = scalar_lea.vmem [#allocation14], %s5823_s5  ;;  %s6675_s19 = sld [smem:[#allocation63_spill]] }
  0x79   : > { %694 = vadd.xlane.f32.xlu1 %v693_v3  ;;  %v699_v10 = vadd.f32 %v662_v7, %v661_v6  ;;  %v655_v11 = vld [vmem:[%s5048_s15 + $0x10] sm:$0xff]  ;;  %v656_v12 = vld [vmem:[%s5048_s15 + $0x18] sm:$0xff]  ;;  %v696_v13 = vadd.f32 %v660_v9, %v659_v8  ;;  %v5105_v20 = vld [vmem:[%s5048_s15 + $0x60] sm:$0xff]  ;;  %s6285_s3 = scalar_lea.vmem [#allocation15], %s5823_s5  ;;  %s6686_s23 = sld [smem:[#allocation65_spill]] }
  0x7a   : > { %688 = vadd.xlane.f32.xlu0 %v687_v5  ;;  %v5091_v14 = vld [vmem:[%s5048_s15 + $0x50] sm:$0xff]  ;;  %v5094_v15 = vld [vmem:[%s5048_s15 + $0x58] sm:$0xff]  ;;  %v690_v16 = vadd.f32 %v656_v12, %v655_v11  ;;  %v5108_v21 = vld [vmem:[%s5048_s15 + $0x68] sm:$0xff]  ;;  %s6314_s8 = scalar_lea.vmem [#allocation17], %s5823_s5  ;;  %s2914_s4 = scalar_lea.sflag [#allocation4], %s5044_s28 }
  0x7b   : > { %700 = vadd.xlane.f32.xlu2 %v699_v10  ;;  %v702_v17 = vadd.f32 %v5094_v15, %v5091_v14  ;;  %v5099_v18 = vld [vmem:[%s5048_s15 + $0x70] sm:$0xff]  ;;  %v5102_v19 = vld [vmem:[%s5048_s15 + $0x78] sm:$0xff]  ;;  %v705_v23 = vadd.f32 %v5108_v21, %v5105_v20  ;;  %v5115_v24 = vld [vmem:[%s5048_s15 + $0x80] sm:$0xff]  ;;  %s6456_s11 = scalar_lea.sflag [#allocation16], %s549_s25 }
  0x7c   : > { %v708_v22 = vadd.f32 %v5102_v19, %v5099_v18  ;;  %v5118_v25 = vld [vmem:[%s5048_s15 + $0x88] sm:$0xff]  ;;  %v5136_v47 = vld [vmem:[%s5048_s15 + $0x90] sm:$0xff]  ;;  %v5139_v48 = vld [vmem:[%s5048_s15 + $0x98] sm:$0xff] }
  0x7d   : > { %v711_v26 = vadd.f32 %v5118_v25, %v5115_v24  ;;  %v4357_v28 = vpop.eup %4356  ;;  %v714_v55 = vadd.f32 %v5139_v48, %v5136_v47  ;;  %v5206_v27 = vld [vmem:[%s5048_s15 + $0xb0] sm:$0xff] }
  0x7e   : > { %v736_v29 = vmul.f32 256.0, %v4357_v28  ;;  %vm740_vm0 = vweird.f32 %v4357_v28 }
  0x80   : > { %v737_v30 = vsub.f32 1.0, %v736_v29 }
  0x81   : > { %697 = vadd.xlane.f32.xlu1 %v696_v13 }
  0x82   : > { %691 = vadd.xlane.f32.xlu0 %v690_v16  ;;  %v738_v31 = vmul.f32 %v4357_v28, %v737_v30 }
  0x83   : > { %703 = vadd.xlane.f32.xlu2 %v702_v17 }
  0x84   : > { %v739_v32 = vadd.f32 %v4357_v28, %v738_v31 }
  0x86   : > { %v5122_v33 = vsel %vm740_vm0, %v4357_v28, %v739_v32  ;;  %v5209_v28 = vld [vmem:[%s5048_s15 + $0xb8] sm:$0xff] }
  0x89   : > { %709 = vadd.xlane.f32.xlu1 %v708_v22 }
  0x8a   : > { %706 = vadd.xlane.f32.xlu0 %v705_v23  ;;  %v5196_v23 = vld [vmem:[%s5048_s15 + $0xd0] sm:$0xff] }
  0x91   : > { %712 = vadd.xlane.f32.xlu1 %v711_v26  ;;  %v5199_v26 = vld [vmem:[%s5048_s15 + $0xd8] sm:$0xff] }
  0x92   : > { %v726_v29 = vadd.f32 %v5199_v26, %v5196_v23 }
  0xec   : > { %v695_v34 = vpop.xlane.xlu1 %694 }
  0xed   : > { %v689_v35 = vpop.xlane.xlu0 %688  ;;  %v744_v49 = vmul.f32 %v5122_v33, %v695_v34 }
  0xee   : > { %v742_v36 = vmul.f32 %v5122_v33, %v689_v35  ;;  %v701_v39 = vpop.xlane.xlu2 %700  ;;  %v720_v35 = vadd.f32 %v5209_v28, %v5206_v27 }
  0xef   : > { %v746_v46 = vmul.f32 %v5122_v33, %v701_v39  ;;  %v5162_v60 = vsub.f32 %v5075_v0, %v744_v49  ;;  %v5165_v61 = vsub.f32 %v5078_v1, %v744_v49  ;;  %v5223_v39 = vld [vmem:[%s5048_s15 + $0xe0] sm:$0xff] }
  0xf0   : > { %v5125_v37 = vsub.f32 %v653_v2, %v742_v36  ;;  %v5127_v38 = vsub.f32 %v654_v4, %v742_v36 }
  0xf1   : > { %v5153_v56 = vsub.f32 %v661_v6, %v746_v46  ;;  %v5155_v57 = vsub.f32 %v662_v7, %v746_v46  ;;  %v794_v6 = vmul.f32 %v5162_v60, %v5162_v60  ;;  %v795_v7 = vmul.f32 %v5165_v61, %v5165_v61 }
  0xf2   : > { %v790_v40 = vmul.f32 %v5125_v37, %v5125_v37  ;;  %v791_v41 = vmul.f32 %v5127_v38, %v5127_v38 }
  0xf3   : > { %v798_v5 = vmul.f32 %v5153_v56, %v5153_v56  ;;  %v799_v0 = vmul.f32 %v5155_v57, %v5155_v57  ;;  %v828_v16 = vadd.f32 %v795_v7, %v794_v6  ;;  %v3440_v6 = vld [vmem:[#allocation10 + $0xf0] sm:$0xf] }
  0xf4   : > { %v698_v42 = vpop.xlane.xlu1 %697  ;;  %v822_v43 = vadd.f32 %v791_v41, %v790_v40  ;;  %v5226_v40 = vld [vmem:[%s5048_s15 + $0xe8] sm:$0xff]  ;;  %v5233_v41 = vld [vmem:[%s5048_s15 + $0xc0] sm:$0xff] }
  0xf5   : > { %v745_v44 = vmul.f32 %v5122_v33, %v698_v42  ;;  %v692_v45 = vpop.xlane.xlu0 %691  ;;  %v834_v10 = vadd.f32 %v799_v0, %v798_v5  ;;  %v5236_v42 = vld [vmem:[%s5048_s15 + $0xc8] sm:$0xff] }
  0xf6   : > { %v743_v50 = vmul.f32 %v5122_v33, %v692_v45  ;;  %823 = vadd.xlane.f32.xlu2 %v822_v43  ;;  %v704_v3 = vpop.xlane.xlu2 %703  ;;  %v729_v43 = vadd.f32 %v5226_v40, %v5223_v39  ;;  %v723_v46 = vadd.f32 %v5236_v42, %v5233_v41 }
  0xf7   : > { %v5143_v51 = vsub.f32 %v659_v8, %v745_v44  ;;  %v5145_v52 = vsub.f32 %v660_v9, %v745_v44  ;;  %v747_v1 = vmul.f32 %v5122_v33, %v704_v3  ;;  %v5181_v8 = vld [vmem:[%s5048_s15 + $0xa0] sm:$0xff]  ;;  %v5184_v9 = vld [vmem:[%s5048_s15 + $0xa8] sm:$0xff] }
  0xf8   : > { %v5147_v53 = vsub.f32 %v655_v11, %v743_v50  ;;  %v5149_v54 = vsub.f32 %v656_v12, %v743_v50  ;;  %v717_v13 = vadd.f32 %v5184_v9, %v5181_v8 }
  0xf9   : > { %v796_v58 = vmul.f32 %v5143_v51, %v5143_v51  ;;  %v797_v59 = vmul.f32 %v5145_v52, %v5145_v52  ;;  %v5187_v11 = vsub.f32 %v5091_v14, %v747_v1  ;;  %v5190_v12 = vsub.f32 %v5094_v15, %v747_v1  ;;  %v3376_v1 = vld [vmem:[#allocation10 + $0x70] sm:$0xf] }
  0xfa   : > { %v792_v62 = vmul.f32 %v5147_v53, %v5147_v53  ;;  %v793_v63 = vmul.f32 %v5149_v54, %v5149_v54 }
  0xfb   : > { %v831_v2 = vadd.f32 %v797_v59, %v796_v58  ;;  %v800_v14 = vmul.f32 %v5187_v11, %v5187_v11  ;;  %v801_v15 = vmul.f32 %v5190_v12, %v5190_v12  ;;  %v5254_v59 = vld [vmem:[%s5048_s15 + $0xf0] sm:$0xff] }
  0xfc   : > { %v825_v4 = vadd.f32 %v793_v63, %v792_v62  ;;  %v710_v30 = vpop.xlane.xlu1 %709 }
  0xfd   : > { %832 = vadd.xlane.f32.xlu1 %v831_v2  ;;  %v707_v17 = vpop.xlane.xlu0 %706  ;;  %v837_v34 = vadd.f32 %v801_v15, %v800_v14  ;;  %v749_v36 = vmul.f32 %v5122_v33, %v710_v30  ;;  %v3442_v14 = vld [vmem:[#allocation10 + $0xf8] sm:$0xf0]  ;;  %v3780_v30 = vld [vmem:[#allocation10 + $0x64] sm:$0xf0] }
  0xfe   : > { %715 = vadd.xlane.f32.xlu2 %v714_v55  ;;  %826 = vadd.xlane.f32.xlu0 %v825_v4  ;;  %v748_v22 = vmul.f32 %v5122_v33, %v707_v17 }
  0xff   : > { %v5241_v44 = vsub.f32 %v5099_v18, %v749_v36  ;;  %v5244_v45 = vsub.f32 %v5102_v19, %v749_v36  ;;  %v5257_v19 = vld [vmem:[%s5048_s15 + $0xf8] sm:$0xff]  ;;  %v3796_v36 = vld [vmem:[#allocation10 + $0xe4] sm:$0xf0] }
 0x100   : > { %v5214_v31 = vsub.f32 %v5105_v20, %v748_v22  ;;  %v5217_v32 = vsub.f32 %v5108_v21, %v748_v22  ;;  %v732_v3 = vadd.f32 %v5257_v19, %v5254_v59  ;;  %v3797_v22 = vld [vmem:[#allocation10 + $0xf4] sm:$0xf] }
 0x101   : > { %v804_v58 = vmul.f32 %v5241_v44, %v5241_v44  ;;  %v805_v18 = vmul.f32 %v5244_v45, %v5244_v45  ;;  %v3445_v15 = vor.u32 %v3797_v22, %v3442_v14  ;;  %v3792_v22 = vld [vmem:[#allocation10 + $0xc4] sm:$0xf0]  ;;  %v3775_v14 = vld [vmem:[#allocation10 + $0x44] sm:$0xf] }
 0x102   : > { %v802_v20 = vmul.f32 %v5214_v31, %v5214_v31  ;;  %v803_v21 = vmul.f32 %v5217_v32, %v5217_v32 }
 0x103   : > { %v843_v2 = vadd.f32 %v805_v18, %v804_v58  ;;  %1529 = vmatpush.bf16.msra.mxu3 %v3445_v15  ;;  %v3360_v58 = vld [vmem:[#allocation10 + $0x50] sm:$0xf]  ;;  %v3778_v18 = vld [vmem:[#allocation10 + $0x54] sm:$0xf0]  ;;  %v3354_v15 = vld [vmem:[#allocation10 + $0x48] sm:$0xf0] }
 0x104   : > { %v840_v49 = vadd.f32 %v803_v21, %v802_v20  ;;  %v713_v50 = vpop.xlane.xlu1 %712  ;;  %v3779_v20 = vld [vmem:[#allocation10 + $0x64] sm:$0xf]  ;;  %v3370_v21 = vld [vmem:[#allocation10 + $0x68] sm:$0xf0] }
 0x105   : > { %835 = vadd.xlane.f32.xlu1 %v834_v10  ;;  %v750_v55 = vmul.f32 %v5122_v33, %v713_v50  ;;  %v3781_v10 = vld [vmem:[#allocation10 + $0x74] sm:$0xf]  ;;  %v3434_v50 = vld [vmem:[#allocation10 + $0xe8] sm:$0xf0] }
 0x106   : > { %718 = vadd.xlane.f32.xlu2 %v717_v13  ;;  %829 = vadd.xlane.f32.xlu0 %v828_v16  ;;  %v3378_v13 = vld [vmem:[#allocation10 + $0x78] sm:$0xf0] }
 0x107   : > { %v5260_v62 = vsub.f32 %v5115_v24, %v750_v55  ;;  %v5263_v63 = vsub.f32 %v5118_v25, %v750_v55  ;;  %v3782_v24 = vld [vmem:[#allocation10 + $0x74] sm:$0xf0]  ;;  %v3381_v17 = vor.u32 %v3781_v10, %v3378_v13  ;;  %v3352_v10 = vld [vmem:[#allocation10 + $0x40] sm:$0xf]  ;;  %v3776_v13 = vld [vmem:[#allocation10 + $0x44] sm:$0xf0] }
 0x108   : > { %v3377_v7 = vor.u32 %v3782_v24, %v3376_v1  ;;  %v3798_v25 = vld [vmem:[#allocation10 + $0xf4] sm:$0xf0] }
 0x109   : > { %v806_v4 = vmul.f32 %v5260_v62, %v5260_v62  ;;  %v807_v5 = vmul.f32 %v5263_v63, %v5263_v63  ;;  %v3441_v16 = vor.u32 %v3798_v25, %v3440_v6  ;;  %1480 = vmatpush.bf16.msra.mxu2 %v3381_v17  ;;  %v3793_v6 = vld [vmem:[#allocation10 + $0xd4] sm:$0xf]  ;;  %v3353_v17 = vor.u32 %v3776_v13, %v3352_v10 }
 0x10a   : > { %1382 = vmatpush.bf16.msra.mxu0 %v3377_v7  ;;  %v3426_v7 = vld [vmem:[#allocation10 + $0xd8] sm:$0xf0] }
 0x10b   : > { %v846_v0 = vadd.f32 %v807_v5, %v806_v4  ;;  %1431 = vmatpush.bf16.msra.mxu1 %v3441_v16  ;;  %v3794_v4 = vld [vmem:[#allocation10 + $0xd4] sm:$0xf0]  ;;  %v3777_v5 = vld [vmem:[#allocation10 + $0x54] sm:$0xf]  ;;  %v3429_v25 = vor.u32 %v3793_v6, %v3426_v7  ;;  %v3416_v16 = vld [vmem:[#allocation10 + $0xc0] sm:$0xf] }
 0x10c   : > { %v3788_v6 = vld [vmem:[#allocation10 + $0xa4] sm:$0xf0]  ;;  %v3771_v7 = vld [vmem:[#allocation10 + $0x24] sm:$0xf] }
 0x10d   : > { %727 = vadd.xlane.f32.xlu1 %v726_v29  ;;  %v3368_v29 = vld [vmem:[#allocation10 + $0x60] sm:$0xf] }
 0x10e   : > { %838 = vadd.xlane.f32.xlu2 %v837_v34  ;;  %721 = vadd.xlane.f32.xlu0 %v720_v35  ;;  %v3432_v34 = vld [vmem:[#allocation10 + $0xe0] sm:$0xf]  ;;  %v3369_v35 = vor.u32 %v3780_v30, %v3368_v29  ;;  %v3417_v29 = vor.u32 %v3792_v22, %v3416_v16  ;;  %v3357_v30 = vor.u32 %v3775_v14, %v3354_v15  ;;  %v3787_v16 = vld [vmem:[#allocation10 + $0xa4] sm:$0xf]  ;;  %v3328_v15 = vld [vmem:[#allocation10 + $0x10] sm:$0xf] }
 0x110   : > { %1383 = vmatpush.bf16.msra.mxu0 %v3369_v35  ;;  %v3418_v35 = vld [vmem:[#allocation10 + $0xc8] sm:$0xf0] }
 0x115   : > { %730 = vadd.xlane.f32.xlu1 %v729_v43  ;;  %v3433_v43 = vor.u32 %v3796_v36, %v3432_v34  ;;  %v3791_v34 = vld [vmem:[#allocation10 + $0xc4] sm:$0xf] }
 0x116   : > { %724 = vadd.xlane.f32.xlu0 %v723_v46  ;;  %841 = vadd.xlane.f32.xlu2 %v840_v49  ;;  %v3373_v46 = vor.u32 %v3779_v20, %v3370_v21  ;;  %v3795_v49 = vld [vmem:[#allocation10 + $0xe4] sm:$0xf]  ;;  %v3421_v36 = vor.u32 %v3791_v34, %v3418_v35  ;;  %v3344_v20 = vld [vmem:[#allocation10 + $0x30] sm:$0xf]  ;;  %v3774_v21 = vld [vmem:[#allocation10 + $0x34] sm:$0xf0] }
 0x117   : > { %v3437_v55 = vor.u32 %v3795_v49, %v3434_v50  ;;  %1432 = vmatpush.bf16.msra.mxu1 %v3433_v43  ;;  %v3408_v43 = vld [vmem:[#allocation10 + $0xb0] sm:$0xf]  ;;  %v3790_v49 = vld [vmem:[#allocation10 + $0xb4] sm:$0xf0]  ;;  %v3773_v50 = vld [vmem:[#allocation10 + $0x34] sm:$0xf] }
 0x118   : > { %1481 = vmatpush.bf16.msra.mxu2 %v3373_v46  ;;  %v3345_v46 = vor.u32 %v3774_v21, %v3344_v20  ;;  %v3769_v20 = vld [vmem:[#allocation10 + $0x14] sm:$0xf]  ;;  %v3330_v21 = vld [vmem:[#allocation10 + $0x18] sm:$0xf0] }
 0x119   : > { %1530 = vmatpush.bf16.msra.mxu3 %v3437_v55  ;;  %v3346_v55 = vld [vmem:[#allocation10 + $0x38] sm:$0xf0] }
 0x11d   : > { %1531 = vmatpush.bf16.msra.mxu3 %v3429_v25  ;;  %v3338_v25 = vld [vmem:[#allocation10 + $0x28] sm:$0xf0] }
 0x11e   : > { %844 = vadd.xlane.f32.xlu0 %v843_v2  ;;  %733 = vadd.xlane.f32.xlu2 %v732_v3  ;;  %v3424_v2 = vld [vmem:[#allocation10 + $0xd0] sm:$0xf]  ;;  %v3361_v3 = vor.u32 %v3778_v18, %v3360_v58  ;;  %v3409_v58 = vor.u32 %v3790_v49, %v3408_v43  ;;  %v3349_v18 = vor.u32 %v3773_v50, %v3346_v55  ;;  %v3785_v49 = vld [vmem:[#allocation10 + $0x94] sm:$0xf]  ;;  %v3394_v50 = vld [vmem:[#allocation10 + $0x98] sm:$0xf0] }
 0x11f   : > { %v3425_v1 = vor.u32 %v3794_v4, %v3424_v2  ;;  %v3789_v2 = vld [vmem:[#allocation10 + $0xb4] sm:$0xf]  ;;  %v3341_v13 = vor.u32 %v3771_v7, %v3338_v25 }
 0x120   : > { %1384 = vmatpush.bf16.msra.mxu0 %v3361_v3  ;;  %v3410_v3 = vld [vmem:[#allocation10 + $0xb8] sm:$0xf0] }
 0x121   : > { %1433 = vmatpush.bf16.msra.mxu1 %v3425_v1  ;;  %1532 = vmatpush.bf16.msra.mxu3 %v3421_v36  ;;  %v3413_v4 = vor.u32 %v3789_v2, %v3410_v3  ;;  %v3400_v1 = vld [vmem:[#allocation10 + $0xa0] sm:$0xf]  ;;  %v3786_v36 = vld [vmem:[#allocation10 + $0x94] sm:$0xf0] }
 0x122   : > { %v3401_v10 = vor.u32 %v3788_v6, %v3400_v1 }
 0x124   : > { %1385 = vmatpush.bf16.msra.mxu0 %v3353_v17  ;;  %v3402_v17 = vld [vmem:[#allocation10 + $0xa8] sm:$0xf0] }
 0x125   : > { %1434 = vmatpush.bf16.msra.mxu1 %v3417_v29  ;;  %1533 = vmatpush.bf16.msra.mxu3 %v3413_v4  ;;  %v3405_v22 = vor.u32 %v3787_v16, %v3402_v17  ;;  %v3770_v29 = vld [vmem:[#allocation10 + $0x14] sm:$0xf0] }
 0x126   : > { %847 = vadd.xlane.f32.xlu0 %v846_v0  ;;  %v3362_v0 = vld [vmem:[#allocation10 + $0x58] sm:$0xf0]  ;;  %v3329_v35 = vor.u32 %v3770_v29, %v3328_v15 }
 0x127   : > { %v3365_v24 = vor.u32 %v3777_v5, %v3362_v0  ;;  %v3336_v5 = vld [vmem:[#allocation10 + $0x20] sm:$0xf]  ;;  %v3772_v0 = vld [vmem:[#allocation10 + $0x24] sm:$0xf0] }
 0x128   : > { %1386 = vmatpush.bf16.msra.mxu0 %v3345_v46  ;;  %v3333_v46 = vor.u32 %v3769_v20, %v3330_v21 }
 0x129   : > { %1482 = vmatpush.bf16.msra.mxu2 %v3365_v24  ;;  %1435 = vmatpush.bf16.msra.mxu1 %v3409_v58  ;;  %v3337_v24 = vor.u32 %v3772_v0, %v3336_v5  ;;  %v3397_v58 = vor.u32 %v3785_v49, %v3394_v50  ;;  %v3783_v50 = vld [vmem:[#allocation10 + $0x84] sm:$0xf] }
 0x12a   : > { %1534 = vmatpush.bf16.msra.mxu3 %v3405_v22  ;;  %v3768_v22 = vld [vmem:[#allocation10 + $0x4] sm:$0xf0] }
 0x12c   : > { %1387 = vmatpush.bf16.msra.mxu0 %v3337_v24 }
 0x12d   : > { %1483 = vmatpush.bf16.msra.mxu2 %v3357_v30  ;;  %1436 = vmatpush.bf16.msra.mxu1 %v3401_v10  ;;  %v3392_v30 = vld [vmem:[#allocation10 + $0x90] sm:$0xf] }
 0x12e   : > { %v3393_v43 = vor.u32 %v3786_v36, %v3392_v30  ;;  %1535 = vmatpush.bf16.msra.mxu3 %v3397_v58  ;;  %v3784_v30 = vld [vmem:[#allocation10 + $0x84] sm:$0xf0]  ;;  %v3386_v58 = vld [vmem:[#allocation10 + $0x88] sm:$0xf0] }
 0x130   : > { %1388 = vmatpush.bf16.msra.mxu0 %v3329_v35  ;;  %v3322_v35 = vld [vmem:[#allocation10 + $0x8] sm:$0xf0] }
 0x131   : > { %1484 = vmatpush.bf16.msra.mxu2 %v3349_v18  ;;  %1437 = vmatpush.bf16.msra.mxu1 %v3393_v43 }
 0x135   : > { %1485 = vmatpush.bf16.msra.mxu2 %v3341_v13 }
 0x139   : > { %1486 = vmatpush.bf16.msra.mxu2 %v3333_v46 }
 0x169   : > { %v824_v14 = vpop.xlane.xlu2 %823 }
 0x16a   : > { %v870_v34 = vmul.f32 %v824_v14, %v5122_v33  ;;  %v3384_v14 = vld [vmem:[#allocation10 + $0x80] sm:$0xf] }
 0x16b   : > { %v3385_v46 = vor.u32 %v3784_v30, %v3384_v14 }
 0x16c   : > { %v5272_v55 = vadd.f32 1e-12, %v870_v34  ;;  %v3767_v34 = vld [vmem:[#allocation10 + $0x4] sm:$0xf] }
 0x16d   : > { %v3325_v49 = vor.u32 %v3767_v34, %v3322_v35  ;;  %1438 = vmatpush.bf16.msra.mxu1 %v3385_v46  ;;  %v686_v46 = vld [vmem:[#allocation8] sm:$0x3] }
 0x16e   : > { %4358 = vrsqrt.f32 %v5272_v55  ;;  %vm908_vm2 = vweird.f32 %v5272_v55 }
 0x16f   : > { %1487 = vmatpush.bf16.msra.mxu2 %v3325_v49 }
 0x170   : > { %v833_v18 = vpop.xlane.xlu1 %832 }
 0x171   : > { %v873_v2 = vmul.f32 %v833_v18, %v5122_v33  ;;  %v716_v3 = vpop.xlane.xlu2 %715  ;;  %v827_v4 = vpop.xlane.xlu0 %826 }
 0x172   : > { %v751_v5 = vmul.f32 %v5122_v33, %v716_v3  ;;  %v871_v0 = vmul.f32 %v827_v4, %v5122_v33  ;;  %v3389_v3 = vor.u32 %v3783_v50, %v3386_v58 }
 0x173   : > { %v5278_v1 = vadd.f32 1e-12, %v873_v2 }
 0x174   : > { %v4359_v24 = vpop.eup %4358  ;;  %v5281_v6 = vsub.f32 %v5136_v47, %v751_v5  ;;  %v5284_v7 = vsub.f32 %v5139_v48, %v751_v5  ;;  %v5286_v25 = vadd.f32 1e-12, %v871_v0  ;;  %v3320_v47 = vld [vmem:[#allocation10] sm:$0xf]  ;;  %1536 = vmatpush.bf16.msra.mxu3 %v3389_v3 }
 0x175   : > { %v903_v10 = vmul.f32 %v4359_v24, %v5272_v55  ;;  %4360 = vrsqrt.f32 %v5278_v1  ;;  %v3321_v29 = vor.u32 %v3768_v22, %v3320_v47  ;;  %vm909_vm1 = vweird.f32 %v4359_v24 }
 0x176   : > { %4362 = vrsqrt.f32 %v5286_v25  ;;  %v808_v13 = vmul.f32 %v5281_v6, %v5281_v6  ;;  %v809_v16 = vmul.f32 %v5284_v7, %v5284_v7  ;;  %vm910_vm3 = vmor %vm908_vm2, %vm909_vm1  ;;  %vm918_vm5 = vweird.f32 %v5286_v25 }
 0x177   : > { %v904_v17 = vmul.f32 %v4359_v24, %v903_v10  ;;  %1389 = vmatpush.bf16.msra.mxu0 %v3321_v29  ;;  %vm938_vm6 = vweird.f32 %v5278_v1 }
 0x178   : > { %v836_v48 = vpop.xlane.xlu1 %835  ;;  %v849_v15 = vadd.f32 %v809_v16, %v808_v13 }
 0x179   : > { %v905_v36 = vmul.f32 0.5, %v904_v17  ;;  %v874_v20 = vmul.f32 %v836_v48, %v5122_v33  ;;  %v719_v21 = vpop.xlane.xlu2 %718  ;;  %v830_v43 = vpop.xlane.xlu0 %829 }
 0x17a   : > { %v752_v18 = vmul.f32 %v5122_v33, %v719_v21  ;;  %v872_v2 = vmul.f32 %v830_v43, %v5122_v33  ;;  %850 = vadd.xlane.f32.xlu1 %v849_v15 }
 0x17b   : > { %v5298_v4 = vpop.eup %4360  ;;  %v906_v5 = vsub.f32 1.5, %v905_v36  ;;  %v5300_v0 = vadd.f32 1e-12, %v874_v20 }
 0x17c   : > { %v4363_v10 = vpop.eup %4362  ;;  %v933_v13 = vmul.f32 %v5298_v4, %v5278_v1  ;;  %v5305_v16 = vsub.f32 %v5181_v8, %v752_v18  ;;  %v5308_v17 = vsub.f32 %v5184_v9, %v752_v18  ;;  %v5313_v48 = vadd.f32 1e-12, %v872_v2  ;;  %v685_v9 = vld [vmem:[%s6670_s22] sm:$0x3] }
 0x17d   : > { %v907_v47 = vmul.f32 %v4359_v24, %v906_v5  ;;  %v913_v22 = vmul.f32 %v4363_v10, %v5286_v25  ;;  %4364 = vrsqrt.f32 %v5300_v0  ;;  %v5325_v49 = vperm.slane %v685_v9, 0 }
 0x17e   : > { %v934_v14 = vmul.f32 %v5298_v4, %v933_v13  ;;  %v810_v15 = vmul.f32 %v5305_v16, %v5305_v16  ;;  %v811_v8 = vmul.f32 %v5308_v17, %v5308_v17  ;;  %4366 = vrsqrt.f32 %v5313_v48 }
 0x17f   : > { %v914_v29 = vmul.f32 %v4363_v10, %v913_v22  ;;  %v911_v30 = vsel %vm910_vm3, %v4359_v24, %v907_v47  ;;  %vm919_vm4 = vweird.f32 %v4363_v10  ;;  %v5328_v18 = vperm.slane %v685_v9, 1 }
 0x180   : > { %v852_v36 = vadd.f32 %v811_v8, %v810_v15  ;;  %v935_v20 = vmul.f32 0.5, %v934_v14  ;;  %v728_v21 = vpop.xlane.xlu1 %727  ;;  %v1062_v50 = vmul.f32 %v911_v30, %v5125_v37  ;;  %v1063_v24 = vmul.f32 %v911_v30, %v5127_v38  ;;  %vm920_vm7 = vmor %vm918_vm5, %vm919_vm4 }
 0x181   : > { %v915_v55 = vmul.f32 0.5, %v914_v29  ;;  %v839_v34 = vpop.xlane.xlu2 %838  ;;  %v722_v35 = vpop.xlane.xlu0 %721  ;;  %v5336_v47 = vperm.slane %v686_v46, 0  ;;  %v5338_v22 = vperm.slane %v686_v46, 1  ;;  %v755_v29 = vmul.f32 %v5122_v33, %v728_v21 }
 0x182   : > { %v875_v43 = vmul.f32 %v839_v34, %v5122_v33  ;;  %853 = vadd.xlane.f32.xlu2 %v852_v36  ;;  %v936_v37 = vsub.f32 1.5, %v935_v20  ;;  %v1099_v14 = vmul.f32 %v5325_v49, %v1062_v50  ;;  %v1100_v25 = vmul.f32 %v5328_v18, %v1063_v24 }
 0x183   : > { %v916_v58 = vsub.f32 1.5, %v915_v55  ;;  %v5331_v2 = vpop.eup %4364  ;;  %vm939_vm8 = vweird.f32 %v5298_v4  ;;  %v753_v46 = vmul.f32 %v5122_v33, %v722_v35  ;;  %vm928_vm10 = vweird.f32 %v5313_v48 }
 0x184   : > { %v5334_v5 = vadd.f32 1e-12, %v875_v43  ;;  %v4367_v13 = vpop.eup %4366  ;;  %v943_v30 = vmul.f32 %v5331_v2, %v5300_v0  ;;  %v937_v36 = vmul.f32 %v5298_v4, %v936_v37  ;;  %v1136_v43 = vadd.f32 %v5336_v47, %v1099_v14  ;;  %vm940_vm9 = vmor %vm938_vm6, %vm939_vm8 }
 0x185   : > { %v917_v3 = vmul.f32 %v4363_v10, %v916_v58  ;;  %v923_v38 = vmul.f32 %v4367_v13, %v5313_v48  ;;  %v1137_v50 = vadd.f32 %v5338_v22, %v1100_v25  ;;  %vm929_vm11 = vweird.f32 %v4367_v13 }
 0x186   : > { %4368 = vrsqrt.f32 %v5334_v5  ;;  %v944_v14 = vmul.f32 %v5331_v2, %v943_v30  ;;  %v5381_v30 = vsub.f32 %v5209_v28, %v753_v46  ;;  %vm930_vm12 = vmor %vm928_vm10, %vm929_vm11  ;;  %vm958_vm13 = vweird.f32 %v5334_v5 }
 0x187   : > { %v921_v15 = vsel %vm920_vm7, %v4363_v10, %v917_v3  ;;  %v924_v55 = vmul.f32 %v4367_v13, %v923_v38  ;;  %v5373_v38 = vsub.f32 %v5199_v26, %v755_v29  ;;  %vm948_vm15 = vweird.f32 %v5300_v0 }
 0x188   : > { %v1064_v8 = vmul.f32 %v921_v15, %v5147_v53  ;;  %v1065_v9 = vmul.f32 %v921_v15, %v5149_v54  ;;  %v5358_v54 = vsub.f32 %v5196_v23, %v755_v29  ;;  %v731_v3 = vpop.xlane.xlu1 %730  ;;  %v941_v23 = vsel %vm940_vm9, %v5298_v4, %v937_v36 }
 0x189   : > { %v842_v34 = vpop.xlane.xlu2 %841  ;;  %v725_v10 = vpop.xlane.xlu0 %724  ;;  %v925_v53 = vmul.f32 0.5, %v924_v55  ;;  %v756_v48 = vmul.f32 %v5122_v33, %v731_v3  ;;  %v1069_v28 = vmul.f32 %v941_v23, %v5145_v52  ;;  %vm949_vm0 = vweird.f32 %v5331_v2 }
 0x18a   : > { %v1101_v20 = vmul.f32 %v5325_v49, %v1064_v8  ;;  %v1102_v21 = vmul.f32 %v5328_v18, %v1065_v9  ;;  %v876_v37 = vmul.f32 %v842_v34, %v5122_v33  ;;  %v5378_v9 = vsub.f32 %v5206_v27, %v753_v46  ;;  %vm950_vm2 = vmor %vm948_vm15, %vm949_vm0 }
 0x18b   : > { %v926_v15 = vsub.f32 1.5, %v925_v53  ;;  %v754_v26 = vmul.f32 %v5122_v33, %v725_v10  ;;  %v816_v29 = vmul.f32 %v5358_v54, %v5358_v54  ;;  %v1068_v27 = vmul.f32 %v941_v23, %v5143_v51 }
 0x18c   : > { %v1138_v58 = vadd.f32 %v5336_v47, %v1101_v20  ;;  %v1139_v24 = vadd.f32 %v5338_v22, %v1102_v21  ;;  %v5375_v25 = vpop.eup %4368  ;;  %v5386_v55 = vadd.f32 1e-12, %v876_v37  ;;  %v945_v34 = vmul.f32 0.5, %v944_v14 }
 0x18d   : > { %v927_v8 = vmul.f32 %v4367_v13, %v926_v15  ;;  %v953_v4 = vmul.f32 %v5375_v25, %v5334_v5  ;;  %v5403_v51 = vsub.f32 %v5223_v39, %v756_v48  ;;  %v5406_v52 = vsub.f32 %v5226_v40, %v756_v48 }
 0x18e   : > { %v5368_v1 = vpack.c.bf16 %v1138_v58, %v1136_v43  ;;  %v5370_v35 = vpack.c.bf16 %v1139_v24, %v1137_v50  ;;  %v817_v43 = vmul.f32 %v5373_v38, %v5373_v38  ;;  %4370 = vrsqrt.f32 %v5386_v55 }
 0x18f   : > { %v931_v36 = vsel %vm930_vm12, %v4367_v13, %v927_v8  ;;  %v954_v10 = vmul.f32 %v5375_v25, %v953_v4  ;;  %v5414_v50 = vsub.f32 %v5233_v41, %v754_v26  ;;  %v5417_v24 = vsub.f32 %v5236_v42, %v754_v26 }
 0x190   : > { %1390 = vmatmul.bf16.vlgmr.msra.gmra.mxu0 %v5368_v1  ;;  %1439 = vmatmul.bf16.vlgmr.msra.gmra.mxu1 %v5370_v35  ;;  %v1066_v20 = vmul.f32 %v931_v36, %v5162_v60  ;;  %v1067_v21 = vmul.f32 %v931_v36, %v5165_v61  ;;  %v812_v60 = vmul.f32 %v5378_v9, %v5378_v9  ;;  %v946_v48 = vsub.f32 1.5, %v945_v34 }
 0x191   : > { %1488 = vmatmul.bf16.vlgmr.msra.gmra.mxu2 %v5368_v1  ;;  %1537 = vmatmul.bf16.vlgmr.msra.gmra.mxu3 %v5370_v35  ;;  %v734_v53 = vpop.xlane.xlu2 %733  ;;  %v845_v46 = vpop.xlane.xlu0 %844  ;;  %v813_v61 = vmul.f32 %v5381_v30, %v5381_v30  ;;  %v955_v13 = vmul.f32 0.5, %v954_v10  ;;  %v861_v58 = vadd.f32 %v817_v43, %v816_v29  ;;  %v1105_v37 = vmul.f32 %v5325_v49, %v1068_v27 }
 0x192   : > { %v757_v40 = vmul.f32 %v5122_v33, %v734_v53  ;;  %v877_v3 = vmul.f32 %v845_v46, %v5122_v33  ;;  %v1103_v14 = vmul.f32 %v5325_v49, %v1066_v20  ;;  %v1104_v15 = vmul.f32 %v5328_v18, %v1067_v21 }
 0x193   : > { %v855_v39 = vadd.f32 %v813_v61, %v812_v60  ;;  %862 = vadd.xlane.f32.xlu2 %v861_v58  ;;  %v1106_v23 = vmul.f32 %v5328_v18, %v1069_v28  ;;  %v956_v41 = vsub.f32 1.5, %v955_v13  ;;  %v818_v42 = vmul.f32 %v5403_v51, %v5403_v51 }
 0x194   : > { %v819_v8 = vmul.f32 %v5406_v52, %v5406_v52  ;;  %vm959_vm14 = vweird.f32 %v5375_v25  ;;  %v5431_v4 = vadd.f32 1e-12, %v877_v3  ;;  %v5434_v26 = vsub.f32 %v5254_v59, %v757_v40  ;;  %v5443_v36 = vpop.eup %4370 }
 0x195   : > { %856 = vadd.xlane.f32.xlu0 %v855_v39  ;;  %v5437_v29 = vsub.f32 %v5257_v19, %v757_v40  ;;  %v814_v27 = vmul.f32 %v5414_v50, %v5414_v50  ;;  %v815_v28 = vmul.f32 %v5417_v24, %v5417_v24  ;;  %v1140_v34 = vadd.f32 %v5336_v47, %v1103_v14  ;;  %vm960_vm1 = vmor %vm958_vm13, %vm959_vm14 }
 0x196   : > { %v1141_v20 = vadd.f32 %v5338_v22, %v1104_v15  ;;  %4372 = vrsqrt.f32 %v5431_v4  ;;  %v957_v59 = vmul.f32 %v5375_v25, %v956_v41  ;;  %v864_v19 = vadd.f32 %v819_v8, %v818_v42  ;;  %v3506_v15 = vld [vmem:[#allocation11 + $0x78] sm:$0xf0] }
 0x197   : > { %v858_v21 = vadd.f32 %v815_v28, %v814_v27  ;;  %v1142_v10 = vadd.f32 %v5336_v47, %v1105_v37  ;;  %v1143_v43 = vadd.f32 %v5338_v22, %v1106_v23  ;;  %v947_v53 = vmul.f32 %v5331_v2, %v946_v48  ;;  %v3829_v23 = vld [vmem:[#allocation11 + $0xf4] sm:$0xf]  ;;  %v3570_v8 = vld [vmem:[#allocation11 + $0xf8] sm:$0xf0]  ;;  %v3504_v48 = vld [vmem:[#allocation11 + $0x70] sm:$0xf] }
 0x198   : > { %v963_v46 = vmul.f32 %v5443_v36, %v5386_v55  ;;  %v820_v60 = vmul.f32 %v5434_v26, %v5434_v26  ;;  %v821_v61 = vmul.f32 %v5437_v29, %v5437_v29  ;;  %v961_v5 = vsel %vm960_vm1, %v5375_v25, %v957_v59  ;;  %v3813_v25 = vld [vmem:[#allocation11 + $0x74] sm:$0xf]  ;;  %v3568_v59 = vld [vmem:[#allocation11 + $0xf0] sm:$0xf] }
 0x199   : > { %859 = vadd.xlane.f32.xlu1 %v858_v21  ;;  %v5466_v13 = vpack.c.bf16 %v1142_v10, %v1140_v34  ;;  %v5468_v58 = vpack.c.bf16 %v1143_v43, %v1141_v20  ;;  %v951_v40 = vsel %vm950_vm2, %v5331_v2, %v947_v53  ;;  %v1072_v14 = vmul.f32 %v961_v5, %v5187_v11  ;;  %v3814_v20 = vld [vmem:[#allocation11 + $0x74] sm:$0xf0]  ;;  %v3811_v43 = vld [vmem:[#allocation11 + $0x64] sm:$0xf] }
 0x19a   : > { %v964_v3 = vmul.f32 %v5443_v36, %v963_v46  ;;  %v867_v37 = vadd.f32 %v821_v61, %v820_v60  ;;  %v1073_v41 = vmul.f32 %v961_v5, %v5190_v12  ;;  %v3509_v2 = vor.u32 %v3813_v25, %v3506_v15  ;;  %v3830_v11 = vld [vmem:[#allocation11 + $0xf4] sm:$0xf0]  ;;  %v3498_v12 = vld [vmem:[#allocation11 + $0x68] sm:$0xf0]  ;;  %v3827_v61 = vld [vmem:[#allocation11 + $0xe4] sm:$0xf] }
 0x19b   : > { %v1070_v27 = vmul.f32 %v951_v40, %v5153_v56  ;;  %v1071_v28 = vmul.f32 %v951_v40, %v5155_v57  ;;  %v3573_v34 = vor.u32 %v3829_v23, %v3570_v8  ;;  %v3505_v10 = vor.u32 %v3814_v20, %v3504_v48  ;;  %v3562_v56 = vld [vmem:[#allocation11 + $0xe8] sm:$0xf0]  ;;  %v3560_v23 = vld [vmem:[#allocation11 + $0xe0] sm:$0xf]  ;;  %v3490_v8 = vld [vmem:[#allocation11 + $0x58] sm:$0xf0] }
 0x19c   : > { %v5471_v39 = vpop.eup %4372  ;;  %1874 = vmatpush.bf16.msrb.mxu2 %v3509_v2  ;;  %v1109_v53 = vmul.f32 %v5325_v49, %v1072_v14  ;;  %v3569_v46 = vor.u32 %v3830_v11, %v3568_v59  ;;  %v3501_v60 = vor.u32 %v3811_v43, %v3498_v12  ;;  %v1110_v57 = vmul.f32 %v5328_v18, %v1073_v41  ;;  %v3828_v14 = vld [vmem:[#allocation11 + $0xe4] sm:$0xf0] }
 0x19d   : > { %865 = vadd.xlane.f32.xlu0 %v864_v19  ;;  %v973_v0 = vmul.f32 %v5471_v39, %v5431_v4  ;;  %v965_v19 = vmul.f32 0.5, %v964_v3  ;;  %1923 = vmatpush.bf16.msrb.mxu3 %v3573_v34  ;;  %v3565_v40 = vor.u32 %v3827_v61, %v3562_v56  ;;  %v3812_v3 = vld [vmem:[#allocation11 + $0x64] sm:$0xf0]  ;;  %v1108_v25 = vmul.f32 %v5328_v18, %v1071_v28 }
 0x19e   : > { %1776 = vmatpush.bf16.msrb.mxu0 %v3505_v10  ;;  %1825 = vmatpush.bf16.msrb.mxu1 %v3569_v46  ;;  %vm978_vm3 = vweird.f32 %v5431_v4  ;;  %vm979_vm4 = vweird.f32 %v5471_v39  ;;  %v3561_v41 = vor.u32 %v3828_v14, %v3560_v23  ;;  %v1146_v48 = vadd.f32 %v5336_v47, %v1109_v53  ;;  %v3810_v14 = vld [vmem:[#allocation11 + $0x54] sm:$0xf0] }
 0x19f   : > { %v974_v42 = vmul.f32 %v5471_v39, %v973_v0  ;;  %v3496_v0 = vld [vmem:[#allocation11 + $0x60] sm:$0xf]  ;;  %v966_v2 = vsub.f32 1.5, %v965_v19  ;;  %vm968_vm5 = vweird.f32 %v5386_v55  ;;  %vm969_vm6 = vweird.f32 %v5443_v36  ;;  %vm980_vm7 = vmor %vm978_vm3, %vm979_vm4 }
 0x1a0   : > { %1395 = vmatmul.bf16.gmra.mxu0 %v5466_v13  ;;  %1444 = vmatmul.bf16.gmra.mxu1 %v5468_v58  ;;  %v3497_v15 = vor.u32 %v3812_v3, %v3496_v0  ;;  %v1145_v20 = vadd.f32 %v5338_v22, %v1108_v25  ;;  %vm970_vm8 = vmor %vm968_vm5, %vm969_vm6  ;;  %v3554_v25 = vld [vmem:[#allocation11 + $0xd8] sm:$0xf0] }
 0x1a1   : > { %1493 = vmatmul.bf16.gmra.mxu2 %v5466_v13  ;;  %1542 = vmatmul.bf16.gmra.mxu3 %v5468_v58  ;;  %v975_v21 = vmul.f32 0.5, %v974_v42  ;;  %v3809_v42 = vld [vmem:[#allocation11 + $0x54] sm:$0xf]  ;;  %v967_v59 = vmul.f32 %v5443_v36, %v966_v2  ;;  %v3826_v2 = vld [vmem:[#allocation11 + $0xd4] sm:$0xf0] }
 0x1a2   : > { %868 = vadd.xlane.f32.xlu1 %v867_v37  ;;  %v1107_v37 = vmul.f32 %v5325_v49, %v1070_v27  ;;  %1875 = vmatpush.bf16.msrb.mxu2 %v3501_v60  ;;  %v3493_v34 = vor.u32 %v3809_v42, %v3490_v8  ;;  %v1147_v27 = vadd.f32 %v5338_v22, %v1110_v57  ;;  %v3552_v42 = vld [vmem:[#allocation11 + $0xd0] sm:$0xf] }
 0x1a3   : > { %v976_v5 = vsub.f32 1.5, %v975_v21  ;;  %1924 = vmatpush.bf16.msrb.mxu3 %v3565_v40  ;;  %1777 = vmatpush.bf16.msrb.mxu0 %v3497_v15  ;;  %v971_v21 = vsel %vm970_vm8, %v5443_v36, %v967_v59  ;;  %v3488_v15 = vld [vmem:[#allocation11 + $0x50] sm:$0xf]  ;;  %v3482_v59 = vld [vmem:[#allocation11 + $0x48] sm:$0xf0] }
 0x1a4   : > { %v1144_v4 = vadd.f32 %v5336_v47, %v1107_v37  ;;  %1826 = vmatpush.bf16.msrb.mxu1 %v3561_v41  ;;  %v5502_v19 = vpack.c.bf16 %v1147_v27, %v1145_v20  ;;  %v1074_v12 = vmul.f32 %v971_v21, %v5214_v31  ;;  %v1075_v53 = vmul.f32 %v971_v21, %v5217_v32  ;;  %v848_v32 = vpop.xlane.xlu0 %847  ;;  %v3825_v37 = vld [vmem:[#allocation11 + $0xd4] sm:$0xf]  ;;  %v3807_v20 = vld [vmem:[#allocation11 + $0x44] sm:$0xf] }
 0x1a5   : > { %v977_v28 = vmul.f32 %v5471_v39, %v976_v5  ;;  %v878_v5 = vmul.f32 %v848_v32, %v5122_v33  ;;  %v3557_v23 = vor.u32 %v3825_v37, %v3554_v25  ;;  %v3489_v8 = vor.u32 %v3810_v14, %v3488_v15  ;;  %v1216_v14 = vld [vmem:[%s6671_s1] sm:$0x3] }
 0x1a6   : > { %1876 = vmatpush.bf16.msrb.mxu2 %v3493_v34  ;;  %v5500_v11 = vpack.c.bf16 %v1146_v48, %v1144_v4  ;;  %v1111_v36 = vmul.f32 %v5325_v49, %v1074_v12  ;;  %v1112_v60 = vmul.f32 %v5328_v18, %v1075_v53  ;;  %v3553_v48 = vor.u32 %v3826_v2, %v3552_v42  ;;  %v3823_v2 = vld [vmem:[#allocation11 + $0xc4] sm:$0xf] }
 0x1a7   : > { %v981_v55 = vsel %vm980_vm7, %v5471_v39, %v977_v28  ;;  %v894_v40 = vadd.f32 1e-12, %v878_v5  ;;  %1925 = vmatpush.bf16.msrb.mxu3 %v3557_v23  ;;  %1778 = vmatpush.bf16.msrb.mxu0 %v3489_v8  ;;  %v3480_v8 = vld [vmem:[#allocation11 + $0x40] sm:$0xf] }
 0x1a8   : > { %v1076_v10 = vmul.f32 %v981_v55, %v5241_v44  ;;  %v1077_v43 = vmul.f32 %v981_v55, %v5244_v45  ;;  %v1148_v56 = vadd.f32 %v5336_v47, %v1111_v36  ;;  %v1149_v45 = vadd.f32 %v5338_v22, %v1112_v60  ;;  %1827 = vmatpush.bf16.msrb.mxu1 %v3553_v48 }
 0x1a9   : > { %4374 = vrsqrt.f32 %v894_v40  ;;  %v3485_v55 = vor.u32 %v3807_v20, %v3482_v59  ;;  %vm988_vm9 = vweird.f32 %v894_v40 }
 0x1aa   : > { %v1113_v39 = vmul.f32 %v5325_v49, %v1076_v10  ;;  %v1114_v46 = vmul.f32 %v5328_v18, %v1077_v43 }
 0x1ab   : > { %1877 = vmatpush.bf16.msrb.mxu2 %v3485_v55  ;;  %v3824_v55 = vld [vmem:[#allocation11 + $0xc4] sm:$0xf0] }
 0x1ac   : > { %v1150_v61 = vadd.f32 %v5336_v47, %v1113_v39  ;;  %v1151_v44 = vadd.f32 %v5338_v22, %v1114_v46 }
 0x1ae   : > { %v5522_v57 = vpack.c.bf16 %v1150_v61, %v1148_v56  ;;  %v5524_v31 = vpack.c.bf16 %v1151_v44, %v1149_v45 }
 0x1af   : > { %v4375_v0 = vpop.eup %4374 }
 0x1b0   : > { %1400 = vmatmul.bf16.gmra.mxu0 %v5500_v11  ;;  %1449 = vmatmul.bf16.gmra.mxu1 %v5502_v19  ;;  %v983_v3 = vmul.f32 %v4375_v0, %v894_v40  ;;  %vm989_vm10 = vweird.f32 %v4375_v0 }
 0x1b1   : > { %1498 = vmatmul.bf16.gmra.mxu2 %v5500_v11  ;;  %1547 = vmatmul.bf16.gmra.mxu3 %v5502_v19  ;;  %vm990_vm11 = vmor %vm988_vm9, %vm989_vm10 }
 0x1b2   : > { %v984_v41 = vmul.f32 %v4375_v0, %v983_v3 }
 0x1b4   : > { %v985_v28 = vmul.f32 0.5, %v984_v41  ;;  %v3546_v41 = vld [vmem:[#allocation11 + $0xc8] sm:$0xf0] }
 0x1b6   : > { %v986_v21 = vsub.f32 1.5, %v985_v28  ;;  %v3544_v28 = vld [vmem:[#allocation11 + $0xc0] sm:$0xf] }
 0x1b8   : > { %v987_v53 = vmul.f32 %v4375_v0, %v986_v21 }
 0x1ba   : > { %v991_v60 = vsel %vm990_vm11, %v4375_v0, %v987_v53  ;;  %v5561_v53 = vperm.slane %v1216_v14, 0 }
 0x1bb   : > { %v1078_v44 = vmul.f32 %v991_v60, %v5260_v62  ;;  %v1079_v45 = vmul.f32 %v991_v60, %v5263_v63 }
 0x1bd   : > { %v1115_v3 = vmul.f32 %v5325_v49, %v1078_v44  ;;  %v1116_v0 = vmul.f32 %v5328_v18, %v1079_v45 }
 0x1bf   : > { %v1152_v42 = vadd.f32 %v5336_v47, %v1115_v3  ;;  %v1153_v48 = vadd.f32 %v5338_v22, %v1116_v0  ;;  %v3474_v3 = vld [vmem:[#allocation11 + $0x38] sm:$0xf0] }
 0x1c0   : > { %1405 = vmatmul.bf16.gmra.mxu0 %v5522_v57  ;;  %1454 = vmatmul.bf16.gmra.mxu1 %v5524_v31 }
 0x1c1   : > { %1503 = vmatmul.bf16.gmra.mxu2 %v5522_v57  ;;  %1552 = vmatmul.bf16.gmra.mxu3 %v5524_v31 }
 0x1ed   : > { %v851_v34 = vpop.xlane.xlu1 %850 }
 0x1ee   : > { %v879_v27 = vmul.f32 %v851_v34, %v5122_v33  ;;  %v3549_v34 = vor.u32 %v3823_v2, %v3546_v41  ;;  %v5586_v2 = vperm.slane %v1216_v14, 1 }
 0x1f0   : > { %v895_v4 = vadd.f32 1e-12, %v879_v27  ;;  %v3808_v27 = vld [vmem:[#allocation11 + $0x44] sm:$0xf0]  ;;  %1926 = vmatpush.bf16.msrb.mxu3 %v3549_v34  ;;  %v3538_v34 = vld [vmem:[#allocation11 + $0xb8] sm:$0xf0] }
 0x1f1   : > { %v3481_v59 = vor.u32 %v3808_v27, %v3480_v8  ;;  %v3472_v27 = vld [vmem:[#allocation11 + $0x30] sm:$0xf] }
 0x1f2   : > { %4376 = vrsqrt.f32 %v895_v4  ;;  %vm998_vm13 = vweird.f32 %v895_v4 }
 0x1f3   : > { %1779 = vmatpush.bf16.msrb.mxu0 %v3481_v59  ;;  %v3806_v59 = vld [vmem:[#allocation11 + $0x34] sm:$0xf0] }
 0x1f5   : > { %v854_v10 = vpop.xlane.xlu2 %853 }
 0x1f6   : > { %v880_v43 = vmul.f32 %v854_v10, %v5122_v33 }
 0x1f8   : > { %v4377_v12 = vpop.eup %4376  ;;  %v5533_v46 = vadd.f32 1e-12, %v880_v43 }
 0x1f9   : > { %v993_v39 = vmul.f32 %v4377_v12, %v895_v4  ;;  %vm999_vm12 = vweird.f32 %v4377_v12 }
 0x1fa   : > { %4378 = vrsqrt.f32 %v5533_v46  ;;  %vm1000_vm14 = vmor %vm998_vm13, %vm999_vm12  ;;  %vm1008_vm15 = vweird.f32 %v5533_v46 }
 0x1fb   : > { %v994_v36 = vmul.f32 %v4377_v12, %v993_v39 }
 0x1fd   : > { %v995_v61 = vmul.f32 0.5, %v994_v36  ;;  %v3545_v36 = vor.u32 %v3824_v55, %v3544_v28  ;;  %v3536_v55 = vld [vmem:[#allocation11 + $0xb0] sm:$0xf] }
 0x1ff   : > { %v996_v56 = vsub.f32 1.5, %v995_v61  ;;  %1828 = vmatpush.bf16.msrb.mxu1 %v3545_v36  ;;  %v3822_v36 = vld [vmem:[#allocation11 + $0xb4] sm:$0xf0] }
 0x200   : > { %v5538_v32 = vpop.eup %4378 }
 0x201   : > { %v997_v5 = vmul.f32 %v4377_v12, %v996_v56  ;;  %v1003_v40 = vmul.f32 %v5538_v32, %v5533_v46  ;;  %vm1009_vm0 = vweird.f32 %v5538_v32 }
 0x202   : > { %vm1010_vm1 = vmor %vm1008_vm15, %vm1009_vm0 }
 0x203   : > { %v1001_v37 = vsel %vm1000_vm14, %v4377_v12, %v997_v5  ;;  %v1004_v15 = vmul.f32 %v5538_v32, %v1003_v40  ;;  %v3805_v40 = vld [vmem:[#allocation11 + $0x34] sm:$0xf] }
 0x204   : > { %v1080_v25 = vmul.f32 %v1001_v37, %v5281_v6  ;;  %v1081_v62 = vmul.f32 %v1001_v37, %v5284_v7  ;;  %v3477_v0 = vor.u32 %v3805_v40, %v3474_v3  ;;  %v3537_v3 = vor.u32 %v3822_v36, %v3536_v55 }
 0x205   : > { %v1005_v4 = vmul.f32 0.5, %v1004_v15 }
 0x206   : > { %v1117_v63 = vmul.f32 %v5325_v49, %v1080_v25  ;;  %v1118_v23 = vmul.f32 %v5328_v18, %v1081_v62  ;;  %v863_v20 = vpop.xlane.xlu2 %862  ;;  %1878 = vmatpush.bf16.msrb.mxu2 %v3477_v0  ;;  %v3819_v0 = vld [vmem:[#allocation11 + $0xa4] sm:$0xf]  ;;  %1829 = vmatpush.bf16.msrb.mxu1 %v3537_v3 }
 0x207   : > { %v883_v43 = vmul.f32 %v863_v20, %v5122_v33  ;;  %v1006_v61 = vsub.f32 1.5, %v1005_v4 }
 0x208   : > { %v1154_v6 = vadd.f32 %v5336_v47, %v1117_v63  ;;  %v1155_v7 = vadd.f32 %v5338_v22, %v1118_v23  ;;  %v857_v12 = vpop.xlane.xlu0 %856 }
 0x209   : > { %v881_v39 = vmul.f32 %v857_v12, %v5122_v33  ;;  %v5564_v60 = vadd.f32 1e-12, %v883_v43  ;;  %v1007_v62 = vmul.f32 %v5538_v32, %v1006_v61 }
 0x20a   : > { %v5556_v21 = vpack.c.bf16 %v1154_v6, %v1152_v42  ;;  %v5558_v10 = vpack.c.bf16 %v1155_v7, %v1153_v48  ;;  %v3821_v7 = vld [vmem:[#allocation11 + $0xb4] sm:$0xf] }
 0x20b   : > { %v5568_v44 = vadd.f32 1e-12, %v881_v39  ;;  %4380 = vrsqrt.f32 %v5564_v60  ;;  %v1011_v48 = vsel %vm1010_vm1, %v5538_v32, %v1007_v62  ;;  %v3541_v20 = vor.u32 %v3821_v7, %v3538_v34  ;;  %v3530_v62 = vld [vmem:[#allocation11 + $0xa8] sm:$0xf0]  ;;  %v3464_v7 = vld [vmem:[#allocation11 + $0x20] sm:$0xf] }
 0x20c   : > { %1410 = vmatmul.bf16.gmra.mxu0 %v5556_v21  ;;  %1459 = vmatmul.bf16.gmra.mxu1 %v5558_v10  ;;  %v860_v37 = vpop.xlane.xlu1 %859  ;;  %v3473_v32 = vor.u32 %v3806_v59, %v3472_v27  ;;  %v3804_v34 = vld [vmem:[#allocation11 + $0x24] sm:$0xf0]  ;;  %vm1038_vm5 = vweird.f32 %v5564_v60 }
 0x20d   : > { %1508 = vmatmul.bf16.gmra.mxu2 %v5556_v21  ;;  %v1391_v56 = vpop.f32.mrf.mxu0  ;;  %v1440_v45 = vpop.f32.mrf.mxu1  ;;  %1557 = vmatmul.bf16.gmra.mxu3 %v5558_v10  ;;  %4382 = vrsqrt.f32 %v5568_v44  ;;  %v882_v15 = vmul.f32 %v860_v37, %v5122_v33  ;;  %v3466_v37 = vld [vmem:[#allocation11 + $0x28] sm:$0xf0]  ;;  %v3820_v59 = vld [vmem:[#allocation11 + $0xa4] sm:$0xf0]  ;;  %vm1018_vm3 = vweird.f32 %v5568_v44 }
 0x20e   : > { %v1392_v5 = vadd.f32 %v1391_v56, %v5561_v53  ;;  %v3803_v56 = vld [vmem:[#allocation11 + $0x24] sm:$0xf]  ;;  %1927 = vmatpush.bf16.msrb.mxu3 %v3541_v20  ;;  %1780 = vmatpush.bf16.msrb.mxu0 %v3473_v32  ;;  %v3528_v20 = vld [vmem:[#allocation11 + $0xa0] sm:$0xf] }
 0x20f   : > { %v5583_v23 = vadd.f32 1e-12, %v882_v15  ;;  %v3469_v27 = vor.u32 %v3803_v56, %v3466_v37 }
 0x210   : > { %v5575_v25 = vadd.f32 %v1440_v45, %v1392_v5  ;;  %v866_v63 = vpop.xlane.xlu0 %865  ;;  %v1082_v45 = vmul.f32 %v1011_v48, %v5305_v16 }
 0x211   : > { %v884_v42 = vmul.f32 %v866_v63, %v5122_v33  ;;  %v5588_v41 = vpop.eup %4380  ;;  %4384 = vrsqrt.f32 %v5583_v23  ;;  %1879 = vmatpush.bf16.msrb.mxu2 %v3469_v27  ;;  %vm1028_vm7 = vweird.f32 %v5583_v23 }
 0x212   : > { %2414 = vrot.lane.b32.xlu2 %v5575_v25, %s4733_s12  ;;  %v1033_v6 = vmul.f32 %v5588_v41, %v5564_v60  ;;  %v1119_v36 = vmul.f32 %v5325_v49, %v1082_v45  ;;  %vm1039_vm6 = vweird.f32 %v5588_v41 }
 0x213   : > { %v5590_v8 = vpop.eup %4382  ;;  %v5598_v12 = vadd.f32 1e-12, %v884_v42  ;;  %vm1040_vm9 = vmor %vm1038_vm5, %vm1039_vm6 }
 0x214   : > { %v1489_v46 = vpop.f32.mrf.mxu2  ;;  %v1538_v28 = vpop.f32.mrf.mxu3  ;;  %v1013_v14 = vmul.f32 %v5590_v8, %v5568_v44  ;;  %v1034_v15 = vmul.f32 %v5588_v41, %v1033_v6  ;;  %v1083_v6 = vmul.f32 %v1011_v48, %v5308_v17  ;;  %vm1019_vm2 = vweird.f32 %v5590_v8  ;;  %v3458_v48 = vld [vmem:[#allocation11 + $0x18] sm:$0xf0] }
 0x215   : > { %v1393_v4 = vpop.f32.mrf.mxu0  ;;  %v1442_v43 = vpop.f32.mrf.mxu1  ;;  %v1490_v39 = vadd.f32 %v1489_v46, %v5586_v2  ;;  %4386 = vrsqrt.f32 %v5598_v12  ;;  %v3529_v17 = vor.u32 %v3820_v59, %v3528_v20  ;;  %vm1020_vm4 = vmor %vm1018_vm3, %vm1019_vm2  ;;  %v1156_v20 = vadd.f32 %v5336_v47, %v1119_v36 }
 0x216   : > { %v1394_v61 = vadd.f32 %v1393_v4, %v5561_v53  ;;  %v1014_v5 = vmul.f32 %v5590_v8, %v1013_v14  ;;  %v869_v40 = vpop.xlane.xlu1 %868  ;;  %v3533_v4 = vor.u32 %v3819_v0, %v3530_v62  ;;  %v3465_v14 = vor.u32 %v3804_v34, %v3464_v7  ;;  %v3817_v7 = vld [vmem:[#allocation11 + $0x94] sm:$0xf]  ;;  %v3522_v34 = vld [vmem:[#allocation11 + $0x98] sm:$0xf0] }
 0x217   : > { %v885_v63 = vmul.f32 %v869_v40, %v5122_v33  ;;  %v5606_v42 = vadd.f32 %v1538_v28, %v1490_v39  ;;  %v5610_v55 = vpop.eup %4384  ;;  %v3801_v28 = vld [vmem:[#allocation11 + $0x14] sm:$0xf]  ;;  %1830 = vmatpush.bf16.msrb.mxu1 %v3529_v17  ;;  %vm1048_vm13 = vweird.f32 %v5598_v12 }
 0x218   : > { %v5608_v46 = vadd.f32 %v1442_v43, %v1394_v61  ;;  %v1015_v16 = vmul.f32 0.5, %v1014_v5  ;;  %v1023_v32 = vmul.f32 %v5610_v55, %v5583_v23  ;;  %1928 = vmatpush.bf16.msrb.mxu3 %v3533_v4  ;;  %v1035_v61 = vmul.f32 0.5, %v1034_v15  ;;  %1781 = vmatpush.bf16.msrb.mxu0 %v3465_v14 }
 0x219   : > { %v5614_v33 = vadd.f32 1e-12, %v885_v63  ;;  %v3461_v62 = vor.u32 %v3801_v28, %v3458_v48  ;;  %v3525_v28 = vor.u32 %v3817_v7, %v3522_v34  ;;  %vm1029_vm8 = vweird.f32 %v5610_v55 }
 0x21a   : > { %2670 = vrot.lane.b32.xlu2 %v5606_v42, %s4733_s12  ;;  %2416 = vrot.lane.b32.xlu0 %v5608_v46, %s4733_s12  ;;  %v1016_v43 = vsub.f32 1.5, %v1015_v16  ;;  %v1024_v37 = vmul.f32 %v5610_v55, %v1023_v32  ;;  %v1120_v16 = vmul.f32 %v5328_v18, %v1083_v6  ;;  %v1036_v27 = vsub.f32 1.5, %v1035_v61  ;;  %vm1030_vm10 = vmor %vm1028_vm7, %vm1029_vm8 }
 0x21b   : > { %4388 = vrsqrt.f32 %v5614_v33  ;;  %1880 = vmatpush.bf16.msrb.mxu2 %v3461_v62  ;;  %v5639_v14 = vpop.eup %4386  ;;  %vm1058_vm11 = vweird.f32 %v5614_v33 }
 0x21c   : > { %v1491_v39 = vpop.f32.mrf.mxu2  ;;  %v1540_v5 = vpop.f32.mrf.mxu3  ;;  %v1017_v3 = vmul.f32 %v5590_v8, %v1016_v43  ;;  %v1025_v63 = vmul.f32 0.5, %v1024_v37  ;;  %v1037_v17 = vmul.f32 %v5588_v41, %v1036_v27  ;;  %1929 = vmatpush.bf16.msrb.mxu3 %v3525_v28  ;;  %v3799_v28 = vld [vmem:[#allocation11 + $0x4] sm:$0xf]  ;;  %vm1049_vm14 = vweird.f32 %v5639_v14 }
 0x21d   : > { %v1492_v56 = vadd.f32 %v1491_v39, %v5586_v2  ;;  %v1396_v40 = vpop.f32.mrf.mxu0  ;;  %v1445_v0 = vpop.f32.mrf.mxu1  ;;  %v1157_v39 = vadd.f32 %v5338_v22, %v1120_v16  ;;  %vm1050_vm0 = vmor %vm1048_vm13, %vm1049_vm14 }
 0x21e   : > { %v1021_v15 = vsel %vm1020_vm4, %v5590_v8, %v1017_v3  ;;  %v1026_v8 = vsub.f32 1.5, %v1025_v63  ;;  %v1397_v3 = vadd.f32 %v1396_v40, %v5561_v53  ;;  %v3802_v63 = vld [vmem:[#allocation11 + $0x14] sm:$0xf0] }
 0x21f   : > { %v5631_v45 = vadd.f32 %v1540_v5, %v1492_v56  ;;  %v1084_v44 = vmul.f32 %v1021_v15, %v5378_v9  ;;  %v1085_v4 = vmul.f32 %v1021_v15, %v5381_v30  ;;  %v1043_v5 = vmul.f32 %v5639_v14, %v5598_v12  ;;  %v3456_v15 = vld [vmem:[#allocation11 + $0x10] sm:$0xf]  ;;  %v3861_v12 = vld [vmem:[#allocation13 + $0xf4] sm:$0xf] }
 0x220   : > { %v1027_v30 = vmul.f32 %v5610_v55, %v1026_v8  ;;  %v3818_v8 = vld [vmem:[#allocation11 + $0x94] sm:$0xf0] }
 0x221   : > { %2672 = vrot.lane.b32.xlu1 %v5631_v45, %s4733_s12  ;;  %v5643_v59 = vpop.eup %4388  ;;  %v1121_v6 = vmul.f32 %v5325_v49, %v1084_v44  ;;  %v1122_v9 = vmul.f32 %v5328_v18, %v1085_v4  ;;  %v1041_v44 = vsel %vm1040_vm9, %v5588_v41, %v1037_v17  ;;  %v3457_v4 = vor.u32 %v3802_v63, %v3456_v15  ;;  %v3512_v63 = vld [vmem:[#allocation11 + $0x80] sm:$0xf] }
 0x222   : > { %v1053_v43 = vmul.f32 %v5643_v59, %v5614_v33  ;;  %v1031_v60 = vsel %vm1030_vm10, %v5610_v55, %v1027_v30  ;;  %v1044_v23 = vmul.f32 %v5639_v14, %v1043_v5  ;;  %v5684_v55 = vadd.f32 %v1445_v0, %v1397_v3  ;;  %v3450_v30 = vld [vmem:[#allocation11 + $0x8] sm:$0xf0] }
 0x223   : > { %v1158_v48 = vadd.f32 %v5336_v47, %v1121_v6  ;;  %v1159_v36 = vadd.f32 %v5338_v22, %v1122_v9  ;;  %v1086_v9 = vmul.f32 %v1031_v60, %v5414_v50  ;;  %v1087_v41 = vmul.f32 %v1031_v60, %v5417_v24  ;;  %1782 = vmatpush.bf16.msrb.mxu0 %v3457_v4  ;;  %v3816_v60 = vld [vmem:[#allocation11 + $0x84] sm:$0xf0] }
 0x224   : > { %v1494_v32 = vpop.f32.mrf.mxu2  ;;  %v1543_v61 = vpop.f32.mrf.mxu3  ;;  %v1054_v16 = vmul.f32 %v5643_v59, %v1053_v43  ;;  %v1088_v17 = vmul.f32 %v1041_v44, %v5358_v54  ;;  %v1089_v50 = vmul.f32 %v1041_v44, %v5373_v38  ;;  %v1045_v5 = vmul.f32 0.5, %v1044_v23 }
 0x225   : > { %v1398_v56 = vpop.f32.mrf.mxu0  ;;  %v1495_v37 = vadd.f32 %v1494_v32, %v5586_v2  ;;  %v1447_v62 = vpop.f32.mrf.mxu1  ;;  %v5665_v7 = vpack.c.bf16 %v1158_v48, %v1156_v20  ;;  %v5667_v34 = vpack.c.bf16 %v1159_v36, %v1157_v39  ;;  %v3520_v20 = vld [vmem:[#allocation11 + $0x90] sm:$0xf]  ;;  %v3815_v39 = vld [vmem:[#allocation11 + $0x84] sm:$0xf]  ;;  %v3514_v36 = vld [vmem:[#allocation11 + $0x88] sm:$0xf0]  ;;  %v3453_v15 = vor.u32 %v3799_v28, %v3450_v30 }
 0x226   : > { %v1399_v40 = vadd.f32 %v1398_v56, %v5561_v53  ;;  %v1055_v43 = vmul.f32 0.5, %v1054_v16  ;;  %v3521_v32 = vor.u32 %v3818_v8, %v3520_v20  ;;  %v3800_v56 = vld [vmem:[#allocation11 + $0x4] sm:$0xf0]  ;;  %v1123_v54 = vmul.f32 %v5325_v49, %v1086_v9 }
 0x227   : > { %v5675_v27 = vadd.f32 %v1543_v61, %v1495_v37  ;;  %1415 = vmatmul.bf16.gmra.mxu0 %v5665_v7  ;;  %1464 = vmatmul.bf16.gmra.mxu1 %v5667_v34  ;;  %v3448_v61 = vld [vmem:[#allocation11] sm:$0xf]  ;;  %v1124_v38 = vmul.f32 %v5328_v18, %v1087_v41  ;;  %v3517_v44 = vor.u32 %v3815_v39, %v3514_v36  ;;  %vm1059_vm12 = vweird.f32 %v5643_v59 }
 0x228   : > { %1513 = vmatmul.bf16.gmra.mxu2 %v5665_v7  ;;  %1562 = vmatmul.bf16.gmra.mxu3 %v5667_v34  ;;  %v5686_v6 = vadd.f32 %v1447_v62, %v1399_v40  ;;  %v1056_v16 = vsub.f32 1.5, %v1055_v43  ;;  %v3449_v4 = vor.u32 %v3800_v56, %v3448_v61  ;;  %v1125_v20 = vmul.f32 %v5325_v49, %v1088_v17  ;;  %vm1060_vm15 = vmor %vm1058_vm11, %vm1059_vm12 }
 0x229   : > { %2674 = vrot.lane.b32.xlu0 %v5675_v27, %s4733_s12  ;;  %2418 = vrot.lane.b32.xlu1 %v5684_v55, %s4733_s12  ;;  %v1126_v8 = vmul.f32 %v5328_v18, %v1089_v50  ;;  %v3513_v23 = vor.u32 %v3816_v60, %v3512_v63  ;;  %v1160_v9 = vadd.f32 %v5336_v47, %v1123_v54  ;;  %v3634_v63 = vld [vmem:[#allocation13 + $0x78] sm:$0xf0] }
 0x22a   : > { %2420 = vrot.lane.b32.xlu2 %v5686_v6, %s4733_s12  ;;  %1831 = vmatpush.bf16.msrb.mxu1 %v3521_v32  ;;  %v1161_v41 = vadd.f32 %v5338_v22, %v1124_v38  ;;  %v1057_v30 = vmul.f32 %v5643_v59, %v1056_v16  ;;  %v1162_v32 = vadd.f32 %v5336_v47, %v1125_v20  ;;  %v3698_v38 = vld [vmem:[#allocation13 + $0xf8] sm:$0xf0]  ;;  %v3632_v16 = vld [vmem:[#allocation13 + $0x70] sm:$0xf] }
 0x22b   : > { %1881 = vmatpush.bf16.msrb.mxu2 %v3453_v15  ;;  %1930 = vmatpush.bf16.msrb.mxu3 %v3517_v44  ;;  %v1163_v39 = vadd.f32 %v5338_v22, %v1126_v8  ;;  %v3845_v15 = vld [vmem:[#allocation13 + $0x74] sm:$0xf]  ;;  %v3846_v44 = vld [vmem:[#allocation13 + $0x74] sm:$0xf0]  ;;  %v3696_v8 = vld [vmem:[#allocation13 + $0xf0] sm:$0xf] }
 0x22c   : > { %v1496_v0 = vpop.f32.mrf.mxu2  ;;  %v1545_v24 = vpop.f32.mrf.mxu3  ;;  %1783 = vmatpush.bf16.msrb.mxu0 %v3449_v4  ;;  %v5728_v56 = vpack.c.bf16 %v1162_v32, %v1160_v9  ;;  %v3701_v4 = vor.u32 %v3861_v12, %v3698_v38  ;;  %v3633_v20 = vor.u32 %v3846_v44, %v3632_v16  ;;  %v3859_v16 = vld [vmem:[#allocation13 + $0xe4] sm:$0xf] }
 0x22d   : > { %v1401_v48 = vpop.f32.mrf.mxu0  ;;  %v1497_v3 = vadd.f32 %v1496_v0, %v5586_v2  ;;  %v1450_v62 = vpop.f32.mrf.mxu1  ;;  %v1046_v0 = vsub.f32 1.5, %v1045_v5  ;;  %v5730_v5 = vpack.c.bf16 %v1163_v39, %v1161_v41 }
 0x22e   : > { %v1402_v37 = vadd.f32 %v1401_v48, %v5561_v53  ;;  %1832 = vmatpush.bf16.msrb.mxu1 %v3513_v23  ;;  %v3862_v23 = vld [vmem:[#allocation13 + $0xf4] sm:$0xf0] }
 0x22f   : > { %v5708_v28 = vadd.f32 %v1545_v24, %v1497_v3  ;;  %v1047_v48 = vmul.f32 %v5639_v14, %v1046_v0  ;;  %v1061_v3 = vsel %vm1060_vm15, %v5643_v59, %v1057_v30  ;;  %v3637_v59 = vor.u32 %v3845_v15, %v3634_v63  ;;  %2317 = vmatpush.bf16.msra.mxu3 %v3701_v4  ;;  %v3624_v4 = vld [vmem:[#allocation13 + $0x60] sm:$0xf] }
 0x230   : > { %v5702_v40 = vadd.f32 %v1450_v62, %v1402_v37  ;;  %v1092_v60 = vmul.f32 %v1061_v3, %v5434_v26  ;;  %v1093_v54 = vmul.f32 %v1061_v3, %v5437_v29  ;;  %v3697_v30 = vor.u32 %v3862_v23, %v3696_v8  ;;  %2170 = vmatpush.bf16.msra.mxu0 %v3633_v20  ;;  %v3844_v20 = vld [vmem:[#allocation13 + $0x64] sm:$0xf0] }
 0x231   : > { %v1051_v62 = vsel %vm1050_vm0, %v5639_v14, %v1047_v48  ;;  %2268 = vmatpush.bf16.msra.mxu2 %v3637_v59 }
 0x232   : > { %2422 = vrot.lane.b32.xlu0 %v5702_v40, %s4733_s12  ;;  %2676 = vrot.lane.b32.xlu2 %v5708_v28, %s4733_s12  ;;  %v1090_v0 = vmul.f32 %v1051_v62, %v5403_v51  ;;  %v1091_v26 = vmul.f32 %v1051_v62, %v5406_v52  ;;  %v1129_v39 = vmul.f32 %v5325_v49, %v1092_v60 }
 0x233   : > { %2219 = vmatpush.bf16.msra.mxu1 %v3697_v30 }
 0x234   : > { %v1499_v43 = vpop.f32.mrf.mxu2  ;;  %v1548_v50 = vpop.f32.mrf.mxu3  ;;  %v1127_v52 = vmul.f32 %v5325_v49, %v1090_v0  ;;  %v1166_v48 = vadd.f32 %v5336_v47, %v1129_v39  ;;  %v3625_v0 = vor.u32 %v3844_v20, %v3624_v4  ;;  %v3672_v20 = vld [vmem:[#allocation13 + $0xc0] sm:$0xf] }
 0x235   : > { %v1500_v17 = vadd.f32 %v1499_v43, %v5586_v2  ;;  %v1403_v24 = vpop.f32.mrf.mxu0  ;;  %v1452_v61 = vpop.f32.mrf.mxu1 }
 0x236   : > { %v1404_v36 = vadd.f32 %v1403_v24, %v5561_v53  ;;  %v1128_v24 = vmul.f32 %v5328_v18, %v1091_v26  ;;  %v1164_v3 = vadd.f32 %v5336_v47, %v1127_v52  ;;  %v3843_v47 = vld [vmem:[#allocation13 + $0x64] sm:$0xf]  ;;  %v3688_v26 = vld [vmem:[#allocation13 + $0xe0] sm:$0xf]  ;;  %2171 = vmatpush.bf16.msra.mxu0 %v3625_v0  ;;  %v3857_v52 = vld [vmem:[#allocation13 + $0xd4] sm:$0xf] }
 0x237   : > { %v5736_v33 = vadd.f32 %v1548_v50, %v1500_v17  ;;  %1420 = vmatmul.bf16.gmra.mxu0 %v5728_v56  ;;  %1469 = vmatmul.bf16.gmra.mxu1 %v5730_v5  ;;  %v1130_v17 = vmul.f32 %v5328_v18, %v1093_v54  ;;  %v3837_v0 = vld [vmem:[#allocation13 + $0x34] sm:$0xf] }
 0x238   : > { %v5739_v37 = vadd.f32 %v1452_v61, %v1404_v36  ;;  %1518 = vmatmul.bf16.gmra.mxu2 %v5728_v56  ;;  %1567 = vmatmul.bf16.gmra.mxu3 %v5730_v5  ;;  %v1165_v62 = vadd.f32 %v5338_v22, %v1128_v24  ;;  %v5774_v12 = vpack.c.bf16 %v1166_v48, %v1164_v3  ;;  %v3682_v24 = vld [vmem:[#allocation13 + $0xd8] sm:$0xf0]  ;;  %v3616_v48 = vld [vmem:[#allocation13 + $0x50] sm:$0xf] }
 0x239   : > { %2678 = vrot.lane.b32.xlu1 %v5736_v33, %s4733_s12  ;;  %v1167_v36 = vadd.f32 %v5338_v22, %v1130_v17  ;;  %v3626_v22 = vld [vmem:[#allocation13 + $0x68] sm:$0xf0]  ;;  %v3680_v3 = vld [vmem:[#allocation13 + $0xd0] sm:$0xf] }
 0x23a   : > { %2424 = vrot.lane.b32.xlu2 %v5739_v37, %s4733_s12  ;;  %v3629_v44 = vor.u32 %v3843_v47, %v3626_v22  ;;  %v3674_v22 = vld [vmem:[#allocation13 + $0xc8] sm:$0xf0] }
 0x23b   : > { %v5776_v60 = vpack.c.bf16 %v1167_v36, %v1165_v62  ;;  %v3685_v36 = vor.u32 %v3857_v52, %v3682_v24  ;;  %v3858_v62 = vld [vmem:[#allocation13 + $0xd4] sm:$0xf0]  ;;  %v3664_v24 = vld [vmem:[#allocation13 + $0xb0] sm:$0xf] }
 0x23c   : > { %v1501_v14 = vpop.f32.mrf.mxu2  ;;  %v1550_v9 = vpop.f32.mrf.mxu3  ;;  %2269 = vmatpush.bf16.msra.mxu2 %v3629_v44  ;;  %v3840_v44 = vld [vmem:[#allocation13 + $0x44] sm:$0xf0] }
 0x23d   : > { %v1502_v29 = vadd.f32 %v1501_v14, %v5586_v2  ;;  %v1406_v41 = vpop.f32.mrf.mxu0  ;;  %v1455_v32 = vpop.f32.mrf.mxu1  ;;  %v3690_v14 = vld [vmem:[#allocation13 + $0xe8] sm:$0xf0] }
 0x23e   : > { %v1407_v43 = vadd.f32 %v1406_v41, %v5561_v53  ;;  %v3693_v23 = vor.u32 %v3859_v16, %v3690_v14  ;;  %v3608_v16 = vld [vmem:[#allocation13 + $0x40] sm:$0xf] }
 0x23f   : > { %v5758_v50 = vadd.f32 %v1550_v9, %v1502_v29  ;;  %v3860_v29 = vld [vmem:[#allocation13 + $0xe4] sm:$0xf0]  ;;  %v3841_v9 = vld [vmem:[#allocation13 + $0x54] sm:$0xf]  ;;  %v3609_v4 = vor.u32 %v3840_v44, %v3608_v16  ;;  %v3851_v16 = vld [vmem:[#allocation13 + $0xa4] sm:$0xf] }
 0x240   : > { %v5760_v51 = vadd.f32 %v1455_v32, %v1407_v43  ;;  %v3689_v30 = vor.u32 %v3860_v29, %v3688_v26  ;;  %v3618_v43 = vld [vmem:[#allocation13 + $0x58] sm:$0xf0]  ;;  %2318 = vmatpush.bf16.msra.mxu3 %v3693_v23 }
 0x241   : > { %2680 = vrot.lane.b32.xlu0 %v5758_v50, %s4733_s12  ;;  %v3621_v39 = vor.u32 %v3841_v9, %v3618_v43  ;;  %v3602_v26 = vld [vmem:[#allocation13 + $0x38] sm:$0xf0]  ;;  %v3853_v9 = vld [vmem:[#allocation13 + $0xb4] sm:$0xf] }
 0x242   : > { %2426 = vrot.lane.b32.xlu1 %v5760_v51, %s4733_s12  ;;  %2220 = vmatpush.bf16.msra.mxu1 %v3689_v30  ;;  %v3605_v29 = vor.u32 %v3837_v0, %v3602_v26 }
 0x243   : > { %2270 = vmatpush.bf16.msra.mxu2 %v3621_v39  ;;  %v3838_v39 = vld [vmem:[#allocation13 + $0x34] sm:$0xf0] }
 0x244   : > { %v1504_v61 = vpop.f32.mrf.mxu2  ;;  %v1553_v49 = vpop.f32.mrf.mxu3  ;;  %2319 = vmatpush.bf16.msra.mxu3 %v3685_v36 }
 0x245   : > { %v1505_v15 = vadd.f32 %v1504_v61, %v5586_v2  ;;  %v1408_v63 = vpop.f32.mrf.mxu0  ;;  %v1457_v59 = vpop.f32.mrf.mxu1  ;;  %v3842_v61 = vld [vmem:[#allocation13 + $0x54] sm:$0xf0] }
 0x246   : > { %v1409_v18 = vadd.f32 %v1408_v63, %v5561_v53  ;;  %v3839_v63 = vld [vmem:[#allocation13 + $0x44] sm:$0xf] }
 0x247   : > { %v5778_v54 = vadd.f32 %v1553_v49, %v1505_v15  ;;  %1425 = vmatmul.bf16.gmra.mxu0 %v5774_v12  ;;  %1474 = vmatmul.bf16.gmra.mxu1 %v5776_v60  ;;  %v3617_v15 = vor.u32 %v3842_v61, %v3616_v48  ;;  %v3681_v49 = vor.u32 %v3858_v62, %v3680_v3  ;;  %v3854_v48 = vld [vmem:[#allocation13 + $0xb4] sm:$0xf0]  ;;  %v2382_v3 = vld [vmem:[%s5064_s10] sm:$0xff] }
 0x248   : > { %v5780_v38 = vadd.f32 %v1457_v59, %v1409_v18  ;;  %1523 = vmatmul.bf16.gmra.mxu2 %v5774_v12  ;;  %1572 = vmatmul.bf16.gmra.mxu3 %v5776_v60  ;;  %v3610_v18 = vld [vmem:[#allocation13 + $0x48] sm:$0xf0]  ;;  %v3855_v59 = vld [vmem:[#allocation13 + $0xc4] sm:$0xf]  ;;  %v3665_v36 = vor.u32 %v3854_v48, %v3664_v24 }
 0x249   : > { %2682 = vrot.lane.b32.xlu2 %v5778_v54, %s4733_s12  ;;  %2172 = vmatpush.bf16.msra.mxu0 %v3617_v15  ;;  %v3613_v47 = vor.u32 %v3839_v63, %v3610_v18  ;;  %v3677_v14 = vor.u32 %v3855_v59, %v3674_v22  ;;  %v2367_v63 = vld [vmem:[%s5058_s24 + $0x8] sm:$0xff] }
 0x24a   : > { %2428 = vrot.lane.b32.xlu0 %v5780_v38, %s4733_s12  ;;  %2221 = vmatpush.bf16.msra.mxu1 %v3681_v49  ;;  %v2366_v49 = vld [vmem:[%s5058_s24] sm:$0xff]  ;;  %v5816_v59 = vld [vmem:[%s5064_s10 + $0x8] sm:$0xff] }
 0x24b   : > { %2271 = vmatpush.bf16.msra.mxu2 %v3613_v47  ;;  %2320 = vmatpush.bf16.msra.mxu3 %v3677_v14  ;;  %v3835_v47 = vld [vmem:[#allocation13 + $0x24] sm:$0xf]  ;;  %v3594_v22 = vld [vmem:[#allocation13 + $0x28] sm:$0xf0]  ;;  %v2398_v26 = vmul.f32 %v2366_v49, %v5575_v25  ;;  %v2654_v48 = vmul.f32 %v2366_v49, %v5606_v42  ;;  %v3852_v42 = vld [vmem:[#allocation13 + $0xa4] sm:$0xf0] }
 0x24c   : > { %v1506_v8 = vpop.f32.mrf.mxu2  ;;  %v1555_v32 = vpop.f32.mrf.mxu3 }
 0x24d   : > { %v1507_v41 = vadd.f32 %v1506_v8, %v5586_v2  ;;  %v3856_v8 = vld [vmem:[#allocation13 + $0xc4] sm:$0xf0]  ;;  %2173 = vmatpush.bf16.msra.mxu0 %v3609_v4  ;;  %v3597_v4 = vor.u32 %v3835_v47, %v3594_v22  ;;  %v3656_v22 = vld [vmem:[#allocation13 + $0xa0] sm:$0xf] }
 0x24e   : > { %v3673_v23 = vor.u32 %v3856_v8, %v3672_v20  ;;  %v3658_v20 = vld [vmem:[#allocation13 + $0xa8] sm:$0xf0]  ;;  %v3836_v47 = vld [vmem:[#allocation13 + $0x24] sm:$0xf0]  ;;  %v3657_v49 = vor.u32 %v3852_v42, %v3656_v22 }
 0x24f   : > { %v5791_v17 = vadd.f32 %v1555_v32, %v1507_v41  ;;  %2272 = vmatpush.bf16.msra.mxu2 %v3605_v29  ;;  %v3666_v41 = vld [vmem:[#allocation13 + $0xb8] sm:$0xf0]  ;;  %v3600_v32 = vld [vmem:[#allocation13 + $0x30] sm:$0xf]  ;;  %v3661_v0 = vor.u32 %v3851_v16, %v3658_v20  ;;  %v2399_v29 = vmul.f32 %v2367_v63, %v5608_v46  ;;  %v2655_v16 = vmul.f32 %v2367_v63, %v5631_v45 }
 0x250   : > { %2222 = vmatpush.bf16.msra.mxu1 %v3673_v23  ;;  %v3669_v43 = vor.u32 %v3853_v9, %v3666_v41  ;;  %v3601_v52 = vor.u32 %v3838_v39, %v3600_v32 }
 0x251   : > { %2684 = vrot.lane.b32.xlu1 %v5791_v17, %s4733_s12 }
 0x252   : > { %2321 = vmatpush.bf16.msra.mxu3 %v3669_v43  ;;  %2174 = vmatpush.bf16.msra.mxu0 %v3601_v52 }
 0x253   : > { %2273 = vmatpush.bf16.msra.mxu2 %v3597_v4 }
 0x254   : > { %2223 = vmatpush.bf16.msra.mxu1 %v3665_v36 }
 0x256   : > { %2322 = vmatpush.bf16.msra.mxu3 %v3661_v0 }
 0x257   : > { %1784 = vmatmul.bf16.vlgmr.msrb.gmra.mxu0 %v5368_v1  ;;  %1833 = vmatmul.bf16.vlgmr.msrb.gmra.mxu1 %v5370_v35 }
 0x258   : > { %1882 = vmatmul.bf16.vlgmr.msrb.gmra.mxu2 %v5368_v1  ;;  %1931 = vmatmul.bf16.vlgmr.msrb.gmra.mxu3 %v5370_v35 }
 0x259   : > { %2224 = vmatpush.bf16.msra.mxu1 %v3657_v49 }
 0x267   : > { %1789 = vmatmul.bf16.gmra.mxu0 %v5466_v13  ;;  %1838 = vmatmul.bf16.gmra.mxu1 %v5468_v58 }
 0x268   : > { %1887 = vmatmul.bf16.gmra.mxu2 %v5466_v13  ;;  %1936 = vmatmul.bf16.gmra.mxu3 %v5468_v58 }
 0x26c   : > { %v2415_v30 = vpop.permute.xlu2 %2414 }
 0x26d   : > { %v2446_v44 = vmul.f32 %v2415_v30, %v2382_v3 }
 0x26f   : > { %v2462_v41 = vadd.f32 %v2446_v44, %v2398_v26  ;;  %v2385_v26 = vld [vmem:[%s5064_s10 + $0x18] sm:$0xff] }
 0x274   : > { %v2671_v61 = vpop.permute.xlu2 %2670 }
 0x275   : > { %v2702_v25 = vmul.f32 %v2671_v61, %v2382_v3 }
 0x277   : > { %1794 = vmatmul.bf16.gmra.mxu0 %v5500_v11  ;;  %1843 = vmatmul.bf16.gmra.mxu1 %v5502_v19  ;;  %v2718_v4 = vadd.f32 %v2702_v25, %v2654_v48 }
 0x278   : > { %1892 = vmatmul.bf16.gmra.mxu2 %v5500_v11  ;;  %1941 = vmatmul.bf16.gmra.mxu3 %v5502_v19 }
 0x284   : > { %v2421_v8 = vpop.permute.xlu2 %2420 }
 0x285   : > { %v2449_v48 = vmul.f32 %v2421_v8, %v2385_v26 }
 0x287   : > { %1799 = vmatmul.bf16.gmra.mxu0 %v5522_v57  ;;  %1848 = vmatmul.bf16.gmra.mxu1 %v5524_v31 }
 0x288   : > { %1897 = vmatmul.bf16.gmra.mxu2 %v5522_v57  ;;  %1946 = vmatmul.bf16.gmra.mxu3 %v5524_v31 }
 0x289   : > { %v1411_v62 = vpop.f32.mrf.mxu0  ;;  %v1460_v15 = vpop.f32.mrf.mxu1 }
 0x28a   : > { %v1412_v18 = vadd.f32 %v1411_v62, %v5561_v53 }
 0x28c   : > { %v5818_v14 = vadd.f32 %v1460_v15, %v1412_v18  ;;  %v2417_v23 = vpop.permute.xlu0 %2416  ;;  %v3592_v18 = vld [vmem:[#allocation13 + $0x20] sm:$0xf]  ;;  %v2677_v45 = vpop.permute.xlu2 %2676 }
 0x28d   : > { %v2447_v9 = vmul.f32 %v2417_v23, %v5816_v59  ;;  %v3593_v3 = vor.u32 %v3836_v47, %v3592_v18  ;;  %v2705_v25 = vmul.f32 %v2677_v45, %v2385_v26  ;;  %v2370_v45 = vld [vmem:[%s5058_s24 + $0x20] sm:$0xff] }
 0x28e   : > { %2430 = vrot.lane.b32.xlu2 %v5818_v14, %s4733_s12 }
 0x28f   : > { %v2463_v30 = vadd.f32 %v2447_v9, %v2399_v29  ;;  %2175 = vmatpush.bf16.msra.mxu0 %v3593_v3  ;;  %v5853_v9 = vld [vmem:[%s5064_s10 + $0x10] sm:$0xff] }
 0x290   : > { %v1509_v43 = vpop.f32.mrf.mxu2  ;;  %v1558_v39 = vpop.f32.mrf.mxu3 }
 0x291   : > { %v1510_v32 = vadd.f32 %v1509_v43, %v5586_v2  ;;  %v1413_v52 = vpop.f32.mrf.mxu0  ;;  %v3866_v24 = vpack.c.bf16 %v2463_v30, %v2462_v41  ;;  %v1462_v62 = vpop.f32.mrf.mxu1  ;;  %v3833_v30 = vld [vmem:[#allocation13 + $0x14] sm:$0xf]  ;;  %v3586_v43 = vld [vmem:[#allocation13 + $0x18] sm:$0xf0] }
 0x292   : > { %v1414_v46 = vadd.f32 %v1413_v52, %v5561_v53  ;;  %v5861_v52 = vld [vmem:[%s5058_s24 + $0x18] sm:$0xff] }
 0x293   : > { %v5831_v36 = vadd.f32 %v1558_v39, %v1510_v32  ;;  %v2673_v15 = vpop.permute.xlu1 %2672  ;;  %3867 = vst [vmem:[%s5835_s14] sm:$0xff] %v3866_v24   ;;  %v3849_v32 = vld [vmem:[#allocation13 + $0x94] sm:$0xf]  ;;  %v3589_v24 = vor.u32 %v3833_v30, %v3586_v43  ;;  %v2657_v47 = vmul.f32 %v5861_v52, %v5708_v28  ;;  %v2387_v28 = vld [vmem:[%s5064_s10 + $0x28] sm:$0xff]  ;;  %v3648_v30 = vld [vmem:[#allocation13 + $0x90] sm:$0xf] }
 0x294   : > { %v5838_v44 = vadd.f32 %v1462_v62, %v1414_v46  ;;  %v2703_v61 = vmul.f32 %v2673_v15, %v5816_v59  ;;  %v5858_v39 = vld [vmem:[%s5058_s24 + $0x10] sm:$0xff]  ;;  %v3650_v46 = vld [vmem:[#allocation13 + $0x98] sm:$0xf0] }
 0x295   : > { %2686 = vrot.lane.b32.xlu0 %v5831_v36, %s4733_s12  ;;  %v3653_v15 = vor.u32 %v3849_v32, %v3650_v46  ;;  %v2656_v18 = vmul.f32 %v5858_v39, %v5675_v27  ;;  %2274 = vmatpush.bf16.msra.mxu2 %v3589_v24  ;;  %v2400_v8 = vmul.f32 %v5858_v39, %v5684_v55  ;;  %v3584_v55 = vld [vmem:[#allocation13 + $0x10] sm:$0xf]  ;;  %v3850_v32 = vld [vmem:[#allocation13 + $0x94] sm:$0xf0] }
 0x296   : > { %v2719_v20 = vadd.f32 %v2703_v61, %v2655_v16  ;;  %2432 = vrot.lane.b32.xlu1 %v5838_v44, %s4733_s12  ;;  %v2401_v61 = vmul.f32 %v5861_v52, %v5686_v6  ;;  %v2721_v27 = vadd.f32 %v2705_v25, %v2657_v47  ;;  %v3649_v24 = vor.u32 %v3850_v32, %v3648_v30 }
 0x297   : > { %1804 = vmatmul.bf16.gmra.mxu0 %v5556_v21  ;;  %1853 = vmatmul.bf16.gmra.mxu1 %v5558_v10  ;;  %v2402_v46 = vmul.f32 %v2370_v45, %v5702_v40 }
 0x298   : > { %v3986_v63 = vpack.c.bf16 %v2719_v20, %v2718_v4  ;;  %v1511_v23 = vpop.f32.mrf.mxu2  ;;  %1902 = vmatmul.bf16.gmra.mxu2 %v5556_v21  ;;  %1951 = vmatmul.bf16.gmra.mxu3 %v5558_v10  ;;  %v1560_v29 = vpop.f32.mrf.mxu3  ;;  %v2465_v49 = vadd.f32 %v2449_v48, %v2401_v61  ;;  %v3578_v61 = vld [vmem:[#allocation13 + $0x8] sm:$0xf0] }
 0x299   : > { %v1512_v0 = vadd.f32 %v1511_v23, %v5586_v2  ;;  %2323 = vmatpush.bf16.msra.mxu3 %v3653_v15  ;;  %v2425_v4 = vpop.permute.xlu2 %2424  ;;  %2225 = vmatpush.bf16.msra.mxu1 %v3649_v24  ;;  %v3576_v24 = vld [vmem:[#allocation13] sm:$0xf] }
 0x29a   : > { %4124 = vst [vmem:[%s5835_s14 + $0x40] sm:$0xff] %v3986_v63   ;;  %v2371_v63 = vld [vmem:[%s5058_s24 + $0x28] sm:$0xff]  ;;  %v2451_v6 = vmul.f32 %v2425_v4, %v2387_v28 }
 0x29b   : > { %v5855_v41 = vadd.f32 %v1560_v29, %v1512_v0  ;;  %v2675_v62 = vpop.permute.xlu0 %2674  ;;  %v2419_v22 = vpop.permute.xlu1 %2418  ;;  %v2386_v0 = vld [vmem:[%s5064_s10 + $0x20] sm:$0xff]  ;;  %v3834_v29 = vld [vmem:[#allocation13 + $0x14] sm:$0xf0]  ;;  %v2403_v48 = vmul.f32 %v2371_v63, %v5739_v37 }
 0x29c   : > { %v2704_v16 = vmul.f32 %v2675_v62, %v5853_v9  ;;  %v2448_v3 = vmul.f32 %v2419_v22, %v5853_v9  ;;  %v3585_v43 = vor.u32 %v3834_v29, %v3584_v55  ;;  %v3831_v37 = vld [vmem:[#allocation13 + $0x4] sm:$0xf] }
 0x29d   : > { %2688 = vrot.lane.b32.xlu2 %v5855_v41, %s4733_s12  ;;  %v2467_v22 = vadd.f32 %v2451_v6, %v2403_v48  ;;  %v3640_v48 = vld [vmem:[#allocation13 + $0x80] sm:$0xf] }
 0x29e   : > { %v2720_v42 = vadd.f32 %v2704_v16, %v2656_v18  ;;  %v2464_v20 = vadd.f32 %v2448_v3, %v2400_v8  ;;  %2176 = vmatpush.bf16.msra.mxu0 %v3585_v43  ;;  %v3581_v3 = vor.u32 %v3831_v37, %v3578_v61 }
 0x2a0   : > { %v3991_v23 = vpack.c.bf16 %v2721_v27, %v2720_v42  ;;  %v3871_v26 = vpack.c.bf16 %v2465_v49, %v2464_v20  ;;  %v3847_v27 = vld [vmem:[#allocation13 + $0x84] sm:$0xf]  ;;  %v3642_v42 = vld [vmem:[#allocation13 + $0x88] sm:$0xf0]  ;;  %2275 = vmatpush.bf16.msra.mxu2 %v3581_v3 }
 0x2a1   : > { %v3645_v20 = vor.u32 %v3847_v27, %v3642_v42 }
 0x2a2   : > { %4125 = vst [vmem:[%s5835_s14 + $0x48] sm:$0xff] %v3991_v23  }
 0x2a3   : > { %4103 = vst [vmem:[%s5835_s14 + $0x8] sm:$0xff] %v3871_v26   ;;  %2324 = vmatpush.bf16.msra.mxu3 %v3645_v20  ;;  %v5927_v20 = vld [vmem:[%s5064_s10 + $0x30] sm:$0xff] }
 0x2a4   : > { %v2423_v25 = vpop.permute.xlu0 %2422  ;;  %v1416_v62 = vpop.f32.mrf.mxu0  ;;  %6674 = vst [vmem:[#allocation45_spill] sm:$0xff] %v5927_v20 }
 0x2a5   : > { %v1465_v15 = vpop.f32.mrf.mxu1  ;;  %v2450_v18 = vmul.f32 %v2423_v25, %v2386_v0  ;;  %v1417_v47 = vadd.f32 %v1416_v62, %v5561_v53  ;;  %v2658_v62 = vmul.f32 %v2370_v45, %v5736_v33 }
 0x2a7   : > { %v2466_v16 = vadd.f32 %v2450_v18, %v2402_v46  ;;  %v5884_v8 = vadd.f32 %v1465_v15, %v1417_v47  ;;  %1809 = vmatmul.bf16.gmra.mxu0 %v5665_v7  ;;  %1858 = vmatmul.bf16.gmra.mxu1 %v5667_v34  ;;  %v3832_v46 = vld [vmem:[#allocation13 + $0x4] sm:$0xf0]  ;;  %v2659_v15 = vmul.f32 %v2371_v63, %v5758_v50 }
 0x2a8   : > { %1907 = vmatmul.bf16.gmra.mxu2 %v5665_v7  ;;  %1956 = vmatmul.bf16.gmra.mxu3 %v5667_v34  ;;  %v3577_v47 = vor.u32 %v3832_v46, %v3576_v24  ;;  %v2683_v24 = vpop.permute.xlu2 %2682 }
 0x2a9   : > { %v3876_v40 = vpack.c.bf16 %v2467_v22, %v2466_v16  ;;  %2434 = vrot.lane.b32.xlu0 %v5884_v8, %s4733_s12  ;;  %v3848_v22 = vld [vmem:[#allocation13 + $0x84] sm:$0xf0] }
 0x2aa   : > { %v3641_v37 = vor.u32 %v3848_v22, %v3640_v48  ;;  %2177 = vmatpush.bf16.msra.mxu0 %v3577_v47 }
 0x2ab   : > { %4104 = vst [vmem:[%s5835_s14 + $0x10] sm:$0xff] %v3876_v40   ;;  %v1514_v49 = vpop.f32.mrf.mxu2  ;;  %v1563_v4 = vpop.f32.mrf.mxu3 }
 0x2ac   : > { %v1515_v23 = vadd.f32 %v1514_v49, %v5586_v2  ;;  %v1418_v26 = vpop.f32.mrf.mxu0  ;;  %v2679_v30 = vpop.permute.xlu1 %2678  ;;  %2226 = vmatpush.bf16.msra.mxu1 %v3641_v37  ;;  %v5921_v49 = vld [vmem:[%s5058_s24 + $0x30] sm:$0xff] }
 0x2ad   : > { %v1467_v55 = vpop.f32.mrf.mxu1  ;;  %v1419_v29 = vadd.f32 %v1418_v26, %v5561_v53  ;;  %v2706_v32 = vmul.f32 %v2679_v30, %v2386_v0  ;;  %6672 = vst [vmem:[#allocation43_spill] sm:$0xff] %v5921_v49 }
 0x2ae   : > { %v5895_v6 = vadd.f32 %v1563_v4, %v1515_v23  ;;  %v5924_v4 = vld [vmem:[%s5058_s24 + $0x38] sm:$0xff] }
 0x2af   : > { %v5897_v43 = vadd.f32 %v1467_v55, %v1419_v29  ;;  %v2722_v27 = vadd.f32 %v2706_v32, %v2658_v62  ;;  %6673 = vst [vmem:[#allocation44_spill] sm:$0xff] %v5924_v4  ;;  %v5930_v55 = vld [vmem:[%s5064_s10 + $0x38] sm:$0xff]  ;;  %v2404_v62 = vmul.f32 %v5921_v49, %v5760_v51 }
 0x2b0   : > { %2690 = vrot.lane.b32.xlu1 %v5895_v6, %s4733_s12 }
 0x2b1   : > { %2436 = vrot.lane.b32.xlu2 %v5897_v43, %s4733_s12 }
 0x2b3   : > { %v2681_v25 = vpop.permute.xlu0 %2680  ;;  %v1516_v16 = vpop.f32.mrf.mxu2 }
 0x2b4   : > { %v2707_v18 = vmul.f32 %v2681_v25, %v2387_v28  ;;  %v1565_v40 = vpop.f32.mrf.mxu3  ;;  %v1517_v0 = vadd.f32 %v1516_v16, %v5586_v2  ;;  %v1421_v61 = vpop.f32.mrf.mxu0  ;;  %v2708_v16 = vmul.f32 %v2683_v24, %v5927_v20 }
 0x2b5   : > { %v1470_v3 = vpop.f32.mrf.mxu1  ;;  %v1422_v33 = vadd.f32 %v1421_v61, %v5561_v53  ;;  %v2427_v63 = vpop.permute.xlu1 %2426 }
 0x2b6   : > { %v2723_v42 = vadd.f32 %v2707_v18, %v2659_v15  ;;  %v5907_v50 = vadd.f32 %v1565_v40, %v1517_v0  ;;  %v2452_v25 = vmul.f32 %v2427_v63, %v5927_v20  ;;  %v2405_v15 = vmul.f32 %v5924_v4, %v5780_v38 }
 0x2b7   : > { %v5909_v45 = vadd.f32 %v1470_v3, %v1422_v33  ;;  %1814 = vmatmul.bf16.gmra.mxu0 %v5728_v56  ;;  %1863 = vmatmul.bf16.gmra.mxu1 %v5730_v5  ;;  %v2660_v38 = vmul.f32 %v5921_v49, %v5778_v54  ;;  %v2661_v0 = vmul.f32 %v5924_v4, %v5791_v17 }
 0x2b8   : > { %v3996_v28 = vpack.c.bf16 %v2723_v42, %v2722_v27  ;;  %2692 = vrot.lane.b32.xlu0 %v5907_v50, %s4733_s12  ;;  %1912 = vmatmul.bf16.gmra.mxu2 %v5728_v56  ;;  %v2468_v40 = vadd.f32 %v2452_v25, %v2404_v62 }
 0x2b9   : > { %1961 = vmatmul.bf16.gmra.mxu3 %v5730_v5  ;;  %2438 = vrot.lane.b32.xlu1 %v5909_v45, %s4733_s12  ;;  %v2724_v33 = vadd.f32 %v2708_v16, %v2660_v38 }
 0x2ba   : > { %4126 = vst [vmem:[%s5835_s14 + $0x50] sm:$0xff] %v3996_v28  }
 0x2bb   : > { %v1519_v23 = vpop.f32.mrf.mxu2 }
 0x2bc   : > { %v1568_v26 = vpop.f32.mrf.mxu3  ;;  %v1520_v29 = vadd.f32 %v1519_v23, %v5586_v2  ;;  %v1423_v30 = vpop.f32.mrf.mxu0 }
 0x2bd   : > { %v1472_v32 = vpop.f32.mrf.mxu1  ;;  %v1424_v46 = vadd.f32 %v1423_v30, %v5561_v53  ;;  %v2429_v48 = vpop.permute.xlu0 %2428 }
 0x2be   : > { %v5939_v18 = vadd.f32 %v1568_v26, %v1520_v29  ;;  %v2453_v47 = vmul.f32 %v2429_v48, %v5930_v55 }
 0x2bf   : > { %v5942_v22 = vadd.f32 %v1472_v32, %v1424_v46 }
 0x2c0   : > { %2694 = vrot.lane.b32.xlu2 %v5939_v18, %s4733_s12  ;;  %v2469_v37 = vadd.f32 %v2453_v47, %v2405_v15  ;;  %v1610_v47 = vld [vmem:[%s6675_s19] sm:$0x3] }
 0x2c1   : > { %2440 = vrot.lane.b32.xlu0 %v5942_v22, %s4733_s12 }
 0x2c2   : > { %v3881_v61 = vpack.c.bf16 %v2469_v37, %v2468_v40  ;;  %v5983_v40 = vperm.slane %v1610_v47, 0 }
 0x2c3   : > { %v2685_v51 = vpop.permute.xlu1 %2684  ;;  %v1521_v27 = vpop.f32.mrf.mxu2 }
 0x2c4   : > { %v2709_v3 = vmul.f32 %v2685_v51, %v5930_v55  ;;  %v1570_v42 = vpop.f32.mrf.mxu3  ;;  %v1522_v28 = vadd.f32 %v1521_v27, %v5586_v2  ;;  %v1426_v63 = vpop.f32.mrf.mxu0  ;;  %4105 = vst [vmem:[%s5835_s14 + $0x18] sm:$0xff] %v3881_v61  }
 0x2c5   : > { %v1475_v23 = vpop.f32.mrf.mxu1  ;;  %v1427_v29 = vadd.f32 %v1426_v63, %v5561_v53 }
 0x2c6   : > { %v2725_v26 = vadd.f32 %v2709_v3, %v2661_v0  ;;  %v5957_v30 = vadd.f32 %v1570_v42, %v1522_v28  ;;  %v5996_v42 = vperm.slane %v1610_v47, 1 }
 0x2c7   : > { %v5959_v32 = vadd.f32 %v1475_v23, %v1427_v29  ;;  %1819 = vmatmul.bf16.gmra.mxu0 %v5774_v12  ;;  %1868 = vmatmul.bf16.gmra.mxu1 %v5776_v60 }
 0x2c8   : > { %v4001_v54 = vpack.c.bf16 %v2725_v26, %v2724_v33  ;;  %2696 = vrot.lane.b32.xlu1 %v5957_v30, %s4733_s12  ;;  %1917 = vmatmul.bf16.gmra.mxu2 %v5774_v12 }
 0x2c9   : > { %1966 = vmatmul.bf16.gmra.mxu3 %v5776_v60  ;;  %2442 = vrot.lane.b32.xlu2 %v5959_v32, %s4733_s12 }
 0x2ca   : > { %4127 = vst [vmem:[%s5835_s14 + $0x58] sm:$0xff] %v4001_v54  }
 0x2cb   : > { %v1524_v17 = vpop.f32.mrf.mxu2 }
 0x2cc   : > { %v1573_v25 = vpop.f32.mrf.mxu3  ;;  %v1525_v24 = vadd.f32 %v1524_v17, %v5586_v2  ;;  %v1428_v46 = vpop.f32.mrf.mxu0 }
 0x2cd   : > { %v1477_v48 = vpop.f32.mrf.mxu1  ;;  %v1429_v62 = vadd.f32 %v1428_v46, %v5561_v53 }
 0x2ce   : > { %v5972_v15 = vadd.f32 %v1573_v25, %v1525_v24 }
 0x2cf   : > { %v5977_v16 = vadd.f32 %v1477_v48, %v1429_v62 }
 0x2d0   : > { %2698 = vrot.lane.b32.xlu0 %v5972_v15, %s4733_s12 }
 0x2d1   : > { %2444 = vrot.lane.b32.xlu1 %v5977_v16, %s4733_s12 }
 0x2d3   : > { %v1526_v37 = vpop.f32.mrf.mxu2 }
 0x2d4   : > { %v1575_v51 = vpop.f32.mrf.mxu3  ;;  %v1527_v53 = vadd.f32 %v1526_v37, %v5586_v2  ;;  %v1785_v38 = vpop.f32.mrf.mxu0 }
 0x2d5   : > { %v1834_v0 = vpop.f32.mrf.mxu1  ;;  %v1786_v61 = vadd.f32 %v1785_v38, %v5983_v40 }
 0x2d6   : > { %v5987_v3 = vadd.f32 %v1575_v51, %v1527_v53 }
 0x2d7   : > { %v5989_v27 = vadd.f32 %v1834_v0, %v1786_v61  ;;  %2178 = vmatmul.bf16.vlgmr.msra.gmra.mxu0 %v5368_v1  ;;  %2227 = vmatmul.bf16.vlgmr.msra.gmra.mxu1 %v5370_v35 }
 0x2d8   : > { %2276 = vmatmul.bf16.vlgmr.msra.gmra.mxu2 %v5368_v1  ;;  %2700 = vrot.lane.b32.xlu2 %v5987_v3, %s4733_s12 }
 0x2d9   : > { %2325 = vmatmul.bf16.vlgmr.msra.gmra.mxu3 %v5370_v35  ;;  %2526 = vrot.lane.b32.xlu0 %v5989_v27, %s4733_s12 }
 0x2db   : > { %v1883_v2 = vpop.f32.mrf.mxu2 }
 0x2dc   : > { %v1932_v33 = vpop.f32.mrf.mxu3  ;;  %v1884_v28 = vadd.f32 %v1883_v2, %v5996_v42  ;;  %v1787_v63 = vpop.f32.mrf.mxu0 }
 0x2dd   : > { %v1836_v23 = vpop.f32.mrf.mxu1  ;;  %v1788_v26 = vadd.f32 %v1787_v63, %v5983_v40 }
 0x2de   : > { %v6003_v29 = vadd.f32 %v1932_v33, %v1884_v28 }
 0x2df   : > { %v6005_v1 = vadd.f32 %v1836_v23, %v1788_v26 }
 0x2e0   : > { %2783 = vrot.lane.b32.xlu1 %v6003_v29, %s4733_s12 }
 0x2e1   : > { %2528 = vrot.lane.b32.xlu2 %v6005_v1, %s4733_s12 }
 0x2e3   : > { %v1885_v35 = vpop.f32.mrf.mxu2 }
 0x2e4   : > { %v1934_v54 = vpop.f32.mrf.mxu3  ;;  %v1886_v17 = vadd.f32 %v1885_v35, %v5996_v42  ;;  %v1790_v25 = vpop.f32.mrf.mxu0 }
 0x2e5   : > { %v1839_v24 = vpop.f32.mrf.mxu1  ;;  %v1791_v46 = vadd.f32 %v1790_v25, %v5983_v40 }
 0x2e6   : > { %v6013_v48 = vadd.f32 %v1934_v54, %v1886_v17 }
 0x2e7   : > { %v6015_v62 = vadd.f32 %v1839_v24, %v1791_v46  ;;  %2183 = vmatmul.bf16.gmra.mxu0 %v5466_v13  ;;  %2232 = vmatmul.bf16.gmra.mxu1 %v5468_v58 }
 0x2e8   : > { %2281 = vmatmul.bf16.gmra.mxu2 %v5466_v13  ;;  %2785 = vrot.lane.b32.xlu0 %v6013_v48, %s4733_s12  ;;  %v2431_v54 = vpop.permute.xlu2 %2430 }
 0x2e9   : > { %2330 = vmatmul.bf16.gmra.mxu3 %v5468_v58  ;;  %2530 = vrot.lane.b32.xlu1 %v6015_v62, %s4733_s12 }
 0x2eb   : > { %v1888_v47 = vpop.f32.mrf.mxu2 }
 0x2ec   : > { %v1937_v37 = vpop.f32.mrf.mxu3  ;;  %v1889_v51 = vadd.f32 %v1888_v47, %v5996_v42  ;;  %v1792_v53 = vpop.f32.mrf.mxu0 }
 0x2ed   : > { %v1841_v38 = vpop.f32.mrf.mxu1  ;;  %v1793_v0 = vadd.f32 %v1792_v53, %v5983_v40 }
 0x2ee   : > { %v6027_v61 = vadd.f32 %v1937_v37, %v1889_v51 }
 0x2ef   : > { %v6029_v2 = vadd.f32 %v1841_v38, %v1793_v0  ;;  %v6063_v38 = vld [vmem:[%s5058_s24 + $0x40] sm:$0xff] }
 0x2f0   : > { %2787 = vrot.lane.b32.xlu2 %v6027_v61, %s4733_s12  ;;  %v6066_v0 = vld [vmem:[%s5064_s10 + $0x40] sm:$0xff] }
 0x2f1   : > { %2532 = vrot.lane.b32.xlu0 %v6029_v2, %s4733_s12 }
 0x2f3   : > { %v1890_v13 = vpop.f32.mrf.mxu2 }
 0x2f4   : > { %v1939_v58 = vpop.f32.mrf.mxu3  ;;  %v1891_v33 = vadd.f32 %v1890_v13, %v5996_v42  ;;  %v1795_v28 = vpop.f32.mrf.mxu0 }
 0x2f5   : > { %v1844_v63 = vpop.f32.mrf.mxu1  ;;  %v1796_v23 = vadd.f32 %v1795_v28, %v5983_v40 }
 0x2f6   : > { %v6037_v26 = vadd.f32 %v1939_v58, %v1891_v33  ;;  %v6069_v33 = vld [vmem:[%s5058_s24 + $0x48] sm:$0xff] }
 0x2f7   : > { %v6039_v35 = vadd.f32 %v1844_v63, %v1796_v23  ;;  %2188 = vmatmul.bf16.gmra.mxu0 %v5500_v11  ;;  %2237 = vmatmul.bf16.gmra.mxu1 %v5502_v19  ;;  %v2689_v53 = vpop.permute.xlu2 %2688  ;;  %v2663_v20 = vmul.f32 %v6069_v33, %v5855_v41  ;;  %v2407_v49 = vmul.f32 %v6069_v33, %v5838_v44 }
 0x2f8   : > { %2286 = vmatmul.bf16.gmra.mxu2 %v5500_v11  ;;  %2789 = vrot.lane.b32.xlu1 %v6037_v26, %s4733_s12 }
 0x2f9   : > { %2335 = vmatmul.bf16.gmra.mxu3 %v5502_v19  ;;  %2534 = vrot.lane.b32.xlu2 %v6039_v35, %s4733_s12  ;;  %v6058_v19 = vld [vmem:[%s5064_s10 + $0x48] sm:$0xff] }
 0x2fa   : > { %6676 = vst [vmem:[#allocation46_spill] sm:$0xff] %v6058_v19  ;;  %v2711_v28 = vmul.f32 %v2689_v53, %v6058_v19 }
 0x2fb   : > { %v1893_v17 = vpop.f32.mrf.mxu2 }
 0x2fc   : > { %v1942_v25 = vpop.f32.mrf.mxu3  ;;  %v1894_v24 = vadd.f32 %v1893_v17, %v5996_v42  ;;  %v1797_v46 = vpop.f32.mrf.mxu0 }
 0x2fd   : > { %v1846_v47 = vpop.f32.mrf.mxu1  ;;  %v1798_v11 = vadd.f32 %v1797_v46, %v5983_v40 }
 0x2fe   : > { %v6051_v37 = vadd.f32 %v1942_v25, %v1894_v24  ;;  %v2406_v25 = vmul.f32 %v6063_v38, %v5818_v14  ;;  %v2454_v24 = vmul.f32 %v2431_v54, %v6066_v0  ;;  %v2727_v54 = vadd.f32 %v2711_v28, %v2663_v20 }
 0x2ff   : > { %v6053_v51 = vadd.f32 %v1846_v47, %v1798_v11  ;;  %v2662_v11 = vmul.f32 %v6063_v38, %v5831_v36 }
 0x300   : > { %2791 = vrot.lane.b32.xlu0 %v6051_v37, %s4733_s12 }
 0x301   : > { %2536 = vrot.lane.b32.xlu1 %v6053_v51, %s4733_s12 }
 0x303   : > { %v1895_v13 = vpop.f32.mrf.mxu2 }
 0x304   : > { %v1944_v58 = vpop.f32.mrf.mxu3  ;;  %v1896_v63 = vadd.f32 %v1895_v13, %v5996_v42  ;;  %v1800_v23 = vpop.f32.mrf.mxu0 }
 0x305   : > { %v1849_v17 = vpop.f32.mrf.mxu1  ;;  %v1801_v46 = vadd.f32 %v1800_v23, %v5983_v40 }
 0x306   : > { %v6081_v4 = vadd.f32 %v1944_v58, %v1896_v63  ;;  %v2470_v58 = vadd.f32 %v2454_v24, %v2406_v25 }
 0x307   : > { %v2687_v47 = vpop.permute.xlu0 %2686  ;;  %v6086_v14 = vadd.f32 %v1849_v17, %v1801_v46  ;;  %2193 = vmatmul.bf16.gmra.mxu0 %v5522_v57  ;;  %2242 = vmatmul.bf16.gmra.mxu1 %v5524_v31 }
 0x308   : > { %v2710_v53 = vmul.f32 %v2687_v47, %v6066_v0  ;;  %v2433_v13 = vpop.permute.xlu1 %2432  ;;  %2291 = vmatmul.bf16.gmra.mxu2 %v5522_v57  ;;  %2793 = vrot.lane.b32.xlu2 %v6081_v4, %s4733_s12 }
 0x309   : > { %v2455_v36 = vmul.f32 %v2433_v13, %v6058_v19  ;;  %2340 = vmatmul.bf16.gmra.mxu3 %v5524_v31  ;;  %2538 = vrot.lane.b32.xlu0 %v6086_v14, %s4733_s12 }
 0x30a   : > { %v2726_v41 = vadd.f32 %v2710_v53, %v2662_v11 }
 0x30b   : > { %v2471_v44 = vadd.f32 %v2455_v36, %v2407_v49  ;;  %v1898_v23 = vpop.f32.mrf.mxu2 }
 0x30c   : > { %v4006_v63 = vpack.c.bf16 %v2727_v54, %v2726_v41  ;;  %v1947_v17 = vpop.f32.mrf.mxu3  ;;  %v1899_v20 = vadd.f32 %v1898_v23, %v5996_v42  ;;  %v1802_v28 = vpop.f32.mrf.mxu0  ;;  %v6130_v23 = vld [vmem:[%s5058_s24 + $0x58] sm:$0xff] }
 0x30d   : > { %v3886_v46 = vpack.c.bf16 %v2471_v44, %v2470_v58  ;;  %v1803_v57 = vadd.f32 %v1802_v28, %v5983_v40  ;;  %v1851_v47 = vpop.f32.mrf.mxu1  ;;  %v6118_v58 = vld [vmem:[%s5064_s10 + $0x58] sm:$0xff]  ;;  %v2437_v44 = vpop.permute.xlu2 %2436  ;;  %6678 = vst [vmem:[#allocation48_spill] sm:$0xff] %v6130_v23 }
 0x30e   : > { %4128 = vst [vmem:[%s5835_s14 + $0x60] sm:$0xff] %v4006_v63   ;;  %v6101_v25 = vadd.f32 %v1947_v17, %v1899_v20  ;;  %v6127_v63 = vld [vmem:[%s5058_s24 + $0x50] sm:$0xff] }
 0x30f   : > { %4106 = vst [vmem:[%s5835_s14 + $0x20] sm:$0xff] %v3886_v46   ;;  %v6103_v31 = vadd.f32 %v1851_v47, %v1803_v57  ;;  %v6133_v17 = vld [vmem:[%s5064_s10 + $0x50] sm:$0xff]  ;;  %v2457_v46 = vmul.f32 %v2437_v44, %v6118_v58 }
 0x310   : > { %2795 = vrot.lane.b32.xlu1 %v6101_v25, %s4733_s12  ;;  %6677 = vst [vmem:[#allocation47_spill] sm:$0xff] %v6127_v63 }
 0x311   : > { %2540 = vrot.lane.b32.xlu2 %v6103_v31, %s4733_s12 }
 0x313   : > { %v1900_v49 = vpop.f32.mrf.mxu2 }
 0x314   : > { %v1949_v24 = vpop.f32.mrf.mxu3  ;;  %v1901_v11 = vadd.f32 %v1900_v49, %v5996_v42  ;;  %v1805_v53 = vpop.f32.mrf.mxu0  ;;  %v2409_v49 = vmul.f32 %v6130_v23, %v5897_v43 }
 0x315   : > { %v1806_v13 = vadd.f32 %v1805_v53, %v5983_v40  ;;  %v1854_v36 = vpop.f32.mrf.mxu1 }
 0x316   : > { %v6111_v54 = vadd.f32 %v1949_v24, %v1901_v11 }
 0x317   : > { %v6113_v41 = vadd.f32 %v1854_v36, %v1806_v13  ;;  %2198 = vmatmul.bf16.gmra.mxu0 %v5556_v21  ;;  %2247 = vmatmul.bf16.gmra.mxu1 %v5558_v10  ;;  %v2473_v36 = vadd.f32 %v2457_v46, %v2409_v49 }
 0x318   : > { %2296 = vmatmul.bf16.gmra.mxu2 %v5556_v21  ;;  %2797 = vrot.lane.b32.xlu0 %v6111_v54, %s4733_s12 }
 0x319   : > { %2345 = vmatmul.bf16.gmra.mxu3 %v5558_v10  ;;  %2542 = vrot.lane.b32.xlu1 %v6113_v41, %s4733_s12  ;;  %v2408_v10 = vmul.f32 %v6127_v63, %v5884_v8 }
 0x31b   : > { %v1903_v20 = vpop.f32.mrf.mxu2  ;;  %v2435_v57 = vpop.permute.xlu0 %2434 }
 0x31c   : > { %v1952_v28 = vpop.f32.mrf.mxu3  ;;  %v1904_v21 = vadd.f32 %v1903_v20, %v5996_v42  ;;  %v1807_v47 = vpop.f32.mrf.mxu0  ;;  %v2456_v24 = vmul.f32 %v2435_v57, %v6133_v17 }
 0x31d   : > { %v1808_v11 = vadd.f32 %v1807_v47, %v5983_v40  ;;  %v1856_v53 = vpop.f32.mrf.mxu1 }
 0x31e   : > { %v6143_v13 = vadd.f32 %v1952_v28, %v1904_v21  ;;  %v2472_v44 = vadd.f32 %v2456_v24, %v2408_v10 }
 0x31f   : > { %v6145_v19 = vadd.f32 %v1856_v53, %v1808_v11  ;;  %v2664_v53 = vmul.f32 %v6127_v63, %v5895_v6 }
 0x320   : > { %2799 = vrot.lane.b32.xlu2 %v6143_v13, %s4733_s12  ;;  %v3891_v20 = vpack.c.bf16 %v2473_v36, %v2472_v44  ;;  %v2665_v36 = vmul.f32 %v6130_v23, %v5907_v50 }
 0x321   : > { %2544 = vrot.lane.b32.xlu0 %v6145_v19, %s4733_s12 }
 0x322   : > { %4107 = vst [vmem:[%s5835_s14 + $0x28] sm:$0xff] %v3891_v20   ;;  %v2691_v46 = vpop.permute.xlu1 %2690 }
 0x323   : > { %v1905_v8 = vpop.f32.mrf.mxu2  ;;  %v2712_v24 = vmul.f32 %v2691_v46, %v6133_v17 }
 0x324   : > { %v1954_v43 = vpop.f32.mrf.mxu3  ;;  %v1906_v57 = vadd.f32 %v1905_v8, %v5996_v42  ;;  %v1810_v47 = vpop.f32.mrf.mxu0 }
 0x325   : > { %v1811_v28 = vadd.f32 %v1810_v47, %v5983_v40  ;;  %v1859_v21 = vpop.f32.mrf.mxu1 }
 0x326   : > { %v6154_v10 = vadd.f32 %v1954_v43, %v1906_v57  ;;  %v2728_v43 = vadd.f32 %v2712_v24, %v2664_v53  ;;  %v6187_v24 = vld [vmem:[%s5058_s24 + $0x68] sm:$0xff]  ;;  %v6190_v53 = vld [vmem:[%s5064_s10 + $0x60] sm:$0xff] }
 0x327   : > { %v6156_v49 = vadd.f32 %v1859_v21, %v1811_v28  ;;  %2203 = vmatmul.bf16.gmra.mxu0 %v5665_v7  ;;  %2252 = vmatmul.bf16.gmra.mxu1 %v5667_v34  ;;  %v2695_v28 = vpop.permute.xlu2 %2694  ;;  %6682 = vst [vmem:[#allocation52_spill] sm:$0xff] %v6190_v53 }
 0x328   : > { %2301 = vmatmul.bf16.gmra.mxu2 %v5665_v7  ;;  %2801 = vrot.lane.b32.xlu1 %v6154_v10, %s4733_s12 }
 0x329   : > { %6679 = vst [vmem:[#allocation49_spill] sm:$0xff] %v6156_v49  ;;  %2350 = vmatmul.bf16.gmra.mxu3 %v5667_v34  ;;  %2546 = vrot.lane.b32.xlu2 %v6156_v49, %s4733_s12  ;;  %v6181_v49 = vld [vmem:[%s5058_s24 + $0x60] sm:$0xff] }
 0x32a   : > { %v2693_v11 = vpop.permute.xlu0 %2692 }
 0x32b   : > { %v2713_v7 = vmul.f32 %v2693_v11, %v6118_v58  ;;  %v1908_v44 = vpop.f32.mrf.mxu2  ;;  %v2439_v11 = vpop.permute.xlu1 %2438 }
 0x32c   : > { %v1957_v20 = vpop.f32.mrf.mxu3  ;;  %v1909_v8 = vadd.f32 %v1908_v44, %v5996_v42  ;;  %v1812_v34 = vpop.f32.mrf.mxu0 }
 0x32d   : > { %v2729_v57 = vadd.f32 %v2713_v7, %v2665_v36  ;;  %v1813_v47 = vadd.f32 %v1812_v34, %v5983_v40  ;;  %v1861_v6 = vpop.f32.mrf.mxu1  ;;  %v6193_v36 = vld [vmem:[%s5064_s10 + $0x68] sm:$0xff]  ;;  %v2458_v7 = vmul.f32 %v2439_v11, %v6190_v53 }
 0x32e   : > { %v6174_v21 = vadd.f32 %v1957_v20, %v1909_v8 }
 0x32f   : > { %v4011_v50 = vpack.c.bf16 %v2729_v57, %v2728_v43  ;;  %v6176_v46 = vadd.f32 %v1861_v6, %v1813_v47  ;;  %v2410_v57 = vmul.f32 %v6181_v49, %v5909_v45  ;;  %v2411_v47 = vmul.f32 %v6187_v24, %v5942_v22  ;;  %v2443_v23 = vpop.permute.xlu2 %2442 }
 0x330   : > { %6680 = vst [vmem:[#allocation50_spill] sm:$0xff] %v6174_v21  ;;  %2803 = vrot.lane.b32.xlu0 %v6174_v21, %s4733_s12  ;;  %v2714_v45 = vmul.f32 %v2695_v28, %v6190_v53 }
 0x331   : > { %6681 = vst [vmem:[#allocation51_spill] sm:$0xff] %v6176_v46  ;;  %2548 = vrot.lane.b32.xlu1 %v6176_v46, %s4733_s12  ;;  %v2474_v63 = vadd.f32 %v2458_v7, %v2410_v57  ;;  %v2666_v7 = vmul.f32 %v6181_v49, %v5939_v18  ;;  %v6225_v18 = vld [vmem:[%s5064_s10 + $0x78] sm:$0xff] }
 0x332   : > { %4129 = vst [vmem:[%s5835_s14 + $0x68] sm:$0xff] %v4011_v50  }
 0x333   : > { %v1910_v44 = vpop.f32.mrf.mxu2  ;;  %v2441_v34 = vpop.permute.xlu0 %2440 }
 0x334   : > { %v1959_v20 = vpop.f32.mrf.mxu3  ;;  %v1911_v8 = vadd.f32 %v1910_v44, %v5996_v42  ;;  %v1815_v43 = vpop.f32.mrf.mxu0  ;;  %v2459_v6 = vmul.f32 %v2441_v34, %v6193_v36 }
 0x335   : > { %v1816_v50 = vadd.f32 %v1815_v43, %v5983_v40  ;;  %v1864_v46 = vpop.f32.mrf.mxu1 }
 0x336   : > { %v6203_v11 = vadd.f32 %v1959_v20, %v1911_v8  ;;  %v2475_v21 = vadd.f32 %v2459_v6, %v2411_v47  ;;  %v2730_v8 = vadd.f32 %v2714_v45, %v2666_v7  ;;  %v6230_v6 = vld [vmem:[%s5064_s10 + $0x70] sm:$0xff]  ;;  %v6240_v45 = vld [vmem:[%s5058_s24 + $0x78] sm:$0xff] }
 0x337   : > { %v6205_v44 = vadd.f32 %v1864_v46, %v1816_v50  ;;  %2208 = vmatmul.bf16.gmra.mxu0 %v5728_v56  ;;  %2257 = vmatmul.bf16.gmra.mxu1 %v5730_v5  ;;  %v2701_v47 = vpop.permute.xlu2 %2700  ;;  %6684 = vst [vmem:[#allocation54_spill] sm:$0xff] %v6230_v6 }
 0x338   : > { %2306 = vmatmul.bf16.gmra.mxu2 %v5728_v56  ;;  %2805 = vrot.lane.b32.xlu2 %v6203_v11, %s4733_s12  ;;  %v3896_v22 = vpack.c.bf16 %v2475_v21, %v2474_v63  ;;  %v2667_v56 = vmul.f32 %v6187_v24, %v5957_v30  ;;  %v2717_v7 = vmul.f32 %v2701_v47, %v6225_v18 }
 0x339   : > { %2355 = vmatmul.bf16.gmra.mxu3 %v5730_v5  ;;  %2550 = vrot.lane.b32.xlu0 %v6205_v44, %s4733_s12 }
 0x33a   : > { %v2697_v46 = vpop.permute.xlu1 %2696  ;;  %4108 = vst [vmem:[%s5835_s14 + $0x30] sm:$0xff] %v3896_v22  }
 0x33b   : > { %v2715_v20 = vmul.f32 %v2697_v46, %v6193_v36  ;;  %v1913_v28 = vpop.f32.mrf.mxu2  ;;  %v6237_v46 = vld [vmem:[%s5058_s24 + $0x70] sm:$0xff] }
 0x33c   : > { %v1914_v63 = vadd.f32 %v1913_v28, %v5996_v42  ;;  %v1962_v5 = vpop.f32.mrf.mxu3  ;;  %v1817_v21 = vpop.f32.mrf.mxu0  ;;  %6685 = vst [vmem:[#allocation55_spill] sm:$0xff] %v6237_v46  ;;  %v2668_v28 = vmul.f32 %v6237_v46, %v5972_v15 }
 0x33d   : > { %v2731_v34 = vadd.f32 %v2715_v20, %v2667_v56  ;;  %v1818_v43 = vadd.f32 %v1817_v21, %v5983_v40  ;;  %v1866_v57 = vpop.f32.mrf.mxu1  ;;  %v2460_v56 = vmul.f32 %v2443_v23, %v6230_v6 }
 0x33e   : > { %v6227_v30 = vadd.f32 %v1962_v5, %v1914_v63  ;;  %v2669_v63 = vmul.f32 %v6240_v45, %v5987_v3 }
 0x33f   : > { %v4016_v50 = vpack.c.bf16 %v2731_v34, %v2730_v8  ;;  %v6232_v22 = vadd.f32 %v1866_v57, %v1818_v43  ;;  %v2412_v34 = vmul.f32 %v6237_v46, %v5959_v32  ;;  %v2413_v43 = vmul.f32 %v6240_v45, %v5977_v16  ;;  %v2529_v53 = vpop.permute.xlu2 %2528 }
 0x340   : > { %6683 = vst [vmem:[#allocation53_spill] sm:$0xff] %v6227_v30  ;;  %2807 = vrot.lane.b32.xlu1 %v6227_v30, %s4733_s12 }
 0x341   : > { %4130 = vst [vmem:[%s5835_s14 + $0x70] sm:$0xff] %v4016_v50   ;;  %2552 = vrot.lane.b32.xlu2 %v6232_v22, %s4733_s12  ;;  %v2733_v50 = vadd.f32 %v2717_v7, %v2669_v63  ;;  %v2559_v7 = vmul.f32 %v2529_v53, %v5816_v59 }
 0x342   : > { %v2699_v20 = vpop.permute.xlu0 %2698 }
 0x343   : > { %v2716_v5 = vmul.f32 %v2699_v20, %v6230_v6  ;;  %v1915_v21 = vpop.f32.mrf.mxu2  ;;  %v2445_v8 = vpop.permute.xlu1 %2444  ;;  %v2476_v20 = vadd.f32 %v2460_v56, %v2412_v34  ;;  %v4392_v34 = vld [vmem:[%s5064_s10] sm:$0xff] }
 0x344   : > { %v1964_v57 = vpop.f32.mrf.mxu3  ;;  %v2461_v23 = vmul.f32 %v2445_v8, %v6225_v18  ;;  %v1820_v47 = vpop.f32.mrf.mxu0 }
 0x345   : > { %v2732_v15 = vadd.f32 %v2716_v5, %v2668_v28  ;;  %v1821_v3 = vadd.f32 %v1820_v47, %v5983_v40  ;;  %v1869_v30 = vpop.f32.mrf.mxu1  ;;  %v4390_v28 = vld [vmem:[%s5058_s24] sm:$0xff]  ;;  %v4391_v5 = vld [vmem:[%s5058_s24 + $0x8] sm:$0xff] }
 0x346   : > { %v2477_v6 = vadd.f32 %v2461_v23, %v2413_v43  ;;  %v2510_v63 = vmul.f32 %v4390_v28, %v5989_v27 }
 0x347   : > { %v4021_v32 = vpack.c.bf16 %v2733_v50, %v2732_v15  ;;  %v6258_v46 = vadd.f32 %v1869_v30, %v1821_v3  ;;  %2213 = vmatmul.bf16.gmra.mxu0 %v5774_v12  ;;  %2262 = vmatmul.bf16.gmra.mxu1 %v5776_v60 }
 0x348   : > { %v3901_v16 = vpack.c.bf16 %v2477_v6, %v2476_v20  ;;  %2311 = vmatmul.bf16.gmra.mxu2 %v5774_v12  ;;  %v2511_v6 = vmul.f32 %v4391_v5, %v6005_v1 }
 0x349   : > { %4131 = vst [vmem:[%s5835_s14 + $0x78] sm:$0xff] %v4021_v32   ;;  %2360 = vmatmul.bf16.gmra.mxu3 %v5776_v60  ;;  %2554 = vrot.lane.b32.xlu1 %v6258_v46, %s4733_s12  ;;  %v2004_v32 = vld [vmem:[%s6686_s23] sm:$0x3] }
 0x34a   : > { %4109 = vst [vmem:[%s5835_s14 + $0x38] sm:$0xff] %v3901_v16   ;;  %v2575_v59 = vadd.f32 %v2559_v7, %v2511_v6  ;;  %v6297_v6 = vperm.slane %v2004_v32, 0 }
 0x34b   : > { %v1918_v56 = vpop.f32.mrf.mxu2  ;;  %v2527_v30 = vpop.permute.xlu0 %2526 }
 0x34c   : > { %v1919_v12 = vadd.f32 %v1918_v56, %v5996_v42  ;;  %v1967_v8 = vpop.f32.mrf.mxu3  ;;  %v2558_v60 = vmul.f32 %v4392_v34, %v2527_v30  ;;  %v1822_v43 = vpop.f32.mrf.mxu0 }
 0x34d   : > { %v1823_v23 = vadd.f32 %v1822_v43, %v5983_v40  ;;  %v1871_v47 = vpop.f32.mrf.mxu1  ;;  %v1916_v40 = vadd.f32 %v1915_v21, %v5996_v42  ;;  %v4393_v43 = vld [vmem:[%s5064_s10 + $0x8] sm:$0xff] }
 0x34e   : > { %v6276_v53 = vadd.f32 %v1967_v8, %v1919_v12  ;;  %v2574_v50 = vadd.f32 %v2558_v60, %v2510_v63  ;;  %v2767_v12 = vmul.f32 %v4390_v28, %v6003_v29  ;;  %v2768_v8 = vmul.f32 %v4391_v5, %v6013_v48 }
 0x34f   : > { %v6278_v15 = vadd.f32 %v1871_v47, %v1823_v23  ;;  %v6295_v63 = vadd.f32 %v1964_v57, %v1916_v40 }
 0x350   : > { %v3906_v27 = vpack.c.bf16 %v2575_v59, %v2574_v50  ;;  %2811 = vrot.lane.b32.xlu2 %v6276_v53, %s4733_s12 }
 0x351   : > { %2556 = vrot.lane.b32.xlu0 %v6278_v15, %s4733_s12 }
 0x352   : > { %3907 = vst [vmem:[%s6285_s3] sm:$0xff] %v3906_v27   ;;  %v2784_v56 = vpop.permute.xlu1 %2783 }
 0x353   : > { %v1920_v1 = vpop.f32.mrf.mxu2  ;;  %v2815_v21 = vmul.f32 %v4392_v34, %v2784_v56 }
 0x354   : > { %v1921_v3 = vadd.f32 %v1920_v1, %v5996_v42  ;;  %v1969_v20 = vpop.f32.mrf.mxu3  ;;  %v2179_v16 = vpop.f32.mrf.mxu0 }
 0x355   : > { %v2228_v7 = vpop.f32.mrf.mxu1  ;;  %v2180_v60 = vadd.f32 %v2179_v16, %v6297_v6  ;;  %v2831_v50 = vadd.f32 %v2815_v21, %v2767_v12  ;;  %v2788_v1 = vpop.permute.xlu2 %2787 }
 0x356   : > { %v6293_v30 = vadd.f32 %v1969_v20, %v1921_v3  ;;  %v6308_v3 = vperm.slane %v2004_v32, 1  ;;  %v2512_v32 = vmul.f32 %v5858_v39, %v6015_v62 }
 0x357   : > { %v2229_v29 = vadd.f32 %v2228_v7, %v2180_v60  ;;  %v2513_v7 = vmul.f32 %v5861_v52, %v6029_v2  ;;  %v4394_v60 = vld [vmem:[%s5064_s10 + $0x18] sm:$0xff] }
 0x358   : > { %2813 = vrot.lane.b32.xlu1 %v6293_v30, %s4733_s12 }
 0x359   : > { %2809 = vrot.lane.b32.xlu0 %v6295_v63, %s4733_s12 }
 0x35a   : > { %v2786_v42 = vpop.permute.xlu0 %2785 }
 0x35b   : > { %v2816_v57 = vmul.f32 %v4393_v43, %v2786_v42  ;;  %v2277_v23 = vpop.f32.mrf.mxu2  ;;  %v2531_v28 = vpop.permute.xlu1 %2530 }
 0x35c   : > { %v2326_v47 = vpop.f32.mrf.mxu3  ;;  %v2181_v59 = vpop.f32.mrf.mxu0  ;;  %v2278_v16 = vadd.f32 %v2277_v23, %v6308_v3  ;;  %v2560_v56 = vmul.f32 %v2531_v28, %v5853_v9  ;;  %v4397_v28 = vld [vmem:[%s5058_s24 + $0x18] sm:$0xff] }
 0x35d   : > { %v2832_v27 = vadd.f32 %v2816_v57, %v2768_v8  ;;  %v2182_v34 = vadd.f32 %v2181_v59, %v6297_v6  ;;  %v2230_v40 = vpop.f32.mrf.mxu1  ;;  %v2535_v23 = vpop.permute.xlu2 %2534 }
 0x35e   : > { %v2327_v59 = vadd.f32 %v2326_v47, %v2278_v16 }
 0x35f   : > { %v4026_v48 = vpack.c.bf16 %v2832_v27, %v2831_v50  ;;  %v2231_v5 = vadd.f32 %v2230_v40, %v2182_v34  ;;  %v2576_v50 = vadd.f32 %v2560_v56, %v2512_v32  ;;  %v4395_v40 = vld [vmem:[%s5064_s10 + $0x10] sm:$0xff] }
 0x360   : > { %v2817_v52 = vmul.f32 %v4395_v40, %v2788_v1  ;;  %v4401_v40 = vld [vmem:[%s5058_s24 + $0x28] sm:$0xff] }
 0x361   : > { %4132 = vst [vmem:[%s6285_s3 + $0x40] sm:$0xff] %v4026_v48   ;;  %v3946_v20 = vpack.c.bf16 %v2231_v5, %v2229_v29  ;;  %v4396_v29 = vld [vmem:[%s5058_s24 + $0x10] sm:$0xff]  ;;  %v2770_v5 = vmul.f32 %v4397_v28, %v6037_v26  ;;  %v2515_v28 = vmul.f32 %v4401_v40, %v6053_v51 }
 0x362   : > { %v2769_v48 = vmul.f32 %v4396_v29, %v6027_v61 }
 0x363   : > { %3947 = vst [vmem:[%s6314_s8] sm:$0xff] %v3946_v20   ;;  %v2279_v21 = vpop.f32.mrf.mxu2  ;;  %v2533_v42 = vpop.permute.xlu0 %2532 }
 0x364   : > { %v2280_v12 = vadd.f32 %v2279_v21, %v6308_v3  ;;  %v2328_v8 = vpop.f32.mrf.mxu3  ;;  %v2561_v9 = vmul.f32 %v4394_v60, %v2533_v42  ;;  %v2184_v43 = vpop.f32.mrf.mxu0  ;;  %v2833_v42 = vadd.f32 %v2817_v52, %v2769_v48  ;;  %v2772_v52 = vmul.f32 %v4401_v40, %v6081_v4 }
 0x365   : > { %v2233_v57 = vpop.f32.mrf.mxu1  ;;  %v2185_v47 = vadd.f32 %v2184_v43, %v6297_v6  ;;  %v4399_v43 = vld [vmem:[%s5064_s10 + $0x20] sm:$0xff] }
 0x366   : > { %v2329_v27 = vadd.f32 %v2328_v8, %v2280_v12  ;;  %v2577_v34 = vadd.f32 %v2561_v9, %v2513_v7  ;;  %v2794_v7 = vpop.permute.xlu2 %2793  ;;  %v4398_v9 = vld [vmem:[%s5064_s10 + $0x28] sm:$0xff] }
 0x367   : > { %v2234_v12 = vadd.f32 %v2233_v57, %v2185_v47 }
 0x368   : > { %v4066_v39 = vpack.c.bf16 %v2329_v27, %v2327_v59  ;;  %v3911_v62 = vpack.c.bf16 %v2577_v34, %v2576_v50  ;;  %v2820_v59 = vmul.f32 %v4398_v9, %v2794_v7  ;;  %v2562_v50 = vmul.f32 %v4399_v43, %v2535_v23 }
 0x36a   : > { %4140 = vst [vmem:[%s6314_s8 + $0x40] sm:$0xff] %v4066_v39   ;;  %v2790_v2 = vpop.permute.xlu1 %2789  ;;  %v4400_v39 = vld [vmem:[%s5058_s24 + $0x20] sm:$0xff] }
 0x36b   : > { %4110 = vst [vmem:[%s6285_s3 + $0x8] sm:$0xff] %v3911_v62   ;;  %v2818_v20 = vmul.f32 %v4394_v60, %v2790_v2  ;;  %v2282_v16 = vpop.f32.mrf.mxu2  ;;  %v2771_v62 = vmul.f32 %v4400_v39, %v6051_v37  ;;  %v2514_v48 = vmul.f32 %v4400_v39, %v6039_v35  ;;  %v2836_v37 = vadd.f32 %v2820_v59, %v2772_v52  ;;  %v6687_v59 = vld [vmem:[#allocation43_spill] sm:$0xff] }
 0x36c   : > { %v2331_v56 = vpop.f32.mrf.mxu3  ;;  %v2186_v21 = vpop.f32.mrf.mxu0  ;;  %v2283_v27 = vadd.f32 %v2282_v16, %v6308_v3 }
 0x36d   : > { %v2834_v1 = vadd.f32 %v2818_v20, %v2770_v5  ;;  %v2187_v32 = vadd.f32 %v2186_v21, %v6297_v6  ;;  %v2235_v61 = vpop.f32.mrf.mxu1  ;;  %v2578_v4 = vadd.f32 %v2562_v50, %v2514_v48 }
 0x36f   : > { %v4031_v26 = vpack.c.bf16 %v2834_v1, %v2833_v42  ;;  %v2236_v8 = vadd.f32 %v2235_v61, %v2187_v32  ;;  %v2332_v42 = vadd.f32 %v2331_v56, %v2283_v27  ;;  %v2541_v61 = vpop.permute.xlu2 %2540  ;;  %v2516_v56 = vmul.f32 %v6687_v59, %v6086_v14  ;;  %v6689_v27 = vld [vmem:[#allocation45_spill] sm:$0xff] }
 0x370   : > { %v2565_v51 = vmul.f32 %v2541_v61, %v5930_v55 }
 0x371   : > { %4133 = vst [vmem:[%s6285_s3 + $0x48] sm:$0xff] %v4031_v26   ;;  %v3951_v60 = vpack.c.bf16 %v2236_v8, %v2234_v12 }
 0x372   : > { %v2792_v34 = vpop.permute.xlu0 %2791 }
 0x373   : > { %4117 = vst [vmem:[%s6314_s8 + $0x8] sm:$0xff] %v3951_v60   ;;  %v2819_v2 = vmul.f32 %v4399_v43, %v2792_v34  ;;  %v2284_v57 = vpop.f32.mrf.mxu2  ;;  %v2537_v29 = vpop.permute.xlu1 %2536  ;;  %v6688_v60 = vld [vmem:[#allocation44_spill] sm:$0xff] }
 0x374   : > { %v2285_v23 = vadd.f32 %v2284_v57, %v6308_v3  ;;  %v2333_v5 = vpop.f32.mrf.mxu3  ;;  %v2563_v47 = vmul.f32 %v4398_v9, %v2537_v29  ;;  %v2189_v20 = vpop.f32.mrf.mxu0  ;;  %v2517_v43 = vmul.f32 %v6688_v60, %v6103_v31  ;;  %v2774_v61 = vmul.f32 %v6688_v60, %v6111_v54 }
 0x375   : > { %v2835_v16 = vadd.f32 %v2819_v2, %v2771_v62  ;;  %v2238_v21 = vpop.f32.mrf.mxu1  ;;  %v2190_v26 = vadd.f32 %v2189_v20, %v6297_v6 }
 0x376   : > { %v2334_v1 = vadd.f32 %v2333_v5, %v2285_v23  ;;  %v2579_v32 = vadd.f32 %v2563_v47, %v2515_v28  ;;  %v2581_v52 = vadd.f32 %v2565_v51, %v2517_v43 }
 0x377   : > { %v4036_v7 = vpack.c.bf16 %v2836_v37, %v2835_v16  ;;  %v2239_v57 = vadd.f32 %v2238_v21, %v2190_v26 }
 0x378   : > { %v4071_v35 = vpack.c.bf16 %v2334_v1, %v2332_v42  ;;  %v3916_v12 = vpack.c.bf16 %v2579_v32, %v2578_v4  ;;  %v2773_v32 = vmul.f32 %v6687_v59, %v6101_v25 }
 0x379   : > { %4134 = vst [vmem:[%s6285_s3 + $0x50] sm:$0xff] %v4036_v7  }
 0x37a   : > { %4141 = vst [vmem:[%s6314_s8 + $0x48] sm:$0xff] %v4071_v35  }
 0x37b   : > { %4111 = vst [vmem:[%s6285_s3 + $0x10] sm:$0xff] %v3916_v12   ;;  %v2287_v8 = vpop.f32.mrf.mxu2  ;;  %v2539_v9 = vpop.permute.xlu0 %2538 }
 0x37c   : > { %v2336_v50 = vpop.f32.mrf.mxu3  ;;  %v2564_v34 = vmul.f32 %v2539_v9, %v6689_v27  ;;  %v2191_v39 = vpop.f32.mrf.mxu0  ;;  %v2288_v23 = vadd.f32 %v2287_v8, %v6308_v3 }
 0x37d   : > { %v2192_v62 = vadd.f32 %v2191_v39, %v6297_v6  ;;  %v2240_v40 = vpop.f32.mrf.mxu1 }
 0x37e   : > { %v2580_v2 = vadd.f32 %v2564_v34, %v2516_v56  ;;  %v2337_v37 = vadd.f32 %v2336_v50, %v2288_v23  ;;  %v2800_v50 = vpop.permute.xlu2 %2799 }
 0x37f   : > { %v2241_v29 = vadd.f32 %v2240_v40, %v2192_v62  ;;  %v2518_v40 = vmul.f32 %v6063_v38, %v6113_v41  ;;  %v2823_v41 = vmul.f32 %v2800_v50, %v6066_v0  ;;  %v6691_v50 = vld [vmem:[#allocation50_spill] sm:$0xff] }
 0x380   : > { %v3921_v48 = vpack.c.bf16 %v2581_v52, %v2580_v2  ;;  %v2519_v52 = vmul.f32 %v6069_v33, %v6145_v19  ;;  %v2775_v19 = vmul.f32 %v6063_v38, %v6143_v13 }
 0x381   : > { %v3956_v28 = vpack.c.bf16 %v2241_v29, %v2239_v57  ;;  %v6690_v29 = vld [vmem:[#allocation46_spill] sm:$0xff] }
 0x382   : > { %4112 = vst [vmem:[%s6285_s3 + $0x18] sm:$0xff] %v3921_v48   ;;  %v2796_v16 = vpop.permute.xlu1 %2795 }
 0x383   : > { %4118 = vst [vmem:[%s6314_s8 + $0x10] sm:$0xff] %v3956_v28   ;;  %v2289_v14 = vpop.f32.mrf.mxu2  ;;  %v2821_v21 = vmul.f32 %v2796_v16, %v6689_v27 }
 0x384   : > { %v2290_v31 = vadd.f32 %v2289_v14, %v6308_v3  ;;  %v2338_v5 = vpop.f32.mrf.mxu3  ;;  %v2194_v47 = vpop.f32.mrf.mxu0 }
 0x385   : > { %v2243_v20 = vpop.f32.mrf.mxu1  ;;  %v2195_v7 = vadd.f32 %v2194_v47, %v6297_v6  ;;  %v2837_v8 = vadd.f32 %v2821_v21, %v2773_v32 }
 0x386   : > { %v2339_v4 = vadd.f32 %v2338_v5, %v2290_v31  ;;  %v2547_v14 = vpop.permute.xlu2 %2546 }
 0x387   : > { %v2244_v27 = vadd.f32 %v2243_v20, %v2195_v7 }
 0x388   : > { %v4076_v42 = vpack.c.bf16 %v2339_v4, %v2337_v37 }
 0x38a   : > { %4142 = vst [vmem:[%s6314_s8 + $0x50] sm:$0xff] %v4076_v42   ;;  %v2798_v1 = vpop.permute.xlu0 %2797  ;;  %v2776_v42 = vmul.f32 %v6069_v33, %v6154_v10 }
 0x38b   : > { %v2822_v35 = vmul.f32 %v2798_v1, %v5930_v55  ;;  %v2292_v12 = vpop.f32.mrf.mxu2  ;;  %v2543_v59 = vpop.permute.xlu1 %2542 }
 0x38c   : > { %v2341_v51 = vpop.f32.mrf.mxu3  ;;  %v2196_v26 = vpop.f32.mrf.mxu0  ;;  %v2293_v60 = vadd.f32 %v2292_v12, %v6308_v3  ;;  %v2566_v55 = vmul.f32 %v2543_v59, %v6066_v0  ;;  %v6693_v59 = vld [vmem:[#allocation48_spill] sm:$0xff] }
 0x38d   : > { %v2838_v9 = vadd.f32 %v2822_v35, %v2774_v61  ;;  %v2197_v56 = vadd.f32 %v2196_v26, %v6297_v6  ;;  %v2245_v43 = vpop.f32.mrf.mxu1  ;;  %v2839_v35 = vadd.f32 %v2823_v41, %v2775_v19 }
 0x38e   : > { %v2342_v31 = vadd.f32 %v2341_v51, %v2293_v60  ;;  %v2582_v5 = vadd.f32 %v2566_v55, %v2518_v40  ;;  %v6695_v40 = vld [vmem:[#allocation51_spill] sm:$0xff] }
 0x38f   : > { %v4041_v25 = vpack.c.bf16 %v2838_v9, %v2837_v8  ;;  %v2246_v34 = vadd.f32 %v2245_v43, %v2197_v56  ;;  %v2568_v9 = vmul.f32 %v2547_v14, %v6133_v17 }
 0x391   : > { %4135 = vst [vmem:[%s6285_s3 + $0x58] sm:$0xff] %v4041_v25   ;;  %v3961_v54 = vpack.c.bf16 %v2246_v34, %v2244_v27  ;;  %v6692_v27 = vld [vmem:[#allocation47_spill] sm:$0xff]  ;;  %v2778_v34 = vmul.f32 %v6693_v59, %v6203_v11 }
 0x392   : > { %v2806_v26 = vpop.permute.xlu2 %2805  ;;  %v2777_v25 = vmul.f32 %v6692_v27, %v6691_v50 }
 0x393   : > { %4119 = vst [vmem:[%s6314_s8 + $0x18] sm:$0xff] %v3961_v54   ;;  %v2294_v39 = vpop.f32.mrf.mxu2  ;;  %v2545_v62 = vpop.permute.xlu0 %2544  ;;  %v2826_v33 = vmul.f32 %v2806_v26, %v6118_v58 }
 0x394   : > { %v2295_v2 = vadd.f32 %v2294_v39, %v6308_v3  ;;  %v2343_v57 = vpop.f32.mrf.mxu3  ;;  %v2567_v48 = vmul.f32 %v2545_v62, %v6690_v29  ;;  %v2199_v28 = vpop.f32.mrf.mxu0  ;;  %v6694_v39 = vld [vmem:[#allocation49_spill] sm:$0xff] }
 0x395   : > { %v2248_v23 = vpop.f32.mrf.mxu1  ;;  %v2200_v21 = vadd.f32 %v2199_v28, %v6297_v6  ;;  %v2520_v62 = vmul.f32 %v6692_v27, %v6694_v39 }
 0x396   : > { %v2344_v47 = vadd.f32 %v2343_v57, %v2295_v2  ;;  %v2583_v20 = vadd.f32 %v2567_v48, %v2519_v52  ;;  %v2521_v52 = vmul.f32 %v6693_v59, %v6695_v40  ;;  %v2842_v48 = vadd.f32 %v2826_v33, %v2778_v34 }
 0x397   : > { %v2249_v38 = vadd.f32 %v2248_v23, %v2200_v21  ;;  %v2584_v23 = vadd.f32 %v2568_v9, %v2520_v62  ;;  %v2523_v21 = vmul.f32 %v6187_v24, %v6232_v22 }
 0x398   : > { %v4081_v37 = vpack.c.bf16 %v2344_v47, %v2342_v31  ;;  %v3926_v16 = vpack.c.bf16 %v2583_v20, %v2582_v5 }
 0x39a   : > { %4143 = vst [vmem:[%s6314_s8 + $0x58] sm:$0xff] %v4081_v37   ;;  %v2802_v4 = vpop.permute.xlu1 %2801 }
 0x39b   : > { %4113 = vst [vmem:[%s6285_s3 + $0x20] sm:$0xff] %v3926_v16   ;;  %v2824_v1 = vmul.f32 %v2802_v4, %v6690_v29  ;;  %v2297_v32 = vpop.f32.mrf.mxu2  ;;  %v2553_v47 = vpop.permute.xlu2 %2552 }
 0x39c   : > { %v2346_v61 = vpop.f32.mrf.mxu3  ;;  %v2201_v7 = vpop.f32.mrf.mxu0  ;;  %v2298_v56 = vadd.f32 %v2297_v32, %v6308_v3  ;;  %v2571_v41 = vmul.f32 %v2553_v47, %v6193_v36  ;;  %v6696_v32 = vld [vmem:[#allocation52_spill] sm:$0xff] }
 0x39d   : > { %v2840_v0 = vadd.f32 %v2824_v1, %v2776_v42  ;;  %v2202_v12 = vadd.f32 %v2201_v7, %v6297_v6  ;;  %v2250_v51 = vpop.f32.mrf.mxu1  ;;  %v2522_v42 = vmul.f32 %v6181_v49, %v6205_v44 }
 0x39e   : > { %v2347_v14 = vadd.f32 %v2346_v61, %v2298_v56 }
 0x39f   : > { %v4046_v13 = vpack.c.bf16 %v2840_v0, %v2839_v35  ;;  %v2251_v8 = vadd.f32 %v2250_v51, %v2202_v12  ;;  %v2587_v12 = vadd.f32 %v2571_v41, %v2523_v21 }
 0x3a1   : > { %4136 = vst [vmem:[%s6285_s3 + $0x60] sm:$0xff] %v4046_v13   ;;  %v3966_v10 = vpack.c.bf16 %v2251_v8, %v2249_v38 }
 0x3a2   : > { %v2804_v43 = vpop.permute.xlu0 %2803 }
 0x3a3   : > { %4120 = vst [vmem:[%s6314_s8 + $0x20] sm:$0xff] %v3966_v10   ;;  %v2825_v54 = vmul.f32 %v2804_v43, %v6133_v17  ;;  %v2299_v60 = vpop.f32.mrf.mxu2  ;;  %v2549_v55 = vpop.permute.xlu1 %2548 }
 0x3a4   : > { %v2300_v2 = vadd.f32 %v2299_v60, %v6308_v3  ;;  %v2348_v57 = vpop.f32.mrf.mxu3  ;;  %v2569_v29 = vmul.f32 %v2549_v55, %v6118_v58  ;;  %v2204_v11 = vpop.f32.mrf.mxu0 }
 0x3a5   : > { %v2841_v28 = vadd.f32 %v2825_v54, %v2777_v25  ;;  %v2253_v17 = vpop.f32.mrf.mxu1  ;;  %v2205_v58 = vadd.f32 %v2204_v11, %v6297_v6 }
 0x3a6   : > { %v2349_v31 = vadd.f32 %v2348_v57, %v2300_v2  ;;  %v2585_v5 = vadd.f32 %v2569_v29, %v2521_v52  ;;  %v6697_v29 = vld [vmem:[#allocation54_spill] sm:$0xff] }
 0x3a7   : > { %v4051_v20 = vpack.c.bf16 %v2842_v48, %v2841_v28  ;;  %v2254_v26 = vadd.f32 %v2253_v17, %v2205_v58  ;;  %v6698_v17 = vld [vmem:[#allocation55_spill] sm:$0xff] }
 0x3a8   : > { %v4086_v37 = vpack.c.bf16 %v2349_v31, %v2347_v14  ;;  %v3931_v16 = vpack.c.bf16 %v2585_v5, %v2584_v23  ;;  %v2524_v23 = vmul.f32 %v6698_v17, %v6258_v46  ;;  %v2525_v14 = vmul.f32 %v6240_v45, %v6278_v15 }
 0x3a9   : > { %4137 = vst [vmem:[%s6285_s3 + $0x68] sm:$0xff] %v4051_v20  }
 0x3aa   : > { %4144 = vst [vmem:[%s6314_s8 + $0x60] sm:$0xff] %v4086_v37  }
 0x3ab   : > { %4114 = vst [vmem:[%s6285_s3 + $0x28] sm:$0xff] %v3931_v16   ;;  %v2302_v4 = vpop.f32.mrf.mxu2  ;;  %v2551_v19 = vpop.permute.xlu0 %2550 }
 0x3ac   : > { %v2351_v1 = vpop.f32.mrf.mxu3  ;;  %v2570_v61 = vmul.f32 %v2551_v19, %v6696_v32  ;;  %v2206_v7 = vpop.f32.mrf.mxu0  ;;  %v2303_v33 = vadd.f32 %v2302_v4, %v6308_v3 }
 0x3ad   : > { %v2207_v35 = vadd.f32 %v2206_v7, %v6297_v6  ;;  %v2255_v0 = vpop.f32.mrf.mxu1  ;;  %v2812_v16 = vpop.permute.xlu2 %2811  ;;  %v2782_v7 = vmul.f32 %v6240_v45, %v6293_v30 }
 0x3ae   : > { %v2586_v51 = vadd.f32 %v2570_v61, %v2522_v42  ;;  %v2352_v43 = vadd.f32 %v2351_v1, %v2303_v33  ;;  %v2829_v46 = vmul.f32 %v2812_v16, %v6697_v29  ;;  %v2781_v61 = vmul.f32 %v6698_v17, %v6276_v53 }
 0x3af   : > { %v2256_v38 = vadd.f32 %v2255_v0, %v2207_v35 }
 0x3b0   : > { %v3936_v13 = vpack.c.bf16 %v2587_v12, %v2586_v51  ;;  %v2845_v30 = vadd.f32 %v2829_v46, %v2781_v61 }
 0x3b1   : > { %v3971_v8 = vpack.c.bf16 %v2256_v38, %v2254_v26  ;;  %v6699_v26 = vld [vmem:[#allocation53_spill] sm:$0xff] }
 0x3b2   : > { %4115 = vst [vmem:[%s6285_s3 + $0x30] sm:$0xff] %v3936_v13   ;;  %v2808_v27 = vpop.permute.xlu1 %2807  ;;  %v2779_v38 = vmul.f32 %v6181_v49, %v6699_v26 }
 0x3b3   : > { %4121 = vst [vmem:[%s6314_s8 + $0x28] sm:$0xff] %v3971_v8   ;;  %v2304_v44 = vpop.f32.mrf.mxu2  ;;  %v2827_v1 = vmul.f32 %v2808_v27, %v6696_v32  ;;  %v2780_v32 = vmul.f32 %v6187_v24, %v6295_v63 }
 0x3b4   : > { %v2305_v22 = vadd.f32 %v2304_v44, %v6308_v3  ;;  %v2353_v10 = vpop.f32.mrf.mxu3  ;;  %v2209_v9 = vpop.f32.mrf.mxu0 }
 0x3b5   : > { %v2258_v56 = vpop.f32.mrf.mxu1  ;;  %v2210_v59 = vadd.f32 %v2209_v9, %v6297_v6 }
 0x3b6   : > { %v2354_v50 = vadd.f32 %v2353_v10, %v2305_v22 }
 0x3b7   : > { %v2259_v62 = vadd.f32 %v2258_v56, %v2210_v59 }
 0x3b8   : > { %v4091_v25 = vpack.c.bf16 %v2354_v50, %v2352_v43 }
 0x3ba   : > { %4145 = vst [vmem:[%s6314_s8 + $0x68] sm:$0xff] %v4091_v25  }
 0x3bb   : > { %v2307_v34 = vpop.f32.mrf.mxu2  ;;  %v2555_v40 = vpop.permute.xlu1 %2554 }
 0x3bc   : > { %v2356_v54 = vpop.f32.mrf.mxu3  ;;  %v2211_v60 = vpop.f32.mrf.mxu0  ;;  %v2308_v57 = vadd.f32 %v2307_v34, %v6308_v3  ;;  %v2572_v11 = vmul.f32 %v2555_v40, %v6697_v29 }
 0x3bd   : > { %v2212_v55 = vadd.f32 %v2211_v60, %v6297_v6  ;;  %v2260_v39 = vpop.f32.mrf.mxu1 }
 0x3be   : > { %v2357_v41 = vadd.f32 %v2356_v54, %v2308_v57  ;;  %v2588_v58 = vadd.f32 %v2572_v11, %v2524_v23 }
 0x3bf   : > { %v2261_v52 = vadd.f32 %v2260_v39, %v2212_v55 }
 0x3c1   : > { %v3976_v2 = vpack.c.bf16 %v2261_v52, %v2259_v62 }
 0x3c3   : > { %4122 = vst [vmem:[%s6314_s8 + $0x30] sm:$0xff] %v3976_v2   ;;  %v2309_v48 = vpop.f32.mrf.mxu2  ;;  %v2557_v28 = vpop.permute.xlu0 %2556 }
 0x3c4   : > { %v2310_v31 = vadd.f32 %v2309_v48, %v6308_v3  ;;  %v2358_v5 = vpop.f32.mrf.mxu3  ;;  %v2573_v47 = vmul.f32 %v2557_v28, %v6225_v18  ;;  %v2214_v20 = vpop.f32.mrf.mxu0 }
 0x3c5   : > { %v2263_v37 = vpop.f32.mrf.mxu1  ;;  %v2215_v35 = vadd.f32 %v2214_v20, %v6297_v6 }
 0x3c6   : > { %v2359_v4 = vadd.f32 %v2358_v5, %v2310_v31  ;;  %v2589_v19 = vadd.f32 %v2573_v47, %v2525_v14 }
 0x3c7   : > { %v2264_v10 = vadd.f32 %v2263_v37, %v2215_v35 }
 0x3c8   : > { %v4096_v42 = vpack.c.bf16 %v2359_v4, %v2357_v41  ;;  %v3941_v21 = vpack.c.bf16 %v2589_v19, %v2588_v58 }
 0x3ca   : > { %4146 = vst [vmem:[%s6314_s8 + $0x70] sm:$0xff] %v4096_v42   ;;  %v2814_v15 = vpop.permute.xlu1 %2813 }
 0x3cb   : > { %4116 = vst [vmem:[%s6285_s3 + $0x38] sm:$0xff] %v3941_v21   ;;  %v2830_v0 = vmul.f32 %v2814_v15, %v6225_v18  ;;  %v2312_v12 = vpop.f32.mrf.mxu2  ;;  %v2810_v51 = vpop.permute.xlu0 %2809  ;;  %v2843_v18 = vadd.f32 %v2827_v1, %v2779_v38 }
 0x3cc   : > { %v2361_v13 = vpop.f32.mrf.mxu3  ;;  %v2828_v53 = vmul.f32 %v2810_v51, %v6193_v36  ;;  %v2216_v45 = vpop.f32.mrf.mxu0  ;;  %v2313_v36 = vadd.f32 %v2312_v12, %v6308_v3 }
 0x3cd   : > { %v2846_v8 = vadd.f32 %v2830_v0, %v2782_v7  ;;  %v2217_v33 = vadd.f32 %v2216_v45, %v6297_v6  ;;  %v2265_v22 = vpop.f32.mrf.mxu1 }
 0x3ce   : > { %v2844_v44 = vadd.f32 %v2828_v53, %v2780_v32  ;;  %v2362_v50 = vadd.f32 %v2361_v13, %v2313_v36 }
 0x3cf   : > { %v4061_v49 = vpack.c.bf16 %v2846_v8, %v2845_v30  ;;  %v2266_v9 = vadd.f32 %v2265_v22, %v2217_v33 }
 0x3d0   : > { %v4056_v24 = vpack.c.bf16 %v2844_v44, %v2843_v18 }
 0x3d1   : > { %4139 = vst [vmem:[%s6285_s3 + $0x78] sm:$0xff] %v4061_v49   ;;  %v3981_v63 = vpack.c.bf16 %v2266_v9, %v2264_v10 }
 0x3d2   : > { %4138 = vst [vmem:[%s6285_s3 + $0x70] sm:$0xff] %v4056_v24  }
 0x3d3   : > { %4123 = vst [vmem:[%s6314_s8 + $0x38] sm:$0xff] %v3981_v63   ;;  %v2314_v56 = vpop.f32.mrf.mxu2 }
 0x3d4   : > { %v2315_v43 = vadd.f32 %v2314_v56, %v6308_v3  ;;  %v2363_v6 = vpop.f32.mrf.mxu3 }
 0x3d6   : > { %v2364_v27 = vadd.f32 %v2363_v6, %v2315_v43 }
 0x3d8   : > { %v4101_v25 = vpack.c.bf16 %v2364_v27, %v2362_v50 }
 0x3da   : > { %4147 = vst [vmem:[%s6314_s8 + $0x78] sm:$0xff] %v4101_v25  }
 0x3db   : > { %s6700_s24 = sld [smem:[#allocation34_spill]]  ;;  %s2948_s6 = sshll.u32 %s5835_s14, 4  ;;  %s2949_s6 = int_to_ptr.vmem [resolvable:$true] %s2948_s6 }
 0x3dc   : > { %s6701_s10 = sld [smem:[#allocation33_spill]]  ;;  %s4734_s20 = smov 1024  }
 0x3dd   : > { %s6703_s25 = sld [smem:[#allocation66_spill]]  ;;  %s4735_s2 = smov 2048  }
 0x3de   : > { %4170 = sst [smem:[#allocation19]] (%p5000_p11), %s4734_s20  ;;  %s4736_s19 = smov 16  }
 0x3df   : > { %4171 = sst [smem:[#allocation19 + $0x1]] (%p5000_p11), %s4735_s2  ;;  %s4737_s14 = smov 64  }
 0x3e0   : > { %4172 = sst [smem:[#allocation19 + $0x2]] (%p5000_p11), %s4736_s19  ;;  %s4738_s15 = smov 4  }
 0x3e1   : > { %s3753_s21 = sshll.u32 %s6700_s24, 4  ;;  %4173 = sst [smem:[#allocation19 + $0x3]] (%p5000_p11), %s4737_s14 }
 0x3e2   : > { %s3754_s22 = sshll.u32 %s6701_s10, 6  ;;  %4174 = sst [smem:[#allocation19 + $0x4]] (%p5000_p11), %s4737_s14 }
 0x3e3   : > { %s2935_s13 = sadd.s32 %s3754_s22, %s3753_s21  ;;  %4175 = sst [smem:[#allocation19 + $0x5]] (%p5000_p11), %s4738_s15 }
 0x3e4   : > { %s6461_s1 = sshll.u32 %s2935_s13, 2  ;;  %s4739_s30 = smov [#allocation18]  }
 0x3e5   : > { %s2937_s12 = scalar_lea.hbm %s6703_s25, %s6461_s1  ;;  %s4740_s23 = smov 0  }
 0x3e6   : > { %s2950_s5 = sshll.u32 %s2937_s12, 4  ;;  %s2951_s5 = int_to_ptr.hbm [resolvable:$true] %s2950_s5 }
 0x3e7   : > { %4176 = dma.general (%p5000_p11), %s2949_s6, 2048, %s2951_s5, %s2914_s4, %s4739_s30, [#allocation19], %s4740_s23, 0  }
 0x3e8   : > { %s6704_s21 = sld [smem:[#allocation67_spill]]  ;;  %s2990_s13 = sshll.u32 %s6285_s3, 4  ;;  %s2991_s13 = int_to_ptr.vmem [resolvable:$true] %s2990_s13 }
 0x3e9   : > { %s4741_s26 = smov 1024   ;;  %s4742_s4 = smov 2048  }
 0x3ea   : > { %4177 = sst [smem:[#allocation21]] (%p5000_p11), %s4741_s26  ;;  %s4743_s6 = smov 16  }
 0x3eb   : > { %4178 = sst [smem:[#allocation21 + $0x1]] (%p5000_p11), %s4742_s4  ;;  %s4744_s25 = smov 64  }
 0x3ec   : > { %4179 = sst [smem:[#allocation21 + $0x2]] (%p5000_p11), %s4743_s6  ;;  %s4745_s3 = smov 4  }
 0x3ed   : > { %4180 = sst [smem:[#allocation21 + $0x3]] (%p5000_p11), %s4744_s25  ;;  %s4746_s12 = smov [#allocation20]  }
 0x3ee   : > { %s2979_s22 = scalar_lea.hbm %s6704_s21, %s6461_s1  ;;  %4181 = sst [smem:[#allocation21 + $0x4]] (%p5000_p11), %s4744_s25 }
 0x3ef   : > { %s2992_s28 = sshll.u32 %s2979_s22, 4  ;;  %4182 = sst [smem:[#allocation21 + $0x5]] (%p5000_p11), %s4745_s3  ;;  %s2993_s28 = int_to_ptr.hbm [resolvable:$true] %s2992_s28 }
 0x3f0   : > { %s4747_s5 = smov 0  }
 0x3f1   : > { %4183 = dma.general (%p5000_p11), %s2991_s13, 2048, %s2993_s28, %s6456_s11, %s4746_s12, [#allocation21], %s4747_s5, 0  }
 0x3f2   : > { %s6705_s19 = sld [smem:[#allocation68_spill]]  ;;  %s3032_s15 = sshll.u32 %s6314_s8, 4  ;;  %s3033_s15 = int_to_ptr.vmem [resolvable:$true] %s3032_s15 }
 0x3f3   : > { %s4748_s23 = smov 1024   ;;  %s4749_s24 = smov 2048  }
 0x3f4   : > { %4184 = sst [smem:[#allocation23]] (%p5000_p11), %s4748_s23  ;;  %s4750_s10 = smov 16  }
 0x3f5   : > { %4185 = sst [smem:[#allocation23 + $0x1]] (%p5000_p11), %s4749_s24  ;;  %s4751_s21 = smov 64  }
 0x3f6   : > { %4186 = sst [smem:[#allocation23 + $0x2]] (%p5000_p11), %s4750_s10  ;;  %s4752_s8 = smov 4  }
 0x3f7   : > { %4187 = sst [smem:[#allocation23 + $0x3]] (%p5000_p11), %s4751_s21  ;;  %s4754_s22 = smov 0  }
 0x3f8   : > { %s3021_s14 = scalar_lea.hbm %s6705_s19, %s6461_s1  ;;  %4188 = sst [smem:[#allocation23 + $0x4]] (%p5000_p11), %s4751_s21 }
 0x3f9   : > { %s3034_s30 = sshll.u32 %s3021_s14, 4  ;;  %4189 = sst [smem:[#allocation23 + $0x5]] (%p5000_p11), %s4752_s8  ;;  %s3035_s30 = int_to_ptr.hbm [resolvable:$true] %s3034_s30 }
 0x3fa   : > { %s4753_s1 = smov [#allocation22]  }
 0x3fb   : > { %4190 = dma.general (%p5000_p11), %s3033_s15, 2048, %s3035_s30, %s6456_s11, %s4753_s1, [#allocation23], %s4754_s22, 0  }
 0x3fc PF: > { %s6706_s13 = sld [smem:[#allocation31_spill]]  ;;  %p4236_p12 = scmp.ge.s32.totalorder %s4722_s18, 2 }
 0x3fe   : > { %p4218_p5 = pnand %p4236_p12, %p5008_p7 }
 0x400   : > { %p4219_p6 = pneg %p4218_p5 }
 0x402   : > { %s3062_s26 = sand.u32 1, %s6706_s13  }
 0x403   : > { %s3063_s4 = scalar_lea.sflag [#allocation4], %s3062_s26 }
 0x404   : > { %4673 = dma.done.wait (%p4219_p6), %s3063_s4, 2048  }
 0x405   : > { %4675 = vsyncadd (%p4219_p6), %s3063_s4, 4294965248  ;;  %s6708_s6 = sadd.s32 4294967294, %s4722_s18  }
 0x406   : > { %s3072_s25 = sand.u32 1, %s6708_s6  }
 0x407   : > { %s3073_s3 = scalar_lea.sflag [#allocation16], %s3072_s25 }
 0x408   : > { %4677 = dma.done.wait (%p4219_p6), %s3073_s3, 4096  }
 0x409   : > { %4679 = vsyncadd (%p4219_p6), %s3073_s3, 4294963200  ;;  %s38_s18 = sadd.s32 1, %s4722_s18   ;;  %s6709_s25 = sld [smem:[#allocation30_spill]] }
 0x40a   : > { %p35_p8 = scmp.ge.s32.totalorder %s38_s18, 6   ;;  %s6710_s11 = sld [smem:[#allocation32_spill]] }
 0x40b   : > { %s6711_s30 = sld [smem:[#allocation42_spill]]  ;;  %s6714_s26 = smov %s4690_s27 }
 0x40c   : > { %s6712_s7 = sld [smem:[#allocation38_spill]]  ;;  %s6715_s27 = smov %s5018_s9 }
 0x40d   : > { %s6713_s12 = sld [smem:[#allocation40_spill]]  ;;  %s6716_s28 = smov %s4698_s29 }
 0x40e   : > { %s6718_s14 = smov %s4714_s16  ;;  %s6719_s15 = smov %s4718_s17 }
 0x40f   :  { %37 = sbr.rel (!%p35_p8) target bundleno = 29 (0x1d), region = 199 }
 0x410   : > { %s6717_s29 = smov %s6710_s11 }
 0x412   : > { %s6720_s16 = smov %s6712_s7 }
 0x413   : > { %s6721_s17 = smov %s6713_s12 }
 0x414   :  { %3089 = vsyncpa [#allocation3], 1 }
 0x415   :  { %3091 = vsyncpa [#allocation3 + $0x1], 1 }
 0x416   :  { %3092 = vsyncpa [#allocation6], 1 }
 0x417   :  { %3094 = vsyncpa [#allocation6 + $0x1], 1 }
 0x418   :  { %3095 = vsyncpa [#allocation9], 1 }
 0x419   :  { %3096 = vsyncpa [#allocation12], 1 }
 0x41a   :  { %3097 = vsyncpa [#allocation4], 1 }
 0x41b   :  { %3099 = vsyncpa [#allocation4 + $0x1], 1 }
 0x41c   :  { %3100 = vsyncpa [#allocation16], 1 }
 0x41d   :  { %3102 = vsyncpa [#allocation16 + $0x1], 1 }

</bundles_post_ra>
